<compile_context>
chip_gen: v7x
topology: tpu7x:2x2x1
jax: 0.10.0
libtpu: 0.0.40
codegen_flags: <defaults>
</compile_context>

<pallas_src>
import functools

import jax
import jax.numpy as jnp
from jax.experimental import pallas as pl
from jax.experimental.pallas import tpu as pltpu

F_IN = 3072
HIDDEN = 512
EPS = 1e-5              # torch.nn.BatchNorm1d default
_MIB = 1024 * 1024


# ---------------------------------------------------------------------------
# One-time parameter preparation (NOT part of the per-call hot path).
# ---------------------------------------------------------------------------
def prepare_params(w1, b1, gamma, beta, w2, b2):
    """One-time conversion of the module parameters for the kernel.

    * W1 is cast to bfloat16 ONCE here: its 3 MiB stream is the kernel's HBM
      roofline, and re-casting it per call would roughly triple that traffic.
    * gamma / beta / W2^T / b2 are packed into a single lane-dense (4, 512)
      f32 block so the kernel issues one small parameter DMA instead of four.
    * b1 (linear1 bias) is accepted for parity with the PyTorch module but is
      intentionally unused: `Head_regressor.forward` applies BatchNorm1d in
      training mode (batch statistics), and the batch-mean subtraction cancels
      a per-feature bias exactly.  This does NOT hold for eval-mode running
      statistics; in that case the bias would have to be re-introduced.
    """
    del b1
    w1_bf16 = jnp.asarray(w1, jnp.float32).astype(jnp.bfloat16)
    b2_row = jnp.zeros((HIDDEN,), jnp.float32).at[0].set(
        jnp.asarray(b2, jnp.float32).reshape(()))
    packed = jnp.stack([
        jnp.asarray(gamma, jnp.float32).reshape(HIDDEN),   # row 0: BN gamma
        jnp.asarray(beta, jnp.float32).reshape(HIDDEN),    # row 1: BN beta
        jnp.asarray(w2, jnp.float32).reshape(HIDDEN),      # row 2: W2^T
        b2_row,                                            # row 3: [b2, 0, ...]
    ])
    return w1_bf16, packed


def _unpack_params(p_ref):
    gamma = p_ref[0:1, :]        # (1, 512)
    beta = p_ref[1:2, :]         # (1, 512)
    w2t = p_ref[2:3, :]          # (1, 512)
    b2 = p_ref[3:4, 0:1]         # (1, 1)
    return gamma, beta, w2t, b2


# ---------------------------------------------------------------------------
# Kernels
# ---------------------------------------------------------------------------
def _head_single_step_kernel(x_ref, w1_ref, p_ref, o_ref):
    """Single K-step (tk == 3072, small batch): no accumulator round trip."""
    gamma, beta, w2t, b2 = _unpack_params(p_ref)
    # bf16 x bf16 -> f32 MXU matmul; x is cast in-kernel (VPU cast hides under
    # the DMA/MXU), so the wrapper never re-materializes it in HBM.
    h = jnp.dot(x_ref[...].astype(jnp.bfloat16), w1_ref[...],
                preferred_element_type=jnp.float32)               # (B, 512)
    # linear1 bias omitted: cancelled exactly by the batch-mean subtraction.
    mean = jnp.mean(h, axis=0, keepdims=True)                     # (1, 512)
    var = jnp.mean((h - mean) ** 2, axis=0, keepdims=True)        # biased, as torch
    s = jax.nn.sigmoid((h - mean) * jax.lax.rsqrt(var + EPS) * gamma + beta)
    # linear2 (512 -> 1): VPU multiply + lane reduction (no N=1 MXU matmul).
    out = jnp.sum(s * w2t, axis=-1, keepdims=True) + b2
    o_ref[...] = jax.nn.sigmoid(out)                              # (B, 1)


def _head_multi_step_kernel(x_ref, w1_ref, p_ref, o_ref, acc_ref, *, row_chunk):
    """Multi K-step (large batch): f32 accumulator over the K grid axis plus a
    row-chunked epilogue so (B, 512) f32 temporaries never spill the vregs."""
    k = pl.program_id(0)

    @pl.when(k == 0)
    def _():
        acc_ref[...] = jnp.zeros_like(acc_ref)

    acc_ref[...] += jnp.dot(x_ref[...].astype(jnp.bfloat16), w1_ref[...],
                            preferred_element_type=jnp.float32)

    @pl.when(k == pl.num_programs(0) - 1)
    def _():
        gamma, beta, w2t, b2 = _unpack_params(p_ref)
        B = acc_ref.shape[0]
        n_full, rem = divmod(B, row_chunk)

        def over_row_chunks(fn, init):
            """Apply fn(carry, start, size) over [start, start+size) row tiles."""
            carry = init
            if n_full > 0:
                def body(i, c):
                    return fn(c, pl.multiple_of(i * row_chunk, row_chunk),
                              row_chunk)
                carry = jax.lax.fori_loop(0, n_full, body, carry,
                                          unroll=n_full <= 8)
            if rem > 0:
                carry = fn(carry, n_full * row_chunk, rem)
            return carry

        # Pass 1: per-feature batch mean (linear1 bias cancels exactly).
        def sum_rows(c, start, size):
            return c + jnp.sum(acc_ref[pl.ds(start, size), :], axis=0,
                               keepdims=True)
        mean = over_row_chunks(sum_rows,
                               jnp.zeros((1, HIDDEN), jnp.float32)) / B

        # Pass 2: biased batch variance (two-pass formula, matches torch).
        def sumsq_rows(c, start, size):
            d = acc_ref[pl.ds(start, size), :] - mean
            return c + jnp.sum(d * d, axis=0, keepdims=True)
        var = over_row_chunks(sumsq_rows,
                              jnp.zeros((1, HIDDEN), jnp.float32)) / B

        scale = gamma * jax.lax.rsqrt(var + EPS)
        shift = beta - mean * scale

        # Pass 3: normalize + sigmoid + 512->1 lane reduction + sigmoid,
        # streamed over row chunks and stored directly.
        def normalize_rows(c, start, size):
            h = acc_ref[pl.ds(start, size), :]
            s = jax.nn.sigmoid(h * scale + shift)
            out = jnp.sum(s * w2t, axis=-1, keepdims=True) + b2
            o_ref[pl.ds(start, size), :] = jax.nn.sigmoid(out)
            return c
        over_row_chunks(normalize_rows, 0)


# ---------------------------------------------------------------------------
# Wrapper
# ---------------------------------------------------------------------------
def _w1_block_spec(tk, nk):
    index_map = lambda k: (k, 0)
    if nk > 1:
        try:
            # 3-deep buffering so W1 streaming overlaps the MXU on the
            # multi-step (large-batch) grid.
            return pl.BlockSpec((tk, HIDDEN), index_map,
                                pipeline_mode=pl.Buffered(3))
        except TypeError:  # pragma: no cover - jax without pipeline_mode kwarg
            pass
    return pl.BlockSpec((tk, HIDDEN), index_map)


@functools.partial(jax.jit, static_argnames=("tk", "row_chunk"))
def head_regressor(x, w1_bf16, packed_params, *, tk=None, row_chunk=256):
    """Forward pass of Head_regressor.

    Args:
      x: (B, 3072) float32 activations (B >= 2; training-mode BatchNorm).
      w1_bf16, packed_params: outputs of `prepare_params` (W1 pre-cast to
        bfloat16 once; gamma/beta/W2^T/b2 packed into a (4, 512) f32 block).
      tk: K-tile of the 3072-long reduction. Defaults to a batch-dependent
        choice: single step for small B, 512-wide pipelined tiles for large B
        (keeps the resident set inside v7x's 64 MiB VMEM as well).
      row_chunk: epilogue row tile (multiple of 8) for the multi-step path.
    """
    B, K = x.shape
    assert K == F_IN, f"expected {F_IN} input features, got {K}"
    assert B >= 2, "training-mode BatchNorm1d needs at least 2 samples"
    assert w1_bf16.shape == (F_IN, HIDDEN) and w1_bf16.dtype == jnp.bfloat16
    assert packed_params.shape == (4, HIDDEN)

    if tk is None:
        tk = F_IN if B <= 256 else 512
    assert F_IN % tk == 0
    nk = F_IN // tk

    # Explicit VMEM budget: double-buffered x, 2/3-buffered W1, params, acc,
    # lane-padded output.
    w1_bufs = 3 if nk > 1 else 2
    vmem_bytes = (2 * B * tk * 4
                  + w1_bufs * tk * HIDDEN * 2
                  + 2 * 4 * HIDDEN * 4
                  + (B * HIDDEN * 4 if nk > 1 else 0)
                  + 2 * ((B + 7) // 8 * 8) * 128 * 4)
    vmem_limit = int(min(max(vmem_bytes * 5 // 4, 32 * _MIB), 100 * _MIB))

    cost = pl.CostEstimate(
        flops=2 * B * F_IN * HIDDEN + 2 * B * HIDDEN,
        transcendentals=B * HIDDEN + B + HIDDEN,
        bytes_accessed=(B * F_IN * 4            # x (f32; cast in-kernel)
                        + F_IN * HIDDEN * 2     # W1 (bf16) -- dominant term
                        + 4 * HIDDEN * 4        # packed params
                        + B * 4),               # output
    )

    if nk == 1:
        kernel = _head_single_step_kernel
        scratch = []
    else:
        kernel = functools.partial(_head_multi_step_kernel, row_chunk=row_chunk)
        scratch = [pltpu.VMEM((B, HIDDEN), jnp.float32)]

    return pl.pallas_call(
        kernel,
        out_shape=jax.ShapeDtypeStruct((B, 1), jnp.float32),
        grid_spec=pltpu.PrefetchScalarGridSpec(
            num_scalar_prefetch=0,
            grid=(nk,),
            in_specs=[
                pl.BlockSpec((B, tk), lambda k: (0, k)),       # x (f32)
                _w1_block_spec(tk, nk),                        # W1 (bf16)
                pl.BlockSpec((4, HIDDEN), lambda k: (0, 0)),   # packed params
            ],
            # (B, 1) output is not lane-dense; it is written once, so the
            # masked store is negligible here (revisit if this head is fused).
            out_specs=pl.BlockSpec((B, 1), lambda k: (0, 0)),
            scratch_shapes=scratch,
        ),
        compiler_params=pltpu.CompilerParams(
            dimension_semantics=("arbitrary",),
            vmem_limit_bytes=vmem_limit),
        cost_estimate=cost,
    )(x, w1_bf16, packed_params)


# ---------------------------------------------------------------------------
# Reference / test harness
# ---------------------------------------------------------------------------
def _init_params(key):
    """Deterministic synthetic parameters matching nn.Linear default init."""
    k1, k2, k3, k4 = jax.random.split(key, 4)
    bound1 = 1.0 / jnp.sqrt(F_IN)
    w1 = jax.random.uniform(k1, (F_IN, HIDDEN), jnp.float32, -bound1, bound1)
    b1 = jax.random.uniform(k2, (HIDDEN,), jnp.float32, -bound1, bound1)
    bound2 = 1.0 / jnp.sqrt(HIDDEN)
    w2 = jax.random.uniform(k3, (HIDDEN, 1), jnp.float32, -bound2, bound2)
    b2 = jax.random.uniform(k4, (1,), jnp.float32, -bound2, bound2)
    gamma = jnp.ones((HIDDEN,), jnp.float32)    # BatchNorm1d weight
    beta = jnp.zeros((HIDDEN,), jnp.float32)    # BatchNorm1d bias
    return w1, b1, gamma, beta, w2, b2


def _reference(x, w1, b1, gamma, beta, w2, b2):
    """Faithful module forward (training-mode BN, bias included).  The first
    matmul uses the same bf16-cast operands with f32 accumulation as the
    kernel's streaming matmul so the comparison is apples-to-apples; the
    original f32 PyTorch module differs only by that bf16 rounding."""
    h = jnp.dot(x.astype(jnp.bfloat16), w1.astype(jnp.bfloat16),
                preferred_element_type=jnp.float32) + b1
    mean = jnp.mean(h, axis=0, keepdims=True)
    var = jnp.mean((h - mean) ** 2, axis=0, keepdims=True)
    s = jax.nn.sigmoid((h - mean) * jax.lax.rsqrt(var + EPS) * gamma + beta)
    return jax.nn.sigmoid(s @ w2 + b2)


if __name__ == "__main__":
    key = jax.random.PRNGKey(0)
    kx, kx2, kp = jax.random.split(key, 3)

    params = _init_params(kp)
    w1_bf16, packed = prepare_params(*params)   # one-time, outside hot path

    # 1) Small batch -> single-K-step path (no accumulator round trip).
    x_small = jax.random.normal(kx, (2, F_IN), jnp.float32)
    out_small = jax.block_until_ready(head_regressor(x_small, w1_bf16, packed))
    ref_small = _reference(x_small, *params)
    assert out_small.shape == (2, 1)
    assert jnp.allclose(out_small, ref_small, atol=1e-4, rtol=1e-4)

    # 2) Forced multi-K-step path: accumulator + 3-deep W1 buffering +
    #    row-chunked epilogue (full chunks via fori_loop + partial remainder).
    x_multi = jax.random.normal(kx2, (20, F_IN), jnp.float32)
    out_multi = jax.block_until_ready(
        head_regressor(x_multi, w1_bf16, packed, tk=512, row_chunk=8))
    ref_multi = _reference(x_multi, *params)
    assert out_multi.shape == (20, 1)
    assert jnp.allclose(out_multi, ref_multi, atol=1e-4, rtol=1e-4)

    print("KERNEL_OK")
</pallas_src>

<mosaic_0001>
module attributes {stable_mosaic.version = 11 : i64} {
  func.func @_head_single_step_kernel(%arg0: i32, %arg1: memref<2x3072xf32, #tpu.memory_space<vmem>>, %arg2: memref<3072x512xbf16, #tpu.memory_space<vmem>>, %arg3: memref<4x512xf32, #tpu.memory_space<vmem>>, %arg4: memref<2x1xf32, #tpu.memory_space<vmem>>) attributes {dimension_semantics = [#tpu.dimension_semantics<arbitrary>], iteration_bounds = array<i64: 1>, scalar_prefetch = 0 : i64, scratch_operands = 0 : i64, tpu.core_type = #tpu.core_type<tc>, window_params = [{transform_indices = @transform_0, window_bounds = array<i64: 2, 3072>}, {transform_indices = @transform_1, window_bounds = array<i64: 3072, 512>}, {pipeline_mode = #tpu.pipeline_mode<synchronous>, transform_indices = @transform_2, window_bounds = array<i64: 4, 512>}, {pipeline_mode = #tpu.pipeline_mode<synchronous>, transform_indices = @transform_3, window_bounds = array<i64: 2, 1>}]} {
    %c0 = arith.constant 0 : index
    %c0_0 = arith.constant 0 : index
    %0 = vector.load %arg3[%c0, %c0_0] : memref<4x512xf32, #tpu.memory_space<vmem>>, vector<1x512xf32>
    %c1 = arith.constant 1 : index
    %c0_1 = arith.constant 0 : index
    %1 = vector.load %arg3[%c1, %c0_1] : memref<4x512xf32, #tpu.memory_space<vmem>>, vector<1x512xf32>
    %c2 = arith.constant 2 : index
    %c0_2 = arith.constant 0 : index
    %2 = vector.load %arg3[%c2, %c0_2] : memref<4x512xf32, #tpu.memory_space<vmem>>, vector<1x512xf32>
    %c3 = arith.constant 3 : index
    %c0_3 = arith.constant 0 : index
    %3 = vector.load %arg3[%c3, %c0_3] : memref<4x512xf32, #tpu.memory_space<vmem>>, vector<1x1xf32>
    %c0_4 = arith.constant 0 : index
    %c0_5 = arith.constant 0 : index
    %4 = vector.load %arg1[%c0_4, %c0_5] : memref<2x3072xf32, #tpu.memory_space<vmem>>, vector<2x3072xf32>
    %5 = arith.truncf %4 : vector<2x3072xf32> to vector<2x3072xbf16>
    %c0_6 = arith.constant 0 : index
    %c0_7 = arith.constant 0 : index
    %6 = vector.load %arg2[%c0_6, %c0_7] : memref<3072x512xbf16, #tpu.memory_space<vmem>>, vector<3072x512xbf16>
    %cst = arith.constant dense<0.000000e+00> : vector<2x512xf32>
    %7 = tpu.matmul %5, %6, %cst {dimension_numbers = #tpu.dot_dimension_numbers<[1], [0], [0], [1], [0, 0, 1, 1], [], []>} : vector<2x3072xbf16>, vector<3072x512xbf16>, vector<2x512xf32> -> vector<2x512xf32>
    %cst_8 = arith.constant dense<0.000000e+00> : vector<512xf32>
    %8 = vector.multi_reduction <add>, %7, %cst_8 [0] : vector<2x512xf32> to vector<512xf32>
    %9 = vector.shape_cast %8 : vector<512xf32> to vector<1x512xf32>
    %cst_9 = arith.constant 2.000000e+00 : f32
    %10 = vector.broadcast %cst_9 : f32 to vector<1x512xf32>
    %11 = arith.divf %9, %10 : vector<1x512xf32>
    %12 = vector.broadcast %11 : vector<1x512xf32> to vector<2x512xf32>
    %13 = arith.subf %7, %12 : vector<2x512xf32>
    %14 = arith.mulf %13, %13 : vector<2x512xf32>
    %cst_10 = arith.constant dense<0.000000e+00> : vector<512xf32>
    %15 = vector.multi_reduction <add>, %14, %cst_10 [0] : vector<2x512xf32> to vector<512xf32>
    %16 = vector.shape_cast %15 : vector<512xf32> to vector<1x512xf32>
    %cst_11 = arith.constant 2.000000e+00 : f32
    %17 = vector.broadcast %cst_11 : f32 to vector<1x512xf32>
    %18 = arith.divf %16, %17 : vector<1x512xf32>
    %19 = vector.broadcast %11 : vector<1x512xf32> to vector<2x512xf32>
    %20 = arith.subf %7, %19 : vector<2x512xf32>
    %cst_12 = arith.constant 9.99999974E-6 : f32
    %21 = vector.broadcast %cst_12 : f32 to vector<1x512xf32>
    %22 = arith.addf %18, %21 : vector<1x512xf32>
    %23 = math.rsqrt %22 : vector<1x512xf32>
    %24 = vector.broadcast %23 : vector<1x512xf32> to vector<2x512xf32>
    %25 = arith.mulf %20, %24 : vector<2x512xf32>
    %26 = vector.broadcast %0 : vector<1x512xf32> to vector<2x512xf32>
    %27 = arith.mulf %25, %26 : vector<2x512xf32>
    %28 = vector.broadcast %1 : vector<1x512xf32> to vector<2x512xf32>
    %29 = arith.addf %27, %28 : vector<2x512xf32>
    %30 = arith.negf %29 : vector<2x512xf32>
    %31 = math.exp %30 : vector<2x512xf32>
    %cst_13 = arith.constant 1.000000e+00 : f32
    %32 = vector.broadcast %cst_13 : f32 to vector<2x512xf32>
    %33 = arith.addf %32, %31 : vector<2x512xf32>
    %34 = arith.divf %32, %33 : vector<2x512xf32>
    %35 = vector.broadcast %2 : vector<1x512xf32> to vector<2x512xf32>
    %36 = arith.mulf %34, %35 : vector<2x512xf32>
    %cst_14 = arith.constant dense<0.000000e+00> : vector<2xf32>
    %37 = vector.multi_reduction <add>, %36, %cst_14 [1] : vector<2x512xf32> to vector<2xf32>
    %38 = vector.shape_cast %37 : vector<2xf32> to vector<2x1xf32>
    %39 = vector.broadcast %3 : vector<1x1xf32> to vector<2x1xf32>
    %40 = arith.addf %38, %39 : vector<2x1xf32>
    %41 = arith.negf %40 : vector<2x1xf32>
    %42 = math.exp %41 : vector<2x1xf32>
    %cst_15 = arith.constant 1.000000e+00 : f32
    %43 = vector.broadcast %cst_15 : f32 to vector<2x1xf32>
    %44 = arith.addf %43, %42 : vector<2x1xf32>
    %45 = arith.divf %43, %44 : vector<2x1xf32>
    %c0_16 = arith.constant 0 : index
    %c0_17 = arith.constant 0 : index
    %46 = vector.load %arg4[%c0_16, %c0_17] : memref<2x1xf32, #tpu.memory_space<vmem>>, vector<2x1xf32>
    tpu.vector_store %arg4[%c0_16, %c0_17], %45 {strides = array<i32>} : memref<2x1xf32, #tpu.memory_space<vmem>>, vector<2x1xf32>,
    return
  }
  func.func @transform_0(%arg0: i32) -> (i32, i32) {
    %c0_i32 = arith.constant 0 : i32
    %c0_i32_0 = arith.constant 0 : i32
    return %c0_i32, %arg0 : i32, i32
  }
  func.func @transform_1(%arg0: i32) -> (i32, i32) {
    %c0_i32 = arith.constant 0 : i32
    %c0_i32_0 = arith.constant 0 : i32
    return %arg0, %c0_i32 : i32, i32
  }
  func.func @transform_2(%arg0: i32) -> (i32, i32) {
    %c0_i32 = arith.constant 0 : i32
    %c0_i32_0 = arith.constant 0 : i32
    %c0_i32_1 = arith.constant 0 : i32
    return %c0_i32, %c0_i32_0 : i32, i32
  }
  func.func @transform_3(%arg0: i32) -> (i32, i32) {
    %c0_i32 = arith.constant 0 : i32
    %c0_i32_0 = arith.constant 0 : i32
    %c0_i32_1 = arith.constant 0 : i32
    return %c0_i32, %c0_i32_0 : i32, i32
  }
}

</mosaic_0001>

<bundles_post_ra>
// kernel: head_regressor.1
= control target key start
LH: loop header
LB: loop body
LE: loop exit
PB: predicated region body
PF: predicated region fallthrough
CT: control target
= control target key end

     0   :  { %8 = vsyncpa [#allocation3], 0  ;;  %s8347_s0 = inlined_call_operand.hbm [shape: f32[2,3072], index: 0, kind: input, shape index: {}]   ;;  %s8348_s1 = inlined_call_operand.hbm [shape: bf16[3072,512], index: 1, kind: input, shape index: {}]   ;;  %s8349_s2 = inlined_call_operand.hbm [shape: f32[4,512], index: 2, kind: input, shape index: {}]   ;;  %s8350_s3 = inlined_call_operand.vmem [shape: f32[2,1], index: 3, kind: output, shape index: {}]  }
   0x1   :  { %9 = vsyncpa [#allocation5], 0  ;;  %s8148_s12 = smov [#allocation4]   ;;  %s8078_s16 = scalar_lea.hbm %s8348_s1, 98304 }
   0x2   :  { %s25_s13 = sshll.u32 %s8148_s12, 4  ;;  %p8079_p0 = scmp.ne.s32.totalorder %s8348_s1, %s8078_s16  ;;  %s26_s13 = int_to_ptr.vmem [resolvable:$true] %s25_s13 }
   0x3   :  { %p8082_p1 = scmp.lt.u32.totalorder %s8078_s16, %s8348_s1 }
   0x5   :  { %p8084_p2 = pnand %p8082_p1, %p8079_p0 }
   0x7   :  { %8087 = shalt.err (!%p8084_p2)
}
   0x8   :  { %s8088_s21 = scalar_lea.vmem %s26_s13, 98304  ;;  %p8093_p4 = scmp.lt.s32.totalorder %s26_s13, %s26_s13 }
   0x9   :  { %p8089_p3 = scmp.ne.s32.totalorder %s26_s13, %s8088_s21  ;;  %p8094_p5 = scmp.lt.s32.totalorder %s8088_s21, %s8088_s21 }
   0xb   :  { %p8095_p6 = por %p8094_p5, %p8093_p4 }
   0xd   :  { %p8096_p7 = pnand %p8095_p6, %p8089_p3 }
   0xf   :  { %8099 = shalt.err (!%p8096_p7)
}
  0x10   :  { %s8149_s22 = smov 256   ;;  %s8150_s23 = smov 16  }
  0x11   :  { %31 = dma.hbm_to_vmem [thread:$0]  %s8348_s1, 98304, %s26_s13, [#allocation5], %s8149_s22, %s8149_s22, %s8150_s23  }
  0x12   :  { %s8151_s26 = smov [#allocation2]   ;;  %s8152_s28 = smov [#allocation6]  }
  0x13   :  { %s16_s27 = sshll.u32 %s8151_s26, 4  ;;  %s38_s29 = sshll.u32 %s8152_s28, 4  ;;  %s17_s27 = int_to_ptr.vmem [resolvable:$true] %s16_s27  ;;  %s39_s29 = int_to_ptr.vmem [resolvable:$true] %s38_s29 }
  0x14   :  { %s8100_s5 = scalar_lea.hbm %s8347_s0, 768 }
  0x15   :  { %p8101_p8 = scmp.ne.s32.totalorder %s8347_s0, %s8100_s5  ;;  %p8104_p9 = scmp.lt.u32.totalorder %s8100_s5, %s8347_s0 }
  0x17   :  { %p8106_p10 = pnand %p8104_p9, %p8101_p8 }
  0x19   :  { %8109 = shalt.err (!%p8106_p10)
}
  0x1a   :  { %s8110_s1 = scalar_lea.vmem %s17_s27, 768  ;;  %p8115_p12 = scmp.lt.s32.totalorder %s17_s27, %s17_s27 }
  0x1b   :  { %p8111_p11 = scmp.ne.s32.totalorder %s17_s27, %s8110_s1  ;;  %p8116_p13 = scmp.lt.s32.totalorder %s8110_s1, %s8110_s1 }
  0x1d   :  { %p8117_p0 = por %p8116_p13, %p8115_p12 }
  0x1f   :  { %p8118_p1 = pnand %p8117_p0, %p8111_p11 }
  0x21   :  { %8121 = shalt.err (!%p8118_p1)
}
  0x22   :  { %19 = dma.hbm_to_vmem [thread:$0]  %s8347_s0, 768, %s17_s27, [#allocation3]  }
  0x23   :  { %s8122_s14 = scalar_lea.hbm %s8349_s2, 256 }
  0x24   :  { %p8123_p2 = scmp.ne.s32.totalorder %s8349_s2, %s8122_s14  ;;  %p8126_p3 = scmp.lt.u32.totalorder %s8122_s14, %s8349_s2 }
  0x26   :  { %p8128_p4 = pnand %p8126_p3, %p8123_p2 }
  0x28   :  { %8131 = shalt.err (!%p8128_p4)
}
  0x29   :  { %s8132_s19 = scalar_lea.vmem %s39_s29, 256  ;;  %p8137_p6 = scmp.lt.s32.totalorder %s39_s29, %s39_s29 }
  0x2a   :  { %p8133_p5 = scmp.ne.s32.totalorder %s39_s29, %s8132_s19  ;;  %p8138_p7 = scmp.lt.s32.totalorder %s8132_s19, %s8132_s19 }
  0x2c   :  { %p8139_p8 = por %p8138_p7, %p8137_p6 }
  0x2e   :  { %p8140_p9 = pnand %p8139_p8, %p8133_p5 }
  0x30   :  { %8143 = shalt.err (!%p8140_p9)
}
  0x31   :  { %41 = dma.hbm_to_vmem [thread:$0]  %s8349_s2, 256, %s39_s29, [#allocation5]  }
  0x32   :  { %8144 = dma.done.wait [#allocation3], 768  }
  0x33   :  { %8145 = vsyncadd [#allocation3], 4294966528 }
  0x34   :  { %8146 = dma.done.wait [#allocation5], 98560  }
  0x35   :  { %8147 = vsyncadd [#allocation5], 4294868736  ;;  %v6892_v0 = vld [vmem:[#allocation4 + $0x4] ss:$16 sps:$4 sm:$0xff]   ;;  %v6894_v1 = vld [vmem:[#allocation4 + $0xc] ss:$16 sps:$4 sm:$0xff]   ;;  %v73_v38 = vlaneseq }
  0x36   :  { %4827 = vmatprep.subr.bf16.mxu0 %v6892_v0  ;;  %v6896_v2 = vld [vmem:[#allocation4] ss:$16 sps:$4 sm:$0xff]   ;;  %v6897_v3 = vld [vmem:[#allocation4 + $0x8] ss:$16 sps:$4 sm:$0xff]   ;;  %5319 = vmatprep.subr.bf16.mxu1 %v6894_v1  ;;  %v6898_v4 = vld [vmem:[#allocation4 + $0x24] ss:$16 sps:$4 sm:$0xff]  }
  0x37   :  { %4828 = vmatpush1.bf16.msra.mxu0 %v6896_v2  ;;  %5320 = vmatpush1.bf16.msra.mxu1 %v6897_v3  ;;  %v6900_v5 = vld [vmem:[#allocation4 + $0x2c] ss:$16 sps:$4 sm:$0xff]   ;;  %v6902_v6 = vld [vmem:[#allocation4 + $0x20] ss:$16 sps:$4 sm:$0xff]   ;;  %v6903_v7 = vld [vmem:[#allocation4 + $0x28] ss:$16 sps:$4 sm:$0xff]  }
  0x38   :  { %4829 = vmatprep.subr.bf16.mxu0 %v6898_v4  ;;  %5321 = vmatprep.subr.bf16.mxu1 %v6900_v5  ;;  %v6904_v8 = vld [vmem:[#allocation4 + $0x44] ss:$16 sps:$4 sm:$0xff]   ;;  %v6906_v9 = vld [vmem:[#allocation4 + $0x4c] ss:$16 sps:$4 sm:$0xff]   ;;  %v6908_v10 = vld [vmem:[#allocation4 + $0x40] ss:$16 sps:$4 sm:$0xff]  }
  0x39   :  { %v6909_v11 = vld [vmem:[#allocation4 + $0x48] ss:$16 sps:$4 sm:$0xff]   ;;  %v6910_v12 = vld [vmem:[#allocation4 + $0x64] ss:$16 sps:$4 sm:$0xff]   ;;  %v6912_v13 = vld [vmem:[#allocation4 + $0x6c] ss:$16 sps:$4 sm:$0xff]  }
  0x3a   :  { %v6914_v14 = vld [vmem:[#allocation4 + $0x60] ss:$16 sps:$4 sm:$0xff]   ;;  %v6915_v15 = vld [vmem:[#allocation4 + $0x68] ss:$16 sps:$4 sm:$0xff]   ;;  %v6916_v16 = vld [vmem:[#allocation4 + $0x84] ss:$16 sps:$4 sm:$0xff]  }
  0x3b   :  { %4830 = vmatpush1.bf16.msra.mxu0 %v6902_v6  ;;  %5322 = vmatpush1.bf16.msra.mxu1 %v6903_v7  ;;  %v6918_v17 = vld [vmem:[#allocation4 + $0x8c] ss:$16 sps:$4 sm:$0xff]   ;;  %v6920_v18 = vld [vmem:[#allocation4 + $0x80] ss:$16 sps:$4 sm:$0xff]   ;;  %v6921_v19 = vld [vmem:[#allocation4 + $0x88] ss:$16 sps:$4 sm:$0xff]  }
  0x3c   :  { %4831 = vmatprep.subr.bf16.mxu0 %v6904_v8  ;;  %5323 = vmatprep.subr.bf16.mxu1 %v6906_v9  ;;  %v6922_v20 = vld [vmem:[#allocation4 + $0xa4] ss:$16 sps:$4 sm:$0xff]   ;;  %v6924_v21 = vld [vmem:[#allocation4 + $0xac] ss:$16 sps:$4 sm:$0xff]   ;;  %v6926_v22 = vld [vmem:[#allocation4 + $0xa0] ss:$16 sps:$4 sm:$0xff]  }
  0x3d   :  { %v6927_v23 = vld [vmem:[#allocation4 + $0xa8] ss:$16 sps:$4 sm:$0xff]   ;;  %v6928_v24 = vld [vmem:[#allocation4 + $0xc4] ss:$16 sps:$4 sm:$0xff]   ;;  %v6930_v25 = vld [vmem:[#allocation4 + $0xcc] ss:$16 sps:$4 sm:$0xff]  }
  0x3e   :  { %v6932_v26 = vld [vmem:[#allocation4 + $0xc0] ss:$16 sps:$4 sm:$0xff]   ;;  %v6933_v27 = vld [vmem:[#allocation4 + $0xc8] ss:$16 sps:$4 sm:$0xff]   ;;  %v6934_v28 = vld [vmem:[#allocation4 + $0xe4] ss:$16 sps:$4 sm:$0xff]  }
  0x3f   :  { %4832 = vmatpush1.bf16.msra.mxu0 %v6908_v10  ;;  %5324 = vmatpush1.bf16.msra.mxu1 %v6909_v11  ;;  %v6936_v29 = vld [vmem:[#allocation4 + $0xec] ss:$16 sps:$4 sm:$0xff]   ;;  %v6938_v30 = vld [vmem:[#allocation4 + $0xe0] ss:$16 sps:$4 sm:$0xff]   ;;  %v6939_v31 = vld [vmem:[#allocation4 + $0xe8] ss:$16 sps:$4 sm:$0xff]  }
  0x40   :  { %4833 = vmatprep.subr.bf16.mxu0 %v6910_v12  ;;  %5325 = vmatprep.subr.bf16.mxu1 %v6912_v13  ;;  %v6940_v32 = vld [vmem:[#allocation4 + $0x104] ss:$16 sps:$4 sm:$0xff]   ;;  %v6942_v33 = vld [vmem:[#allocation4 + $0x10c] ss:$16 sps:$4 sm:$0xff]   ;;  %v6944_v34 = vld [vmem:[#allocation4 + $0x100] ss:$16 sps:$4 sm:$0xff]  }
  0x41   :  { %v6945_v35 = vld [vmem:[#allocation4 + $0x108] ss:$16 sps:$4 sm:$0xff]   ;;  %v8153_v36 = vmov 1983009808   ;;  %v6946_v39 = vld [vmem:[#allocation4 + $0x124] ss:$16 sps:$4 sm:$0xff]  }
  0x42   :  { %v71_v37 = vunpack.c.l.s4 %v8153_v36  ;;  %v6948_v40 = vld [vmem:[#allocation4 + $0x12c] ss:$16 sps:$4 sm:$0xff]   ;;  %v6950_v41 = vld [vmem:[#allocation4 + $0x120] ss:$16 sps:$4 sm:$0xff]   ;;  %v8210_v43 = vshrl.u32 %v73_v38, 7  ;;  %vm5811_vm0 = vcmask 1041408  }
  0x43   :  { %4834 = vmatpush1.bf16.msra.mxu0 %v6914_v14  ;;  %5326 = vmatpush1.bf16.msra.mxu1 %v6915_v15  ;;  %v6951_v44 = vld [vmem:[#allocation4 + $0x128] ss:$16 sps:$4 sm:$0xff]   ;;  %v6952_v45 = vld [vmem:[#allocation4 + $0x144] ss:$16 sps:$4 sm:$0xff]   ;;  %v6954_v46 = vld [vmem:[#allocation4 + $0x14c] ss:$16 sps:$4 sm:$0xff]  }
  0x44   :  { %4835 = vmatprep.subr.bf16.mxu0 %v6916_v16  ;;  %5327 = vmatprep.subr.bf16.mxu1 %v6918_v17  ;;  %v72_v42 = vunpack.c.0.s8 %v71_v37  ;;  %v6956_v47 = vld [vmem:[#allocation4 + $0x140] ss:$16 sps:$4 sm:$0xff]   ;;  %v6957_v48 = vld [vmem:[#allocation4 + $0x148] ss:$16 sps:$4 sm:$0xff]   ;;  %v6958_v50 = vld [vmem:[#allocation4 + $0x164] ss:$16 sps:$4 sm:$0xff]  }
  0x45   :  { %v6960_v51 = vld [vmem:[#allocation4 + $0x16c] ss:$16 sps:$4 sm:$0xff]   ;;  %v57_v52 = vld [vmem:[#allocation2] sm:$0xff]  ;;  %v6963_v55 = vld [vmem:[#allocation4 + $0x168] ss:$16 sps:$4 sm:$0xff]   ;;  %vm6016_vm1 = vcmask 1024  }
  0x46   :  { %v8213_v49 = vsub.s32 %v72_v42, %v8210_v43  ;;  %v6962_v53 = vld [vmem:[#allocation4 + $0x160] ss:$16 sps:$4 sm:$0xff]   ;;  %v6964_v56 = vld [vmem:[#allocation4 + $0x184] ss:$16 sps:$4 sm:$0xff]   ;;  %v6966_v57 = vld [vmem:[#allocation4 + $0x18c] ss:$16 sps:$4 sm:$0xff]   ;;  %v69_v4 = vcombine.high %v57_v52, %v57_v52 }
  0x47   :  { %4836 = vmatpush1.bf16.msra.mxu0 %v6920_v18  ;;  %5328 = vmatpush1.bf16.msra.mxu1 %v6921_v19  ;;  %v6968_v59 = vld [vmem:[#allocation4 + $0x180] ss:$16 sps:$4 sm:$0xff]   ;;  %v6969_v61 = vld [vmem:[#allocation4 + $0x188] ss:$16 sps:$4 sm:$0xff]   ;;  %v6970_v62 = vld [vmem:[#allocation4 + $0x1a4] ss:$16 sps:$4 sm:$0xff]  }
  0x48   :  { %4837 = vmatprep.subr.bf16.mxu0 %v6922_v20  ;;  %5329 = vmatprep.subr.bf16.mxu1 %v6924_v21  ;;  %v76_v54 = vrot.slane %v57_v52, %v8213_v49  ;;  %v6972_v63 = vld [vmem:[#allocation4 + $0x1ac] ss:$16 sps:$4 sm:$0xff]   ;;  %v6974_v0 = vld [vmem:[#allocation4 + $0x1a0] ss:$16 sps:$4 sm:$0xff]   ;;  %v6975_v1 = vld [vmem:[#allocation4 + $0x1a8] ss:$16 sps:$4 sm:$0xff]   ;;  %v8217_v9 = vrot.slane %v69_v4, %v8213_v49 }
  0x49   :  { %v6976_v2 = vld [vmem:[#allocation4 + $0x1c4] ss:$16 sps:$4 sm:$0xff]   ;;  %v6978_v3 = vld [vmem:[#allocation4 + $0x1cc] ss:$16 sps:$4 sm:$0xff]   ;;  %v6980_v5 = vld [vmem:[#allocation4 + $0x1c0] ss:$16 sps:$4 sm:$0xff]  }
  0x4a   :  { %v84_v58 = vcombine.high %v76_v54, %v76_v54  ;;  %v6981_v6 = vld [vmem:[#allocation4 + $0x1c8] ss:$16 sps:$4 sm:$0xff]   ;;  %v6982_v7 = vld [vmem:[#allocation4 + $0x1e4] ss:$16 sps:$4 sm:$0xff]   ;;  %v6984_v8 = vld [vmem:[#allocation4 + $0x1ec] ss:$16 sps:$4 sm:$0xff]   ;;  %v85_v14 = vcombine.high %v8217_v9, %v8217_v9  ;;  %v195_v16 = vpack.c.bf16 %v76_v54, %v76_v54 }
  0x4b   :  { %4838 = vmatpush1.bf16.msra.mxu0 %v6926_v22  ;;  %5330 = vmatpush1.bf16.msra.mxu1 %v6927_v23  ;;  %v6986_v10 = vld [vmem:[#allocation4 + $0x1e0] ss:$16 sps:$4 sm:$0xff]   ;;  %v6987_v11 = vld [vmem:[#allocation4 + $0x1e8] ss:$16 sps:$4 sm:$0xff]   ;;  %v6991_v12 = vld [vmem:[#allocation4 + $0x204] ss:$16 sps:$4 sm:$0xff]  }
  0x4c   :  { %4839 = vmatprep.subr.bf16.mxu0 %v6928_v24  ;;  %5331 = vmatprep.subr.bf16.mxu1 %v6930_v25  ;;  %v196_v60 = vpack.c.bf16 %v84_v58, %v84_v58  ;;  %v6994_v13 = vld [vmem:[#allocation4 + $0x20c] ss:$16 sps:$4 sm:$0xff]   ;;  %v6989_v15 = vld [vmem:[#allocation4 + $0x200] ss:$16 sps:$4 sm:$0xff]   ;;  %v6992_v17 = vld [vmem:[#allocation4 + $0x208] ss:$16 sps:$4 sm:$0xff]   ;;  %v198_v20 = vpack.c.bf16 %v85_v14, %v85_v14 }
  0x4d   :  { %v6997_v18 = vld [vmem:[#allocation4 + $0x224] ss:$16 sps:$4 sm:$0xff]   ;;  %v7000_v19 = vld [vmem:[#allocation4 + $0x22c] ss:$16 sps:$4 sm:$0xff]   ;;  %v6995_v21 = vld [vmem:[#allocation4 + $0x220] ss:$16 sps:$4 sm:$0xff]  }
  0x4e   :  { %4859 = vmatprep.mubr.bf16.mxu0 %v196_v60  ;;  %5351 = vmatprep.mubr.bf16.mxu1 %v196_v60  ;;  %v6998_v22 = vld [vmem:[#allocation4 + $0x228] ss:$16 sps:$4 sm:$0xff]   ;;  %v7003_v23 = vld [vmem:[#allocation4 + $0x244] ss:$16 sps:$4 sm:$0xff]   ;;  %v7006_v24 = vld [vmem:[#allocation4 + $0x24c] ss:$16 sps:$4 sm:$0xff]  }
  0x4f   :  { %4840 = vmatpush1.bf16.msra.mxu0 %v6932_v26  ;;  %5332 = vmatpush1.bf16.msra.mxu1 %v6933_v27  ;;  %v7001_v25 = vld [vmem:[#allocation4 + $0x240] ss:$16 sps:$4 sm:$0xff]   ;;  %v7004_v26 = vld [vmem:[#allocation4 + $0x248] ss:$16 sps:$4 sm:$0xff]   ;;  %v7009_v27 = vld [vmem:[#allocation4 + $0x264] ss:$16 sps:$4 sm:$0xff]  }
  0x50   :  { %4841 = vmatprep.subr.bf16.mxu0 %v6934_v28  ;;  %5333 = vmatprep.subr.bf16.mxu1 %v6936_v29  ;;  %v7012_v28 = vld [vmem:[#allocation4 + $0x26c] ss:$16 sps:$4 sm:$0xff]   ;;  %v7007_v29 = vld [vmem:[#allocation4 + $0x260] ss:$16 sps:$4 sm:$0xff]   ;;  %v7022_v38 = vld [vmem:[#allocation4 + $0x2a8] ss:$16 sps:$4 sm:$0xff]  }
  0x51   :  { %v7024_v36 = vld [vmem:[#allocation4 + $0x2ac] ss:$16 sps:$4 sm:$0xff]   ;;  %v7019_v37 = vld [vmem:[#allocation4 + $0x2a0] ss:$16 sps:$4 sm:$0xff]   ;;  %v7028_v42 = vld [vmem:[#allocation4 + $0x2c8] ss:$16 sps:$4 sm:$0xff]  }
  0x52   :  { %v7040_v52 = vld [vmem:[#allocation4 + $0x308] ss:$16 sps:$4 sm:$0xff]   ;;  %v7048_v54 = vld [vmem:[#allocation4 + $0x32c] ss:$16 sps:$4 sm:$0xff]   ;;  %v7081_v14 = vld [vmem:[#allocation4 + $0x3e4] ss:$16 sps:$4 sm:$0xff]  }
  0x53   :  { %4842 = vmatpush1.bf16.msra.mxu0 %v6938_v30  ;;  %5334 = vmatpush1.bf16.msra.mxu1 %v6939_v31  ;;  %v7010_v30 = vld [vmem:[#allocation4 + $0x268] ss:$16 sps:$4 sm:$0xff]   ;;  %v7015_v31 = vld [vmem:[#allocation4 + $0x284] ss:$16 sps:$4 sm:$0xff]   ;;  %v7054_v58 = vld [vmem:[#allocation4 + $0x34c] ss:$16 sps:$4 sm:$0xff]  }
  0x54   :  { %4843 = vmatprep.subr.bf16.mxu0 %v6940_v32  ;;  %5335 = vmatprep.subr.bf16.mxu1 %v6942_v33  ;;  %v7018_v32 = vld [vmem:[#allocation4 + $0x28c] ss:$16 sps:$4 sm:$0xff]   ;;  %v7013_v33 = vld [vmem:[#allocation4 + $0x280] ss:$16 sps:$4 sm:$0xff]   ;;  %v7052_v60 = vld [vmem:[#allocation4 + $0x348] ss:$16 sps:$4 sm:$0xff]  }
  0x55   :  { %v7064_v4 = vld [vmem:[#allocation4 + $0x388] ss:$16 sps:$4 sm:$0xff]  }
  0x57   :  { %4844 = vmatpush1.bf16.msra.mxu0 %v6944_v34  ;;  %5336 = vmatpush1.bf16.msra.mxu1 %v6945_v35  ;;  %v7016_v34 = vld [vmem:[#allocation4 + $0x288] ss:$16 sps:$4 sm:$0xff]   ;;  %v7021_v35 = vld [vmem:[#allocation4 + $0x2a4] ss:$16 sps:$4 sm:$0xff]  }
  0x58   :  { %4845 = vmatprep.subr.bf16.mxu0 %v6946_v39  ;;  %5337 = vmatprep.subr.bf16.mxu1 %v6948_v40  ;;  %v7027_v39 = vld [vmem:[#allocation4 + $0x2c4] ss:$16 sps:$4 sm:$0xff]   ;;  %v7030_v40 = vld [vmem:[#allocation4 + $0x2cc] ss:$16 sps:$4 sm:$0xff]  }
  0x5b   :  { %4846 = vmatpush1.bf16.msra.mxu0 %v6950_v41  ;;  %5338 = vmatpush1.bf16.msra.mxu1 %v6951_v44  ;;  %v7025_v41 = vld [vmem:[#allocation4 + $0x2c0] ss:$16 sps:$4 sm:$0xff]   ;;  %v7033_v44 = vld [vmem:[#allocation4 + $0x2e4] ss:$16 sps:$4 sm:$0xff]  }
  0x5c   :  { %4847 = vmatprep.subr.bf16.mxu0 %v6952_v45  ;;  %5339 = vmatprep.subr.bf16.mxu1 %v6954_v46  ;;  %v7036_v45 = vld [vmem:[#allocation4 + $0x2ec] ss:$16 sps:$4 sm:$0xff]   ;;  %v7031_v46 = vld [vmem:[#allocation4 + $0x2e0] ss:$16 sps:$4 sm:$0xff]  }
  0x5f   :  { %4848 = vmatpush1.bf16.msra.mxu0 %v6956_v47  ;;  %5340 = vmatpush1.bf16.msra.mxu1 %v6957_v48  ;;  %v7034_v47 = vld [vmem:[#allocation4 + $0x2e8] ss:$16 sps:$4 sm:$0xff]   ;;  %v7039_v48 = vld [vmem:[#allocation4 + $0x304] ss:$16 sps:$4 sm:$0xff]  }
  0x60   :  { %4849 = vmatprep.subr.bf16.mxu0 %v6958_v50  ;;  %5341 = vmatprep.subr.bf16.mxu1 %v6960_v51  ;;  %v7042_v50 = vld [vmem:[#allocation4 + $0x30c] ss:$16 sps:$4 sm:$0xff]   ;;  %v7037_v51 = vld [vmem:[#allocation4 + $0x300] ss:$16 sps:$4 sm:$0xff]  }
  0x63   :  { %4850 = vmatpush1.bf16.msra.mxu0 %v6962_v53  ;;  %5342 = vmatpush1.bf16.msra.mxu1 %v6963_v55  ;;  %v7045_v53 = vld [vmem:[#allocation4 + $0x324] ss:$16 sps:$4 sm:$0xff]   ;;  %v7043_v55 = vld [vmem:[#allocation4 + $0x320] ss:$16 sps:$4 sm:$0xff]  }
  0x64   :  { %4851 = vmatprep.subr.bf16.mxu0 %v6964_v56  ;;  %5343 = vmatprep.subr.bf16.mxu1 %v6966_v57  ;;  %v7046_v56 = vld [vmem:[#allocation4 + $0x328] ss:$16 sps:$4 sm:$0xff]   ;;  %v7051_v57 = vld [vmem:[#allocation4 + $0x344] ss:$16 sps:$4 sm:$0xff]  }
  0x67   :  { %4852 = vmatpush1.bf16.msra.mxu0 %v6968_v59  ;;  %5344 = vmatpush1.bf16.msra.mxu1 %v6969_v61  ;;  %v7049_v59 = vld [vmem:[#allocation4 + $0x340] ss:$16 sps:$4 sm:$0xff]   ;;  %v7057_v61 = vld [vmem:[#allocation4 + $0x364] ss:$16 sps:$4 sm:$0xff]  }
  0x68   :  { %4853 = vmatprep.subr.bf16.mxu0 %v6970_v62  ;;  %5345 = vmatprep.subr.bf16.mxu1 %v6972_v63  ;;  %v7060_v62 = vld [vmem:[#allocation4 + $0x36c] ss:$16 sps:$4 sm:$0xff]   ;;  %v7055_v63 = vld [vmem:[#allocation4 + $0x360] ss:$16 sps:$4 sm:$0xff]  }
  0x6b   :  { %4854 = vmatpush1.bf16.msra.mxu0 %v6974_v0  ;;  %5346 = vmatpush1.bf16.msra.mxu1 %v6975_v1  ;;  %v7058_v0 = vld [vmem:[#allocation4 + $0x368] ss:$16 sps:$4 sm:$0xff]   ;;  %v7063_v1 = vld [vmem:[#allocation4 + $0x384] ss:$16 sps:$4 sm:$0xff]  }
  0x6c   :  { %4855 = vmatprep.subr.bf16.mxu0 %v6976_v2  ;;  %5347 = vmatprep.subr.bf16.mxu1 %v6978_v3  ;;  %v7066_v2 = vld [vmem:[#allocation4 + $0x38c] ss:$16 sps:$4 sm:$0xff]   ;;  %v7061_v3 = vld [vmem:[#allocation4 + $0x380] ss:$16 sps:$4 sm:$0xff]  }
  0x6f   :  { %4856 = vmatpush1.bf16.msra.mxu0 %v6980_v5  ;;  %5348 = vmatpush1.bf16.msra.mxu1 %v6981_v6  ;;  %v7069_v5 = vld [vmem:[#allocation4 + $0x3a4] ss:$16 sps:$4 sm:$0xff]   ;;  %v7072_v6 = vld [vmem:[#allocation4 + $0x3ac] ss:$16 sps:$4 sm:$0xff]  }
  0x70   :  { %4857 = vmatprep.subr.bf16.mxu0 %v6982_v7  ;;  %5349 = vmatprep.subr.bf16.mxu1 %v6984_v8  ;;  %v7067_v7 = vld [vmem:[#allocation4 + $0x3a0] ss:$16 sps:$4 sm:$0xff]   ;;  %v7070_v8 = vld [vmem:[#allocation4 + $0x3a8] ss:$16 sps:$4 sm:$0xff]  }
  0x73   :  { %4858 = vmatpush1.bf16.msra.mxu0 %v6986_v10  ;;  %5350 = vmatpush1.bf16.msra.mxu1 %v6987_v11  ;;  %v7075_v10 = vld [vmem:[#allocation4 + $0x3c4] ss:$16 sps:$4 sm:$0xff]   ;;  %v7078_v11 = vld [vmem:[#allocation4 + $0x3cc] ss:$16 sps:$4 sm:$0xff]  }
  0x74   :  { %4868 = vmatprep.subr.bf16.mxu0 %v6991_v12  ;;  %5360 = vmatprep.subr.bf16.mxu1 %v6994_v13  ;;  %v7073_v12 = vld [vmem:[#allocation4 + $0x3c0] ss:$16 sps:$4 sm:$0xff]   ;;  %v7076_v13 = vld [vmem:[#allocation4 + $0x3c8] ss:$16 sps:$4 sm:$0xff]  }
  0x76   :  { %4860 = vmatmul.mubr.bf16.vlgmr.msra.gmra.mrb[0].mxu0 %v195_v16  ;;  %5352 = vmatmul.mubr.bf16.vlgmr.msra.gmra.mrb[0].mxu1 %v195_v16  ;;  %v7079_v16 = vld [vmem:[#allocation4 + $0x3e0] ss:$16 sps:$4 sm:$0xff]  }
  0x77   :  { %4869 = vmatpush1.bf16.msra.mxu0 %v6989_v15  ;;  %5361 = vmatpush1.bf16.msra.mxu1 %v6992_v17  ;;  %v7084_v15 = vld [vmem:[#allocation4 + $0x3ec] ss:$16 sps:$4 sm:$0xff]   ;;  %v7082_v17 = vld [vmem:[#allocation4 + $0x3e8] ss:$16 sps:$4 sm:$0xff]  }
  0x78   :  { %4870 = vmatprep.subr.bf16.mxu0 %v6997_v18  ;;  %5362 = vmatprep.subr.bf16.mxu1 %v7000_v19  ;;  %v7087_v18 = vld [vmem:[#allocation4 + $0x404] ss:$16 sps:$4 sm:$0xff]   ;;  %v7090_v19 = vld [vmem:[#allocation4 + $0x40c] ss:$16 sps:$4 sm:$0xff]  }
  0x79   :  { %4900 = vmatprep.mubr.bf16.mxu0 %v198_v20  ;;  %5392 = vmatprep.mubr.bf16.mxu1 %v198_v20  ;;  %v7085_v20 = vld [vmem:[#allocation4 + $0x400] ss:$16 sps:$4 sm:$0xff]  }
  0x7b   :  { %4871 = vmatpush1.bf16.msra.mxu0 %v6995_v21  ;;  %5363 = vmatpush1.bf16.msra.mxu1 %v6998_v22  ;;  %v197_v21 = vpack.c.bf16 %v8217_v9, %v8217_v9  ;;  %v7088_v22 = vld [vmem:[#allocation4 + $0x408] ss:$16 sps:$4 sm:$0xff]   ;;  %v7091_v9 = vld [vmem:[#allocation4 + $0x420] ss:$16 sps:$4 sm:$0xff]  }
  0x7c   :  { %4872 = vmatprep.subr.bf16.mxu0 %v7003_v23  ;;  %5364 = vmatprep.subr.bf16.mxu1 %v7006_v24  ;;  %v8223_v23 = vld [vmem:[#allocation2 + $0x8] sm:$0xff]  ;;  %v7093_v24 = vld [vmem:[#allocation4 + $0x424] ss:$16 sps:$4 sm:$0xff]  }
  0x7f   :  { %4873 = vmatpush1.bf16.msra.mxu0 %v7001_v25  ;;  %5365 = vmatpush1.bf16.msra.mxu1 %v7004_v26  ;;  %v7096_v25 = vld [vmem:[#allocation4 + $0x42c] ss:$16 sps:$4 sm:$0xff]   ;;  %v8227_v26 = vrot.slane %v8223_v23, %v8213_v49 }
  0x80   :  { %4874 = vmatprep.subr.bf16.mxu0 %v7009_v27  ;;  %5366 = vmatprep.subr.bf16.mxu1 %v7012_v28  ;;  %v7094_v28 = vld [vmem:[#allocation4 + $0x428] ss:$16 sps:$4 sm:$0xff]  }
  0x81   :  { %v101_v27 = vcombine.high %v8227_v26, %v8227_v26 }
  0x83   :  { %4875 = vmatpush1.bf16.msra.mxu0 %v7007_v29  ;;  %5367 = vmatpush1.bf16.msra.mxu1 %v7010_v30  ;;  %v7099_v29 = vld [vmem:[#allocation4 + $0x444] ss:$16 sps:$4 sm:$0xff]   ;;  %v7102_v30 = vld [vmem:[#allocation4 + $0x44c] ss:$16 sps:$4 sm:$0xff]  }
  0x84   :  { %4876 = vmatprep.subr.bf16.mxu0 %v7015_v31  ;;  %5368 = vmatprep.subr.bf16.mxu1 %v7018_v32  ;;  %v200_v31 = vpack.c.bf16 %v101_v27, %v101_v27  ;;  %v7097_v32 = vld [vmem:[#allocation4 + $0x440] ss:$16 sps:$4 sm:$0xff]  }
  0x85   :  { %v7175_v27 = vld [vmem:[#allocation4 + $0x5e0] ss:$16 sps:$4 sm:$0xff]  }
  0x87   :  { %4877 = vmatpush1.bf16.msra.mxu0 %v7013_v33  ;;  %5369 = vmatpush1.bf16.msra.mxu1 %v7016_v34  ;;  %v7100_v33 = vld [vmem:[#allocation4 + $0x448] ss:$16 sps:$4 sm:$0xff]   ;;  %v7105_v34 = vld [vmem:[#allocation4 + $0x464] ss:$16 sps:$4 sm:$0xff]  }
  0x88   :  { %4878 = vmatprep.subr.bf16.mxu0 %v7021_v35  ;;  %5370 = vmatprep.subr.bf16.mxu1 %v7024_v36  ;;  %v7108_v35 = vld [vmem:[#allocation4 + $0x46c] ss:$16 sps:$4 sm:$0xff]   ;;  %v7103_v36 = vld [vmem:[#allocation4 + $0x460] ss:$16 sps:$4 sm:$0xff]  }
  0x8b   :  { %4879 = vmatpush1.bf16.msra.mxu0 %v7019_v37  ;;  %5371 = vmatpush1.bf16.msra.mxu1 %v7022_v38  ;;  %v7106_v37 = vld [vmem:[#allocation4 + $0x468] ss:$16 sps:$4 sm:$0xff]   ;;  %v7111_v38 = vld [vmem:[#allocation4 + $0x484] ss:$16 sps:$4 sm:$0xff]  }
  0x8c   :  { %4880 = vmatprep.subr.bf16.mxu0 %v7027_v39  ;;  %5372 = vmatprep.subr.bf16.mxu1 %v7030_v40  ;;  %v7114_v39 = vld [vmem:[#allocation4 + $0x48c] ss:$16 sps:$4 sm:$0xff]   ;;  %v7109_v40 = vld [vmem:[#allocation4 + $0x480] ss:$16 sps:$4 sm:$0xff]  }
  0x8f   :  { %4881 = vmatpush1.bf16.msra.mxu0 %v7025_v41  ;;  %5373 = vmatpush1.bf16.msra.mxu1 %v7028_v42  ;;  %v7112_v41 = vld [vmem:[#allocation4 + $0x488] ss:$16 sps:$4 sm:$0xff]   ;;  %v7117_v42 = vld [vmem:[#allocation4 + $0x4a4] ss:$16 sps:$4 sm:$0xff]  }
  0x90   :  { %4882 = vmatprep.subr.bf16.mxu0 %v7033_v44  ;;  %5374 = vmatprep.subr.bf16.mxu1 %v7036_v45  ;;  %v7120_v44 = vld [vmem:[#allocation4 + $0x4ac] ss:$16 sps:$4 sm:$0xff]   ;;  %v7115_v45 = vld [vmem:[#allocation4 + $0x4a0] ss:$16 sps:$4 sm:$0xff]  }
  0x93   :  { %4883 = vmatpush1.bf16.msra.mxu0 %v7031_v46  ;;  %5375 = vmatpush1.bf16.msra.mxu1 %v7034_v47  ;;  %v7118_v46 = vld [vmem:[#allocation4 + $0x4a8] ss:$16 sps:$4 sm:$0xff]   ;;  %v7123_v47 = vld [vmem:[#allocation4 + $0x4c4] ss:$16 sps:$4 sm:$0xff]  }
  0x94   :  { %4884 = vmatprep.subr.bf16.mxu0 %v7039_v48  ;;  %5376 = vmatprep.subr.bf16.mxu1 %v7042_v50  ;;  %v7126_v48 = vld [vmem:[#allocation4 + $0x4cc] ss:$16 sps:$4 sm:$0xff]   ;;  %v7121_v50 = vld [vmem:[#allocation4 + $0x4c0] ss:$16 sps:$4 sm:$0xff]  }
  0x97   :  { %4885 = vmatpush1.bf16.msra.mxu0 %v7037_v51  ;;  %5377 = vmatpush1.bf16.msra.mxu1 %v7040_v52  ;;  %v7124_v51 = vld [vmem:[#allocation4 + $0x4c8] ss:$16 sps:$4 sm:$0xff]   ;;  %v7129_v52 = vld [vmem:[#allocation4 + $0x4e4] ss:$16 sps:$4 sm:$0xff]  }
  0x98   :  { %4886 = vmatprep.subr.bf16.mxu0 %v7045_v53  ;;  %5378 = vmatprep.subr.bf16.mxu1 %v7048_v54  ;;  %v7132_v53 = vld [vmem:[#allocation4 + $0x4ec] ss:$16 sps:$4 sm:$0xff]   ;;  %v7127_v54 = vld [vmem:[#allocation4 + $0x4e0] ss:$16 sps:$4 sm:$0xff]  }
  0x9b   :  { %4887 = vmatpush1.bf16.msra.mxu0 %v7043_v55  ;;  %5379 = vmatpush1.bf16.msra.mxu1 %v7046_v56  ;;  %v7130_v55 = vld [vmem:[#allocation4 + $0x4e8] ss:$16 sps:$4 sm:$0xff]   ;;  %v7135_v56 = vld [vmem:[#allocation4 + $0x504] ss:$16 sps:$4 sm:$0xff]  }
  0x9c   :  { %4888 = vmatprep.subr.bf16.mxu0 %v7051_v57  ;;  %5380 = vmatprep.subr.bf16.mxu1 %v7054_v58  ;;  %v7138_v57 = vld [vmem:[#allocation4 + $0x50c] ss:$16 sps:$4 sm:$0xff]   ;;  %v7133_v58 = vld [vmem:[#allocation4 + $0x500] ss:$16 sps:$4 sm:$0xff]  }
  0x9f   :  { %4889 = vmatpush1.bf16.msra.mxu0 %v7049_v59  ;;  %5381 = vmatpush1.bf16.msra.mxu1 %v7052_v60  ;;  %v7136_v59 = vld [vmem:[#allocation4 + $0x508] ss:$16 sps:$4 sm:$0xff]   ;;  %v7141_v60 = vld [vmem:[#allocation4 + $0x524] ss:$16 sps:$4 sm:$0xff]  }
  0xa0   :  { %4890 = vmatprep.subr.bf16.mxu0 %v7057_v61  ;;  %5382 = vmatprep.subr.bf16.mxu1 %v7060_v62  ;;  %v7144_v61 = vld [vmem:[#allocation4 + $0x52c] ss:$16 sps:$4 sm:$0xff]   ;;  %v7139_v62 = vld [vmem:[#allocation4 + $0x520] ss:$16 sps:$4 sm:$0xff]  }
  0xa3   :  { %4891 = vmatpush1.bf16.msra.mxu0 %v7055_v63  ;;  %5383 = vmatpush1.bf16.msra.mxu1 %v7058_v0  ;;  %v7142_v63 = vld [vmem:[#allocation4 + $0x528] ss:$16 sps:$4 sm:$0xff]   ;;  %v7147_v0 = vld [vmem:[#allocation4 + $0x544] ss:$16 sps:$4 sm:$0xff]  }
  0xa4   :  { %4892 = vmatprep.subr.bf16.mxu0 %v7063_v1  ;;  %5384 = vmatprep.subr.bf16.mxu1 %v7066_v2  ;;  %v7150_v1 = vld [vmem:[#allocation4 + $0x54c] ss:$16 sps:$4 sm:$0xff]   ;;  %v7145_v2 = vld [vmem:[#allocation4 + $0x540] ss:$16 sps:$4 sm:$0xff]  }
  0xa7   :  { %4893 = vmatpush1.bf16.msra.mxu0 %v7061_v3  ;;  %5385 = vmatpush1.bf16.msra.mxu1 %v7064_v4  ;;  %v7148_v3 = vld [vmem:[#allocation4 + $0x548] ss:$16 sps:$4 sm:$0xff]   ;;  %v7153_v4 = vld [vmem:[#allocation4 + $0x564] ss:$16 sps:$4 sm:$0xff]  }
  0xa8   :  { %4894 = vmatprep.subr.bf16.mxu0 %v7069_v5  ;;  %5386 = vmatprep.subr.bf16.mxu1 %v7072_v6  ;;  %v7156_v5 = vld [vmem:[#allocation4 + $0x56c] ss:$16 sps:$4 sm:$0xff]   ;;  %v7151_v6 = vld [vmem:[#allocation4 + $0x560] ss:$16 sps:$4 sm:$0xff]  }
  0xab   :  { %4895 = vmatpush1.bf16.msra.mxu0 %v7067_v7  ;;  %5387 = vmatpush1.bf16.msra.mxu1 %v7070_v8  ;;  %v7154_v7 = vld [vmem:[#allocation4 + $0x568] ss:$16 sps:$4 sm:$0xff]   ;;  %v7159_v8 = vld [vmem:[#allocation4 + $0x584] ss:$16 sps:$4 sm:$0xff]  }
  0xac   :  { %4896 = vmatprep.subr.bf16.mxu0 %v7075_v10  ;;  %5388 = vmatprep.subr.bf16.mxu1 %v7078_v11  ;;  %v7162_v10 = vld [vmem:[#allocation4 + $0x58c] ss:$16 sps:$4 sm:$0xff]   ;;  %v7157_v11 = vld [vmem:[#allocation4 + $0x580] ss:$16 sps:$4 sm:$0xff]  }
  0xaf   :  { %4897 = vmatpush1.bf16.msra.mxu0 %v7073_v12  ;;  %5389 = vmatpush1.bf16.msra.mxu1 %v7076_v13  ;;  %v7160_v12 = vld [vmem:[#allocation4 + $0x588] ss:$16 sps:$4 sm:$0xff]   ;;  %v7165_v13 = vld [vmem:[#allocation4 + $0x5a4] ss:$16 sps:$4 sm:$0xff]  }
  0xb0   :  { %4898 = vmatprep.subr.bf16.mxu0 %v7081_v14  ;;  %5390 = vmatprep.subr.bf16.mxu1 %v7084_v15  ;;  %v7168_v14 = vld [vmem:[#allocation4 + $0x5ac] ss:$16 sps:$4 sm:$0xff]   ;;  %v7163_v15 = vld [vmem:[#allocation4 + $0x5a0] ss:$16 sps:$4 sm:$0xff]  }
  0xb3   :  { %4899 = vmatpush1.bf16.msra.mxu0 %v7079_v16  ;;  %5391 = vmatpush1.bf16.msra.mxu1 %v7082_v17  ;;  %v7166_v16 = vld [vmem:[#allocation4 + $0x5a8] ss:$16 sps:$4 sm:$0xff]   ;;  %v7171_v17 = vld [vmem:[#allocation4 + $0x5c4] ss:$16 sps:$4 sm:$0xff]  }
  0xb4   :  { %4909 = vmatprep.subr.bf16.mxu0 %v7087_v18  ;;  %5401 = vmatprep.subr.bf16.mxu1 %v7090_v19  ;;  %v7174_v18 = vld [vmem:[#allocation4 + $0x5cc] ss:$16 sps:$4 sm:$0xff]   ;;  %v86_v19 = vcombine.high %v8223_v23, %v8223_v23 }
  0xb6   :  { %4901 = vmatmul.mubr.bf16.vlgmr.msra.gmra.mrb[0].mxu0 %v197_v21  ;;  %5393 = vmatmul.mubr.bf16.vlgmr.msra.gmra.mrb[0].mxu1 %v197_v21  ;;  %v7172_v21 = vld [vmem:[#allocation4 + $0x5c8] ss:$16 sps:$4 sm:$0xff]  }
  0xb7   :  { %4910 = vmatpush1.bf16.msra.mxu0 %v7085_v20  ;;  %5402 = vmatpush1.bf16.msra.mxu1 %v7088_v22  ;;  %v7169_v20 = vld [vmem:[#allocation4 + $0x5c0] ss:$16 sps:$4 sm:$0xff]   ;;  %v7177_v22 = vld [vmem:[#allocation4 + $0x5e4] ss:$16 sps:$4 sm:$0xff]  }
  0xb8   :  { %4911 = vmatprep.subr.bf16.mxu0 %v7093_v24  ;;  %5403 = vmatprep.subr.bf16.mxu1 %v7096_v25  ;;  %v7180_v24 = vld [vmem:[#allocation4 + $0x5ec] ss:$16 sps:$4 sm:$0xff]   ;;  %v8234_v25 = vrot.slane %v86_v19, %v8213_v49  ;;  %v7256_v19 = vld [vmem:[#allocation4 + $0x788] ss:$16 sps:$4 sm:$0xff]  }
  0xb9   :  { %4941 = vmatprep.mubr.bf16.mxu0 %v200_v31  ;;  %5433 = vmatprep.mubr.bf16.mxu1 %v200_v31  ;;  %v7181_v31 = vld [vmem:[#allocation4 + $0x600] ss:$16 sps:$4 sm:$0xff]  }
  0xba   :  { %v102_v23 = vcombine.high %v8234_v25, %v8234_v25 }
  0xbb   :  { %4912 = vmatpush1.bf16.msra.mxu0 %v7091_v9  ;;  %5404 = vmatpush1.bf16.msra.mxu1 %v7094_v28  ;;  %v7178_v9 = vld [vmem:[#allocation4 + $0x5e8] ss:$16 sps:$4 sm:$0xff]   ;;  %v7183_v28 = vld [vmem:[#allocation4 + $0x604] ss:$16 sps:$4 sm:$0xff]  }
  0xbc   :  { %4913 = vmatprep.subr.bf16.mxu0 %v7099_v29  ;;  %5405 = vmatprep.subr.bf16.mxu1 %v7102_v30  ;;  %v7186_v29 = vld [vmem:[#allocation4 + $0x60c] ss:$16 sps:$4 sm:$0xff]   ;;  %v199_v30 = vpack.c.bf16 %v8227_v26, %v8227_v26  ;;  %v7193_v26 = vld [vmem:[#allocation4 + $0x640] ss:$16 sps:$4 sm:$0xff]  }
  0xbf   :  { %4914 = vmatpush1.bf16.msra.mxu0 %v7097_v32  ;;  %5406 = vmatpush1.bf16.msra.mxu1 %v7100_v33  ;;  %v7184_v32 = vld [vmem:[#allocation4 + $0x608] ss:$16 sps:$4 sm:$0xff]   ;;  %v7189_v33 = vld [vmem:[#allocation4 + $0x624] ss:$16 sps:$4 sm:$0xff]  }
  0xc0   :  { %4915 = vmatprep.subr.bf16.mxu0 %v7105_v34  ;;  %5407 = vmatprep.subr.bf16.mxu1 %v7108_v35  ;;  %v7192_v34 = vld [vmem:[#allocation4 + $0x62c] ss:$16 sps:$4 sm:$0xff]   ;;  %v202_v35 = vpack.c.bf16 %v102_v23, %v102_v23  ;;  %v7268_v23 = vld [vmem:[#allocation4 + $0x7c8] ss:$16 sps:$4 sm:$0xff]  }
  0xc3   :  { %4916 = vmatpush1.bf16.msra.mxu0 %v7103_v36  ;;  %5408 = vmatpush1.bf16.msra.mxu1 %v7106_v37  ;;  %v7187_v36 = vld [vmem:[#allocation4 + $0x620] ss:$16 sps:$4 sm:$0xff]   ;;  %v7190_v37 = vld [vmem:[#allocation4 + $0x628] ss:$16 sps:$4 sm:$0xff]  }
  0xc4   :  { %4917 = vmatprep.subr.bf16.mxu0 %v7111_v38  ;;  %5409 = vmatprep.subr.bf16.mxu1 %v7114_v39  ;;  %v7195_v38 = vld [vmem:[#allocation4 + $0x644] ss:$16 sps:$4 sm:$0xff]   ;;  %v7198_v39 = vld [vmem:[#allocation4 + $0x64c] ss:$16 sps:$4 sm:$0xff]  }
  0xc7   :  { %4918 = vmatpush1.bf16.msra.mxu0 %v7109_v40  ;;  %5410 = vmatpush1.bf16.msra.mxu1 %v7112_v41  ;;  %v7196_v40 = vld [vmem:[#allocation4 + $0x648] ss:$16 sps:$4 sm:$0xff]   ;;  %v7201_v41 = vld [vmem:[#allocation4 + $0x664] ss:$16 sps:$4 sm:$0xff]  }
  0xc8   :  { %4919 = vmatprep.subr.bf16.mxu0 %v7117_v42  ;;  %5411 = vmatprep.subr.bf16.mxu1 %v7120_v44  ;;  %v7204_v42 = vld [vmem:[#allocation4 + $0x66c] ss:$16 sps:$4 sm:$0xff]   ;;  %v7199_v44 = vld [vmem:[#allocation4 + $0x660] ss:$16 sps:$4 sm:$0xff]  }
  0xcb   :  { %4920 = vmatpush1.bf16.msra.mxu0 %v7115_v45  ;;  %5412 = vmatpush1.bf16.msra.mxu1 %v7118_v46  ;;  %v7202_v45 = vld [vmem:[#allocation4 + $0x668] ss:$16 sps:$4 sm:$0xff]   ;;  %v7207_v46 = vld [vmem:[#allocation4 + $0x684] ss:$16 sps:$4 sm:$0xff]  }
  0xcc   :  { %4921 = vmatprep.subr.bf16.mxu0 %v7123_v47  ;;  %5413 = vmatprep.subr.bf16.mxu1 %v7126_v48  ;;  %v7210_v47 = vld [vmem:[#allocation4 + $0x68c] ss:$16 sps:$4 sm:$0xff]   ;;  %v7205_v48 = vld [vmem:[#allocation4 + $0x680] ss:$16 sps:$4 sm:$0xff]  }
  0xcf   :  { %4922 = vmatpush1.bf16.msra.mxu0 %v7121_v50  ;;  %5414 = vmatpush1.bf16.msra.mxu1 %v7124_v51  ;;  %v7208_v50 = vld [vmem:[#allocation4 + $0x688] ss:$16 sps:$4 sm:$0xff]   ;;  %v7213_v51 = vld [vmem:[#allocation4 + $0x6a4] ss:$16 sps:$4 sm:$0xff]  }
  0xd0   :  { %4923 = vmatprep.subr.bf16.mxu0 %v7129_v52  ;;  %5415 = vmatprep.subr.bf16.mxu1 %v7132_v53  ;;  %v7216_v52 = vld [vmem:[#allocation4 + $0x6ac] ss:$16 sps:$4 sm:$0xff]   ;;  %v7211_v53 = vld [vmem:[#allocation4 + $0x6a0] ss:$16 sps:$4 sm:$0xff]  }
  0xd3   :  { %4924 = vmatpush1.bf16.msra.mxu0 %v7127_v54  ;;  %5416 = vmatpush1.bf16.msra.mxu1 %v7130_v55  ;;  %v7214_v54 = vld [vmem:[#allocation4 + $0x6a8] ss:$16 sps:$4 sm:$0xff]   ;;  %v7219_v55 = vld [vmem:[#allocation4 + $0x6c4] ss:$16 sps:$4 sm:$0xff]  }
  0xd4   :  { %4925 = vmatprep.subr.bf16.mxu0 %v7135_v56  ;;  %5417 = vmatprep.subr.bf16.mxu1 %v7138_v57  ;;  %v7222_v56 = vld [vmem:[#allocation4 + $0x6cc] ss:$16 sps:$4 sm:$0xff]   ;;  %v7217_v57 = vld [vmem:[#allocation4 + $0x6c0] ss:$16 sps:$4 sm:$0xff]  }
  0xd7   :  { %4926 = vmatpush1.bf16.msra.mxu0 %v7133_v58  ;;  %5418 = vmatpush1.bf16.msra.mxu1 %v7136_v59  ;;  %v7220_v58 = vld [vmem:[#allocation4 + $0x6c8] ss:$16 sps:$4 sm:$0xff]   ;;  %v7225_v59 = vld [vmem:[#allocation4 + $0x6e4] ss:$16 sps:$4 sm:$0xff]  }
  0xd8   :  { %4927 = vmatprep.subr.bf16.mxu0 %v7141_v60  ;;  %5419 = vmatprep.subr.bf16.mxu1 %v7144_v61  ;;  %v7228_v60 = vld [vmem:[#allocation4 + $0x6ec] ss:$16 sps:$4 sm:$0xff]   ;;  %v7223_v61 = vld [vmem:[#allocation4 + $0x6e0] ss:$16 sps:$4 sm:$0xff]  }
  0xdb   :  { %4928 = vmatpush1.bf16.msra.mxu0 %v7139_v62  ;;  %5420 = vmatpush1.bf16.msra.mxu1 %v7142_v63  ;;  %v7226_v62 = vld [vmem:[#allocation4 + $0x6e8] ss:$16 sps:$4 sm:$0xff]   ;;  %v7231_v63 = vld [vmem:[#allocation4 + $0x704] ss:$16 sps:$4 sm:$0xff]  }
  0xdc   :  { %4929 = vmatprep.subr.bf16.mxu0 %v7147_v0  ;;  %5421 = vmatprep.subr.bf16.mxu1 %v7150_v1  ;;  %v7234_v0 = vld [vmem:[#allocation4 + $0x70c] ss:$16 sps:$4 sm:$0xff]   ;;  %v7229_v1 = vld [vmem:[#allocation4 + $0x700] ss:$16 sps:$4 sm:$0xff]  }
  0xdf   :  { %4930 = vmatpush1.bf16.msra.mxu0 %v7145_v2  ;;  %5422 = vmatpush1.bf16.msra.mxu1 %v7148_v3  ;;  %v7232_v2 = vld [vmem:[#allocation4 + $0x708] ss:$16 sps:$4 sm:$0xff]   ;;  %v7237_v3 = vld [vmem:[#allocation4 + $0x724] ss:$16 sps:$4 sm:$0xff]  }
  0xe0   :  { %4931 = vmatprep.subr.bf16.mxu0 %v7153_v4  ;;  %5423 = vmatprep.subr.bf16.mxu1 %v7156_v5  ;;  %v7240_v4 = vld [vmem:[#allocation4 + $0x72c] ss:$16 sps:$4 sm:$0xff]   ;;  %v7235_v5 = vld [vmem:[#allocation4 + $0x720] ss:$16 sps:$4 sm:$0xff]  }
  0xe3   :  { %4932 = vmatpush1.bf16.msra.mxu0 %v7151_v6  ;;  %5424 = vmatpush1.bf16.msra.mxu1 %v7154_v7  ;;  %v7238_v6 = vld [vmem:[#allocation4 + $0x728] ss:$16 sps:$4 sm:$0xff]   ;;  %v7243_v7 = vld [vmem:[#allocation4 + $0x744] ss:$16 sps:$4 sm:$0xff]  }
  0xe4   :  { %4933 = vmatprep.subr.bf16.mxu0 %v7159_v8  ;;  %5425 = vmatprep.subr.bf16.mxu1 %v7162_v10  ;;  %v7246_v8 = vld [vmem:[#allocation4 + $0x74c] ss:$16 sps:$4 sm:$0xff]   ;;  %v7241_v10 = vld [vmem:[#allocation4 + $0x740] ss:$16 sps:$4 sm:$0xff]  }
  0xe7   :  { %4934 = vmatpush1.bf16.msra.mxu0 %v7157_v11  ;;  %5426 = vmatpush1.bf16.msra.mxu1 %v7160_v12  ;;  %v7244_v11 = vld [vmem:[#allocation4 + $0x748] ss:$16 sps:$4 sm:$0xff]   ;;  %v7249_v12 = vld [vmem:[#allocation4 + $0x764] ss:$16 sps:$4 sm:$0xff]  }
  0xe8   :  { %4935 = vmatprep.subr.bf16.mxu0 %v7165_v13  ;;  %5427 = vmatprep.subr.bf16.mxu1 %v7168_v14  ;;  %v7252_v13 = vld [vmem:[#allocation4 + $0x76c] ss:$16 sps:$4 sm:$0xff]   ;;  %v7247_v14 = vld [vmem:[#allocation4 + $0x760] ss:$16 sps:$4 sm:$0xff]  }
  0xeb   :  { %4936 = vmatpush1.bf16.msra.mxu0 %v7163_v15  ;;  %5428 = vmatpush1.bf16.msra.mxu1 %v7166_v16  ;;  %v7250_v15 = vld [vmem:[#allocation4 + $0x768] ss:$16 sps:$4 sm:$0xff]   ;;  %v7255_v16 = vld [vmem:[#allocation4 + $0x784] ss:$16 sps:$4 sm:$0xff]  }
  0xec   :  { %4937 = vmatprep.subr.bf16.mxu0 %v7171_v17  ;;  %5429 = vmatprep.subr.bf16.mxu1 %v7174_v18  ;;  %v7258_v17 = vld [vmem:[#allocation4 + $0x78c] ss:$16 sps:$4 sm:$0xff]   ;;  %v7253_v18 = vld [vmem:[#allocation4 + $0x780] ss:$16 sps:$4 sm:$0xff]  }
  0xef   :  { %4938 = vmatpush1.bf16.msra.mxu0 %v7169_v20  ;;  %5430 = vmatpush1.bf16.msra.mxu1 %v7172_v21  ;;  %v7261_v20 = vld [vmem:[#allocation4 + $0x7a4] ss:$16 sps:$4 sm:$0xff]   ;;  %v7264_v21 = vld [vmem:[#allocation4 + $0x7ac] ss:$16 sps:$4 sm:$0xff]  }
  0xf0   :  { %4939 = vmatprep.subr.bf16.mxu0 %v7177_v22  ;;  %5431 = vmatprep.subr.bf16.mxu1 %v7180_v24  ;;  %v7259_v22 = vld [vmem:[#allocation4 + $0x7a0] ss:$16 sps:$4 sm:$0xff]   ;;  %v7262_v24 = vld [vmem:[#allocation4 + $0x7a8] ss:$16 sps:$4 sm:$0xff]  }
  0xf3   :  { %4940 = vmatpush1.bf16.msra.mxu0 %v7175_v27  ;;  %5432 = vmatpush1.bf16.msra.mxu1 %v7178_v9  ;;  %v7267_v27 = vld [vmem:[#allocation4 + $0x7c4] ss:$16 sps:$4 sm:$0xff]   ;;  %v7270_v9 = vld [vmem:[#allocation4 + $0x7cc] ss:$16 sps:$4 sm:$0xff]  }
  0xf4   :  { %4950 = vmatprep.subr.bf16.mxu0 %v7183_v28  ;;  %5442 = vmatprep.subr.bf16.mxu1 %v7186_v29  ;;  %v7265_v28 = vld [vmem:[#allocation4 + $0x7c0] ss:$16 sps:$4 sm:$0xff]  }
  0xf5   :  { %v8240_v29 = vld [vmem:[#allocation2 + $0x10] sm:$0xff] }
  0xf6   :  { %4942 = vmatmul.mubr.bf16.vlgmr.msra.gmra.mrb[0].mxu0 %v199_v30  ;;  %5434 = vmatmul.mubr.bf16.vlgmr.msra.gmra.mrb[0].mxu1 %v199_v30  ;;  %v7273_v30 = vld [vmem:[#allocation4 + $0x7e4] ss:$16 sps:$4 sm:$0xff]  }
  0xf7   :  { %4951 = vmatpush1.bf16.msra.mxu0 %v7181_v31  ;;  %5443 = vmatpush1.bf16.msra.mxu1 %v7184_v32  ;;  %v7276_v31 = vld [vmem:[#allocation4 + $0x7ec] ss:$16 sps:$4 sm:$0xff]   ;;  %v8244_v32 = vrot.slane %v8240_v29, %v8213_v49 }
  0xf8   :  { %4952 = vmatprep.subr.bf16.mxu0 %v7189_v33  ;;  %5444 = vmatprep.subr.bf16.mxu1 %v7192_v34  ;;  %v7271_v33 = vld [vmem:[#allocation4 + $0x7e0] ss:$16 sps:$4 sm:$0xff]   ;;  %v7274_v34 = vld [vmem:[#allocation4 + $0x7e8] ss:$16 sps:$4 sm:$0xff]  }
  0xf9   :  { %4982 = vmatprep.mubr.bf16.mxu0 %v202_v35  ;;  %5474 = vmatprep.mubr.bf16.mxu1 %v202_v35  ;;  %v7280_v35 = vld [vmem:[#allocation4 + $0x804] ss:$16 sps:$4 sm:$0xff]  }
  0xfb   :  { %4953 = vmatpush1.bf16.msra.mxu0 %v7187_v36  ;;  %5445 = vmatpush1.bf16.msra.mxu1 %v7190_v37  ;;  %v7283_v36 = vld [vmem:[#allocation4 + $0x80c] ss:$16 sps:$4 sm:$0xff]   ;;  %v118_v37 = vcombine.high %v8244_v32, %v8244_v32 }
  0xfc   :  { %4954 = vmatprep.subr.bf16.mxu0 %v7195_v38  ;;  %5446 = vmatprep.subr.bf16.mxu1 %v7198_v39  ;;  %v7278_v38 = vld [vmem:[#allocation4 + $0x800] ss:$16 sps:$4 sm:$0xff]   ;;  %v201_v39 = vpack.c.bf16 %v8234_v25, %v8234_v25 }
  0xfd   :  { %v7290_v25 = vld [vmem:[#allocation4 + $0x840] ss:$16 sps:$4 sm:$0xff]  }
  0xff   :  { %4955 = vmatpush1.bf16.msra.mxu0 %v7193_v26  ;;  %5447 = vmatpush1.bf16.msra.mxu1 %v7196_v40  ;;  %v7281_v26 = vld [vmem:[#allocation4 + $0x808] ss:$16 sps:$4 sm:$0xff]   ;;  %v7286_v40 = vld [vmem:[#allocation4 + $0x824] ss:$16 sps:$4 sm:$0xff]  }
 0x100   :  { %4956 = vmatprep.subr.bf16.mxu0 %v7201_v41  ;;  %5448 = vmatprep.subr.bf16.mxu1 %v7204_v42  ;;  %v7289_v41 = vld [vmem:[#allocation4 + $0x82c] ss:$16 sps:$4 sm:$0xff]   ;;  %v204_v42 = vpack.c.bf16 %v118_v37, %v118_v37  ;;  %v7362_v37 = vld [vmem:[#allocation4 + $0x9c0] ss:$16 sps:$4 sm:$0xff]  }
 0x103   :  { %4957 = vmatpush1.bf16.msra.mxu0 %v7199_v44  ;;  %5449 = vmatpush1.bf16.msra.mxu1 %v7202_v45  ;;  %v7284_v44 = vld [vmem:[#allocation4 + $0x820] ss:$16 sps:$4 sm:$0xff]   ;;  %v7287_v45 = vld [vmem:[#allocation4 + $0x828] ss:$16 sps:$4 sm:$0xff]  }
 0x104   :  { %4958 = vmatprep.subr.bf16.mxu0 %v7207_v46  ;;  %5450 = vmatprep.subr.bf16.mxu1 %v7210_v47  ;;  %v7292_v46 = vld [vmem:[#allocation4 + $0x844] ss:$16 sps:$4 sm:$0xff]   ;;  %v7295_v47 = vld [vmem:[#allocation4 + $0x84c] ss:$16 sps:$4 sm:$0xff]  }
 0x107   :  { %4959 = vmatpush1.bf16.msra.mxu0 %v7205_v48  ;;  %5451 = vmatpush1.bf16.msra.mxu1 %v7208_v50  ;;  %v7293_v48 = vld [vmem:[#allocation4 + $0x848] ss:$16 sps:$4 sm:$0xff]   ;;  %v7298_v50 = vld [vmem:[#allocation4 + $0x864] ss:$16 sps:$4 sm:$0xff]  }
 0x108   :  { %4960 = vmatprep.subr.bf16.mxu0 %v7213_v51  ;;  %5452 = vmatprep.subr.bf16.mxu1 %v7216_v52  ;;  %v7301_v51 = vld [vmem:[#allocation4 + $0x86c] ss:$16 sps:$4 sm:$0xff]   ;;  %v7296_v52 = vld [vmem:[#allocation4 + $0x860] ss:$16 sps:$4 sm:$0xff]  }
 0x10b   :  { %4961 = vmatpush1.bf16.msra.mxu0 %v7211_v53  ;;  %5453 = vmatpush1.bf16.msra.mxu1 %v7214_v54  ;;  %v7299_v53 = vld [vmem:[#allocation4 + $0x868] ss:$16 sps:$4 sm:$0xff]   ;;  %v7304_v54 = vld [vmem:[#allocation4 + $0x884] ss:$16 sps:$4 sm:$0xff]  }
 0x10c   :  { %4962 = vmatprep.subr.bf16.mxu0 %v7219_v55  ;;  %5454 = vmatprep.subr.bf16.mxu1 %v7222_v56  ;;  %v7307_v55 = vld [vmem:[#allocation4 + $0x88c] ss:$16 sps:$4 sm:$0xff]   ;;  %v7302_v56 = vld [vmem:[#allocation4 + $0x880] ss:$16 sps:$4 sm:$0xff]  }
 0x10f   :  { %4963 = vmatpush1.bf16.msra.mxu0 %v7217_v57  ;;  %5455 = vmatpush1.bf16.msra.mxu1 %v7220_v58  ;;  %v7305_v57 = vld [vmem:[#allocation4 + $0x888] ss:$16 sps:$4 sm:$0xff]   ;;  %v7310_v58 = vld [vmem:[#allocation4 + $0x8a4] ss:$16 sps:$4 sm:$0xff]  }
 0x110   :  { %4964 = vmatprep.subr.bf16.mxu0 %v7225_v59  ;;  %5456 = vmatprep.subr.bf16.mxu1 %v7228_v60  ;;  %v7313_v59 = vld [vmem:[#allocation4 + $0x8ac] ss:$16 sps:$4 sm:$0xff]   ;;  %v7308_v60 = vld [vmem:[#allocation4 + $0x8a0] ss:$16 sps:$4 sm:$0xff]  }
 0x113   :  { %4965 = vmatpush1.bf16.msra.mxu0 %v7223_v61  ;;  %5457 = vmatpush1.bf16.msra.mxu1 %v7226_v62  ;;  %v7311_v61 = vld [vmem:[#allocation4 + $0x8a8] ss:$16 sps:$4 sm:$0xff]   ;;  %v7316_v62 = vld [vmem:[#allocation4 + $0x8c4] ss:$16 sps:$4 sm:$0xff]  }
 0x114   :  { %4966 = vmatprep.subr.bf16.mxu0 %v7231_v63  ;;  %5458 = vmatprep.subr.bf16.mxu1 %v7234_v0  ;;  %v7319_v63 = vld [vmem:[#allocation4 + $0x8cc] ss:$16 sps:$4 sm:$0xff]   ;;  %v7314_v0 = vld [vmem:[#allocation4 + $0x8c0] ss:$16 sps:$4 sm:$0xff]  }
 0x117   :  { %4967 = vmatpush1.bf16.msra.mxu0 %v7229_v1  ;;  %5459 = vmatpush1.bf16.msra.mxu1 %v7232_v2  ;;  %v7317_v1 = vld [vmem:[#allocation4 + $0x8c8] ss:$16 sps:$4 sm:$0xff]   ;;  %v7322_v2 = vld [vmem:[#allocation4 + $0x8e4] ss:$16 sps:$4 sm:$0xff]  }
 0x118   :  { %4968 = vmatprep.subr.bf16.mxu0 %v7237_v3  ;;  %5460 = vmatprep.subr.bf16.mxu1 %v7240_v4  ;;  %v7325_v3 = vld [vmem:[#allocation4 + $0x8ec] ss:$16 sps:$4 sm:$0xff]   ;;  %v7320_v4 = vld [vmem:[#allocation4 + $0x8e0] ss:$16 sps:$4 sm:$0xff]  }
 0x11b   :  { %4969 = vmatpush1.bf16.msra.mxu0 %v7235_v5  ;;  %5461 = vmatpush1.bf16.msra.mxu1 %v7238_v6  ;;  %v7323_v5 = vld [vmem:[#allocation4 + $0x8e8] ss:$16 sps:$4 sm:$0xff]   ;;  %v7328_v6 = vld [vmem:[#allocation4 + $0x904] ss:$16 sps:$4 sm:$0xff]  }
 0x11c   :  { %4970 = vmatprep.subr.bf16.mxu0 %v7243_v7  ;;  %5462 = vmatprep.subr.bf16.mxu1 %v7246_v8  ;;  %v7331_v7 = vld [vmem:[#allocation4 + $0x90c] ss:$16 sps:$4 sm:$0xff]   ;;  %v7326_v8 = vld [vmem:[#allocation4 + $0x900] ss:$16 sps:$4 sm:$0xff]  }
 0x11f   :  { %4971 = vmatpush1.bf16.msra.mxu0 %v7241_v10  ;;  %5463 = vmatpush1.bf16.msra.mxu1 %v7244_v11  ;;  %v7329_v10 = vld [vmem:[#allocation4 + $0x908] ss:$16 sps:$4 sm:$0xff]   ;;  %v7334_v11 = vld [vmem:[#allocation4 + $0x924] ss:$16 sps:$4 sm:$0xff]  }
 0x120   :  { %4972 = vmatprep.subr.bf16.mxu0 %v7249_v12  ;;  %5464 = vmatprep.subr.bf16.mxu1 %v7252_v13  ;;  %v7337_v12 = vld [vmem:[#allocation4 + $0x92c] ss:$16 sps:$4 sm:$0xff]   ;;  %v7332_v13 = vld [vmem:[#allocation4 + $0x920] ss:$16 sps:$4 sm:$0xff]  }
 0x123   :  { %4973 = vmatpush1.bf16.msra.mxu0 %v7247_v14  ;;  %5465 = vmatpush1.bf16.msra.mxu1 %v7250_v15  ;;  %v7335_v14 = vld [vmem:[#allocation4 + $0x928] ss:$16 sps:$4 sm:$0xff]   ;;  %v7340_v15 = vld [vmem:[#allocation4 + $0x944] ss:$16 sps:$4 sm:$0xff]  }
 0x124   :  { %4974 = vmatprep.subr.bf16.mxu0 %v7255_v16  ;;  %5466 = vmatprep.subr.bf16.mxu1 %v7258_v17  ;;  %v7343_v16 = vld [vmem:[#allocation4 + $0x94c] ss:$16 sps:$4 sm:$0xff]   ;;  %v7338_v17 = vld [vmem:[#allocation4 + $0x940] ss:$16 sps:$4 sm:$0xff]  }
 0x127   :  { %4975 = vmatpush1.bf16.msra.mxu0 %v7253_v18  ;;  %5467 = vmatpush1.bf16.msra.mxu1 %v7256_v19  ;;  %v7341_v18 = vld [vmem:[#allocation4 + $0x948] ss:$16 sps:$4 sm:$0xff]   ;;  %v7346_v19 = vld [vmem:[#allocation4 + $0x964] ss:$16 sps:$4 sm:$0xff]  }
 0x128   :  { %4976 = vmatprep.subr.bf16.mxu0 %v7261_v20  ;;  %5468 = vmatprep.subr.bf16.mxu1 %v7264_v21  ;;  %v7349_v20 = vld [vmem:[#allocation4 + $0x96c] ss:$16 sps:$4 sm:$0xff]   ;;  %v7344_v21 = vld [vmem:[#allocation4 + $0x960] ss:$16 sps:$4 sm:$0xff]  }
 0x12b   :  { %4977 = vmatpush1.bf16.msra.mxu0 %v7259_v22  ;;  %5469 = vmatpush1.bf16.msra.mxu1 %v7262_v24  ;;  %v7347_v22 = vld [vmem:[#allocation4 + $0x968] ss:$16 sps:$4 sm:$0xff]   ;;  %v7352_v24 = vld [vmem:[#allocation4 + $0x984] ss:$16 sps:$4 sm:$0xff]  }
 0x12c   :  { %4978 = vmatprep.subr.bf16.mxu0 %v7267_v27  ;;  %5470 = vmatprep.subr.bf16.mxu1 %v7270_v9  ;;  %v7355_v27 = vld [vmem:[#allocation4 + $0x98c] ss:$16 sps:$4 sm:$0xff]   ;;  %v7350_v9 = vld [vmem:[#allocation4 + $0x980] ss:$16 sps:$4 sm:$0xff]  }
 0x12f   :  { %4979 = vmatpush1.bf16.msra.mxu0 %v7265_v28  ;;  %5471 = vmatpush1.bf16.msra.mxu1 %v7268_v23  ;;  %v7353_v28 = vld [vmem:[#allocation4 + $0x988] ss:$16 sps:$4 sm:$0xff]   ;;  %v7358_v23 = vld [vmem:[#allocation4 + $0x9a4] ss:$16 sps:$4 sm:$0xff]  }
 0x130   :  { %4980 = vmatprep.subr.bf16.mxu0 %v7273_v30  ;;  %5472 = vmatprep.subr.bf16.mxu1 %v7276_v31  ;;  %v7361_v30 = vld [vmem:[#allocation4 + $0x9ac] ss:$16 sps:$4 sm:$0xff]   ;;  %v7356_v31 = vld [vmem:[#allocation4 + $0x9a0] ss:$16 sps:$4 sm:$0xff]  }
 0x133   :  { %4981 = vmatpush1.bf16.msra.mxu0 %v7271_v33  ;;  %5473 = vmatpush1.bf16.msra.mxu1 %v7274_v34  ;;  %v7359_v33 = vld [vmem:[#allocation4 + $0x9a8] ss:$16 sps:$4 sm:$0xff]   ;;  %v7364_v34 = vld [vmem:[#allocation4 + $0x9c4] ss:$16 sps:$4 sm:$0xff]  }
 0x134   :  { %4991 = vmatprep.subr.bf16.mxu0 %v7280_v35  ;;  %5483 = vmatprep.subr.bf16.mxu1 %v7283_v36  ;;  %v7367_v35 = vld [vmem:[#allocation4 + $0x9cc] ss:$16 sps:$4 sm:$0xff]   ;;  %v103_v36 = vcombine.high %v8240_v29, %v8240_v29 }
 0x136   :  { %4983 = vmatmul.mubr.bf16.vlgmr.msra.gmra.mrb[0].mxu0 %v201_v39  ;;  %5475 = vmatmul.mubr.bf16.vlgmr.msra.gmra.mrb[0].mxu1 %v201_v39  ;;  %v7370_v39 = vld [vmem:[#allocation4 + $0x9e4] ss:$16 sps:$4 sm:$0xff]  }
 0x137   :  { %4992 = vmatpush1.bf16.msra.mxu0 %v7278_v38  ;;  %5484 = vmatpush1.bf16.msra.mxu1 %v7281_v26  ;;  %v7365_v38 = vld [vmem:[#allocation4 + $0x9c8] ss:$16 sps:$4 sm:$0xff]   ;;  %v7373_v26 = vld [vmem:[#allocation4 + $0x9ec] ss:$16 sps:$4 sm:$0xff]  }
 0x138   :  { %4993 = vmatprep.subr.bf16.mxu0 %v7286_v40  ;;  %5485 = vmatprep.subr.bf16.mxu1 %v7289_v41  ;;  %v8253_v40 = vrot.slane %v103_v36, %v8213_v49  ;;  %v7368_v41 = vld [vmem:[#allocation4 + $0x9e0] ss:$16 sps:$4 sm:$0xff]   ;;  %v7449_v36 = vld [vmem:[#allocation4 + $0xb88] ss:$16 sps:$4 sm:$0xff]  }
 0x139   :  { %5023 = vmatprep.mubr.bf16.mxu0 %v204_v42  ;;  %5515 = vmatprep.mubr.bf16.mxu1 %v204_v42  ;;  %v7371_v42 = vld [vmem:[#allocation4 + $0x9e8] ss:$16 sps:$4 sm:$0xff]  }
 0x13a   :  { %v119_v29 = vcombine.high %v8253_v40, %v8253_v40 }
 0x13b   :  { %4994 = vmatpush1.bf16.msra.mxu0 %v7284_v44  ;;  %5486 = vmatpush1.bf16.msra.mxu1 %v7287_v45  ;;  %v7376_v44 = vld [vmem:[#allocation4 + $0xa04] ss:$16 sps:$4 sm:$0xff]   ;;  %v7379_v45 = vld [vmem:[#allocation4 + $0xa0c] ss:$16 sps:$4 sm:$0xff]  }
 0x13c   :  { %4995 = vmatprep.subr.bf16.mxu0 %v7292_v46  ;;  %5487 = vmatprep.subr.bf16.mxu1 %v7295_v47  ;;  %v203_v46 = vpack.c.bf16 %v8244_v32, %v8244_v32  ;;  %v7374_v47 = vld [vmem:[#allocation4 + $0xa00] ss:$16 sps:$4 sm:$0xff]  }
 0x13d   :  { %v7386_v32 = vld [vmem:[#allocation4 + $0xa40] ss:$16 sps:$4 sm:$0xff]  }
 0x13f   :  { %4996 = vmatpush1.bf16.msra.mxu0 %v7290_v25  ;;  %5488 = vmatpush1.bf16.msra.mxu1 %v7293_v48  ;;  %v7377_v25 = vld [vmem:[#allocation4 + $0xa08] ss:$16 sps:$4 sm:$0xff]   ;;  %v7382_v48 = vld [vmem:[#allocation4 + $0xa24] ss:$16 sps:$4 sm:$0xff]  }
 0x140   :  { %4997 = vmatprep.subr.bf16.mxu0 %v7298_v50  ;;  %5489 = vmatprep.subr.bf16.mxu1 %v7301_v51  ;;  %v7385_v50 = vld [vmem:[#allocation4 + $0xa2c] ss:$16 sps:$4 sm:$0xff]   ;;  %v206_v51 = vpack.c.bf16 %v119_v29, %v119_v29  ;;  %v7461_v29 = vld [vmem:[#allocation4 + $0xbc8] ss:$16 sps:$4 sm:$0xff]  }
 0x143   :  { %4998 = vmatpush1.bf16.msra.mxu0 %v7296_v52  ;;  %5490 = vmatpush1.bf16.msra.mxu1 %v7299_v53  ;;  %v7380_v52 = vld [vmem:[#allocation4 + $0xa20] ss:$16 sps:$4 sm:$0xff]   ;;  %v7383_v53 = vld [vmem:[#allocation4 + $0xa28] ss:$16 sps:$4 sm:$0xff]  }
 0x144   :  { %4999 = vmatprep.subr.bf16.mxu0 %v7304_v54  ;;  %5491 = vmatprep.subr.bf16.mxu1 %v7307_v55  ;;  %v7388_v54 = vld [vmem:[#allocation4 + $0xa44] ss:$16 sps:$4 sm:$0xff]   ;;  %v7391_v55 = vld [vmem:[#allocation4 + $0xa4c] ss:$16 sps:$4 sm:$0xff]  }
 0x147   :  { %5000 = vmatpush1.bf16.msra.mxu0 %v7302_v56  ;;  %5492 = vmatpush1.bf16.msra.mxu1 %v7305_v57  ;;  %v7389_v56 = vld [vmem:[#allocation4 + $0xa48] ss:$16 sps:$4 sm:$0xff]   ;;  %v7394_v57 = vld [vmem:[#allocation4 + $0xa64] ss:$16 sps:$4 sm:$0xff]  }
 0x148   :  { %5001 = vmatprep.subr.bf16.mxu0 %v7310_v58  ;;  %5493 = vmatprep.subr.bf16.mxu1 %v7313_v59  ;;  %v7397_v58 = vld [vmem:[#allocation4 + $0xa6c] ss:$16 sps:$4 sm:$0xff]   ;;  %v7392_v59 = vld [vmem:[#allocation4 + $0xa60] ss:$16 sps:$4 sm:$0xff]  }
 0x14b   :  { %5002 = vmatpush1.bf16.msra.mxu0 %v7308_v60  ;;  %5494 = vmatpush1.bf16.msra.mxu1 %v7311_v61  ;;  %v7395_v60 = vld [vmem:[#allocation4 + $0xa68] ss:$16 sps:$4 sm:$0xff]   ;;  %v7400_v61 = vld [vmem:[#allocation4 + $0xa84] ss:$16 sps:$4 sm:$0xff]  }
 0x14c   :  { %5003 = vmatprep.subr.bf16.mxu0 %v7316_v62  ;;  %5495 = vmatprep.subr.bf16.mxu1 %v7319_v63  ;;  %v7403_v62 = vld [vmem:[#allocation4 + $0xa8c] ss:$16 sps:$4 sm:$0xff]   ;;  %v7398_v63 = vld [vmem:[#allocation4 + $0xa80] ss:$16 sps:$4 sm:$0xff]  }
 0x14f   :  { %5004 = vmatpush1.bf16.msra.mxu0 %v7314_v0  ;;  %5496 = vmatpush1.bf16.msra.mxu1 %v7317_v1  ;;  %v7401_v0 = vld [vmem:[#allocation4 + $0xa88] ss:$16 sps:$4 sm:$0xff]   ;;  %v7406_v1 = vld [vmem:[#allocation4 + $0xaa4] ss:$16 sps:$4 sm:$0xff]  }
 0x150   :  { %5005 = vmatprep.subr.bf16.mxu0 %v7322_v2  ;;  %5497 = vmatprep.subr.bf16.mxu1 %v7325_v3  ;;  %v7409_v2 = vld [vmem:[#allocation4 + $0xaac] ss:$16 sps:$4 sm:$0xff]   ;;  %v7404_v3 = vld [vmem:[#allocation4 + $0xaa0] ss:$16 sps:$4 sm:$0xff]  }
 0x153   :  { %5006 = vmatpush1.bf16.msra.mxu0 %v7320_v4  ;;  %5498 = vmatpush1.bf16.msra.mxu1 %v7323_v5  ;;  %v7407_v4 = vld [vmem:[#allocation4 + $0xaa8] ss:$16 sps:$4 sm:$0xff]   ;;  %v7412_v5 = vld [vmem:[#allocation4 + $0xac4] ss:$16 sps:$4 sm:$0xff]  }
 0x154   :  { %5007 = vmatprep.subr.bf16.mxu0 %v7328_v6  ;;  %5499 = vmatprep.subr.bf16.mxu1 %v7331_v7  ;;  %v7415_v6 = vld [vmem:[#allocation4 + $0xacc] ss:$16 sps:$4 sm:$0xff]   ;;  %v7410_v7 = vld [vmem:[#allocation4 + $0xac0] ss:$16 sps:$4 sm:$0xff]  }
 0x157   :  { %5008 = vmatpush1.bf16.msra.mxu0 %v7326_v8  ;;  %5500 = vmatpush1.bf16.msra.mxu1 %v7329_v10  ;;  %v7413_v8 = vld [vmem:[#allocation4 + $0xac8] ss:$16 sps:$4 sm:$0xff]   ;;  %v7418_v10 = vld [vmem:[#allocation4 + $0xae4] ss:$16 sps:$4 sm:$0xff]  }
 0x158   :  { %5009 = vmatprep.subr.bf16.mxu0 %v7334_v11  ;;  %5501 = vmatprep.subr.bf16.mxu1 %v7337_v12  ;;  %v7421_v11 = vld [vmem:[#allocation4 + $0xaec] ss:$16 sps:$4 sm:$0xff]   ;;  %v7416_v12 = vld [vmem:[#allocation4 + $0xae0] ss:$16 sps:$4 sm:$0xff]  }
 0x15b   :  { %5010 = vmatpush1.bf16.msra.mxu0 %v7332_v13  ;;  %5502 = vmatpush1.bf16.msra.mxu1 %v7335_v14  ;;  %v7419_v13 = vld [vmem:[#allocation4 + $0xae8] ss:$16 sps:$4 sm:$0xff]   ;;  %v7424_v14 = vld [vmem:[#allocation4 + $0xb04] ss:$16 sps:$4 sm:$0xff]  }
 0x15c   :  { %5011 = vmatprep.subr.bf16.mxu0 %v7340_v15  ;;  %5503 = vmatprep.subr.bf16.mxu1 %v7343_v16  ;;  %v7427_v15 = vld [vmem:[#allocation4 + $0xb0c] ss:$16 sps:$4 sm:$0xff]   ;;  %v7422_v16 = vld [vmem:[#allocation4 + $0xb00] ss:$16 sps:$4 sm:$0xff]  }
 0x15f   :  { %5012 = vmatpush1.bf16.msra.mxu0 %v7338_v17  ;;  %5504 = vmatpush1.bf16.msra.mxu1 %v7341_v18  ;;  %v7425_v17 = vld [vmem:[#allocation4 + $0xb08] ss:$16 sps:$4 sm:$0xff]   ;;  %v7430_v18 = vld [vmem:[#allocation4 + $0xb24] ss:$16 sps:$4 sm:$0xff]  }
 0x160   :  { %5013 = vmatprep.subr.bf16.mxu0 %v7346_v19  ;;  %5505 = vmatprep.subr.bf16.mxu1 %v7349_v20  ;;  %v7433_v19 = vld [vmem:[#allocation4 + $0xb2c] ss:$16 sps:$4 sm:$0xff]   ;;  %v7428_v20 = vld [vmem:[#allocation4 + $0xb20] ss:$16 sps:$4 sm:$0xff]  }
 0x163   :  { %5014 = vmatpush1.bf16.msra.mxu0 %v7344_v21  ;;  %5506 = vmatpush1.bf16.msra.mxu1 %v7347_v22  ;;  %v7431_v21 = vld [vmem:[#allocation4 + $0xb28] ss:$16 sps:$4 sm:$0xff]   ;;  %v7436_v22 = vld [vmem:[#allocation4 + $0xb44] ss:$16 sps:$4 sm:$0xff]  }
 0x164   :  { %5015 = vmatprep.subr.bf16.mxu0 %v7352_v24  ;;  %5507 = vmatprep.subr.bf16.mxu1 %v7355_v27  ;;  %v7439_v24 = vld [vmem:[#allocation4 + $0xb4c] ss:$16 sps:$4 sm:$0xff]   ;;  %v7434_v27 = vld [vmem:[#allocation4 + $0xb40] ss:$16 sps:$4 sm:$0xff]  }
 0x167   :  { %5016 = vmatpush1.bf16.msra.mxu0 %v7350_v9  ;;  %5508 = vmatpush1.bf16.msra.mxu1 %v7353_v28  ;;  %v7437_v9 = vld [vmem:[#allocation4 + $0xb48] ss:$16 sps:$4 sm:$0xff]   ;;  %v7442_v28 = vld [vmem:[#allocation4 + $0xb64] ss:$16 sps:$4 sm:$0xff]  }
 0x168   :  { %5017 = vmatprep.subr.bf16.mxu0 %v7358_v23  ;;  %5509 = vmatprep.subr.bf16.mxu1 %v7361_v30  ;;  %v7445_v23 = vld [vmem:[#allocation4 + $0xb6c] ss:$16 sps:$4 sm:$0xff]   ;;  %v7440_v30 = vld [vmem:[#allocation4 + $0xb60] ss:$16 sps:$4 sm:$0xff]  }
 0x16b   :  { %5018 = vmatpush1.bf16.msra.mxu0 %v7356_v31  ;;  %5510 = vmatpush1.bf16.msra.mxu1 %v7359_v33  ;;  %v7443_v31 = vld [vmem:[#allocation4 + $0xb68] ss:$16 sps:$4 sm:$0xff]   ;;  %v7448_v33 = vld [vmem:[#allocation4 + $0xb84] ss:$16 sps:$4 sm:$0xff]  }
 0x16c   :  { %5019 = vmatprep.subr.bf16.mxu0 %v7364_v34  ;;  %5511 = vmatprep.subr.bf16.mxu1 %v7367_v35  ;;  %v7451_v34 = vld [vmem:[#allocation4 + $0xb8c] ss:$16 sps:$4 sm:$0xff]   ;;  %v7446_v35 = vld [vmem:[#allocation4 + $0xb80] ss:$16 sps:$4 sm:$0xff]  }
 0x16f   :  { %5020 = vmatpush1.bf16.msra.mxu0 %v7362_v37  ;;  %5512 = vmatpush1.bf16.msra.mxu1 %v7365_v38  ;;  %v7454_v37 = vld [vmem:[#allocation4 + $0xba4] ss:$16 sps:$4 sm:$0xff]   ;;  %v7457_v38 = vld [vmem:[#allocation4 + $0xbac] ss:$16 sps:$4 sm:$0xff]  }
 0x170   :  { %5021 = vmatprep.subr.bf16.mxu0 %v7370_v39  ;;  %5513 = vmatprep.subr.bf16.mxu1 %v7373_v26  ;;  %v7452_v39 = vld [vmem:[#allocation4 + $0xba0] ss:$16 sps:$4 sm:$0xff]   ;;  %v7455_v26 = vld [vmem:[#allocation4 + $0xba8] ss:$16 sps:$4 sm:$0xff]  }
 0x173   :  { %5022 = vmatpush1.bf16.msra.mxu0 %v7368_v41  ;;  %5514 = vmatpush1.bf16.msra.mxu1 %v7371_v42  ;;  %v7460_v41 = vld [vmem:[#allocation4 + $0xbc4] ss:$16 sps:$4 sm:$0xff]   ;;  %v7463_v42 = vld [vmem:[#allocation4 + $0xbcc] ss:$16 sps:$4 sm:$0xff]  }
 0x174   :  { %5032 = vmatprep.subr.bf16.mxu0 %v7376_v44  ;;  %5524 = vmatprep.subr.bf16.mxu1 %v7379_v45  ;;  %v8259_v44 = vld [vmem:[#allocation2 + $0x18] sm:$0xff]  ;;  %v7458_v45 = vld [vmem:[#allocation4 + $0xbc0] ss:$16 sps:$4 sm:$0xff]  }
 0x176   :  { %5024 = vmatmul.mubr.bf16.vlgmr.msra.gmra.mrb[0].mxu0 %v203_v46  ;;  %5516 = vmatmul.mubr.bf16.vlgmr.msra.gmra.mrb[0].mxu1 %v203_v46  ;;  %v7466_v46 = vld [vmem:[#allocation4 + $0xbe4] ss:$16 sps:$4 sm:$0xff]  }
 0x177   :  { %5033 = vmatpush1.bf16.msra.mxu0 %v7374_v47  ;;  %5525 = vmatpush1.bf16.msra.mxu1 %v7377_v25  ;;  %v7469_v47 = vld [vmem:[#allocation4 + $0xbec] ss:$16 sps:$4 sm:$0xff]   ;;  %v8263_v25 = vrot.slane %v8259_v44, %v8213_v49 }
 0x178   :  { %5034 = vmatprep.subr.bf16.mxu0 %v7382_v48  ;;  %5526 = vmatprep.subr.bf16.mxu1 %v7385_v50  ;;  %v7464_v48 = vld [vmem:[#allocation4 + $0xbe0] ss:$16 sps:$4 sm:$0xff]   ;;  %v7467_v50 = vld [vmem:[#allocation4 + $0xbe8] ss:$16 sps:$4 sm:$0xff]  }
 0x179   :  { %5064 = vmatprep.mubr.bf16.mxu0 %v206_v51  ;;  %5556 = vmatprep.mubr.bf16.mxu1 %v206_v51  ;;  %v7473_v51 = vld [vmem:[#allocation4 + $0xc04] ss:$16 sps:$4 sm:$0xff]  }
 0x17b   :  { %5035 = vmatpush1.bf16.msra.mxu0 %v7380_v52  ;;  %5527 = vmatpush1.bf16.msra.mxu1 %v7383_v53  ;;  %v7476_v52 = vld [vmem:[#allocation4 + $0xc0c] ss:$16 sps:$4 sm:$0xff]   ;;  %v135_v53 = vcombine.high %v8263_v25, %v8263_v25 }
 0x17c   :  { %5036 = vmatprep.subr.bf16.mxu0 %v7388_v54  ;;  %5528 = vmatprep.subr.bf16.mxu1 %v7391_v55  ;;  %v205_v54 = vpack.c.bf16 %v8253_v40, %v8253_v40  ;;  %v7471_v55 = vld [vmem:[#allocation4 + $0xc00] ss:$16 sps:$4 sm:$0xff]  }
 0x17d   :  { %v7483_v40 = vld [vmem:[#allocation4 + $0xc40] ss:$16 sps:$4 sm:$0xff]  }
 0x17f   :  { %5037 = vmatpush1.bf16.msra.mxu0 %v7386_v32  ;;  %5529 = vmatpush1.bf16.msra.mxu1 %v7389_v56  ;;  %v7474_v32 = vld [vmem:[#allocation4 + $0xc08] ss:$16 sps:$4 sm:$0xff]   ;;  %v7479_v56 = vld [vmem:[#allocation4 + $0xc24] ss:$16 sps:$4 sm:$0xff]  }
 0x180   :  { %5038 = vmatprep.subr.bf16.mxu0 %v7394_v57  ;;  %5530 = vmatprep.subr.bf16.mxu1 %v7397_v58  ;;  %v7482_v57 = vld [vmem:[#allocation4 + $0xc2c] ss:$16 sps:$4 sm:$0xff]   ;;  %v208_v58 = vpack.c.bf16 %v135_v53, %v135_v53  ;;  %v7555_v53 = vld [vmem:[#allocation4 + $0xdc0] ss:$16 sps:$4 sm:$0xff]  }
 0x183   :  { %5039 = vmatpush1.bf16.msra.mxu0 %v7392_v59  ;;  %5531 = vmatpush1.bf16.msra.mxu1 %v7395_v60  ;;  %v7477_v59 = vld [vmem:[#allocation4 + $0xc20] ss:$16 sps:$4 sm:$0xff]   ;;  %v7480_v60 = vld [vmem:[#allocation4 + $0xc28] ss:$16 sps:$4 sm:$0xff]  }
 0x184   :  { %5040 = vmatprep.subr.bf16.mxu0 %v7400_v61  ;;  %5532 = vmatprep.subr.bf16.mxu1 %v7403_v62  ;;  %v7485_v61 = vld [vmem:[#allocation4 + $0xc44] ss:$16 sps:$4 sm:$0xff]   ;;  %v7488_v62 = vld [vmem:[#allocation4 + $0xc4c] ss:$16 sps:$4 sm:$0xff]  }
 0x187   :  { %5041 = vmatpush1.bf16.msra.mxu0 %v7398_v63  ;;  %5533 = vmatpush1.bf16.msra.mxu1 %v7401_v0  ;;  %v7486_v63 = vld [vmem:[#allocation4 + $0xc48] ss:$16 sps:$4 sm:$0xff]   ;;  %v7491_v0 = vld [vmem:[#allocation4 + $0xc64] ss:$16 sps:$4 sm:$0xff]  }
 0x188   :  { %5042 = vmatprep.subr.bf16.mxu0 %v7406_v1  ;;  %5534 = vmatprep.subr.bf16.mxu1 %v7409_v2  ;;  %v7494_v1 = vld [vmem:[#allocation4 + $0xc6c] ss:$16 sps:$4 sm:$0xff]   ;;  %v7489_v2 = vld [vmem:[#allocation4 + $0xc60] ss:$16 sps:$4 sm:$0xff]  }
 0x18b   :  { %5043 = vmatpush1.bf16.msra.mxu0 %v7404_v3  ;;  %5535 = vmatpush1.bf16.msra.mxu1 %v7407_v4  ;;  %v7492_v3 = vld [vmem:[#allocation4 + $0xc68] ss:$16 sps:$4 sm:$0xff]   ;;  %v7497_v4 = vld [vmem:[#allocation4 + $0xc84] ss:$16 sps:$4 sm:$0xff]  }
 0x18c   :  { %5044 = vmatprep.subr.bf16.mxu0 %v7412_v5  ;;  %5536 = vmatprep.subr.bf16.mxu1 %v7415_v6  ;;  %v7500_v5 = vld [vmem:[#allocation4 + $0xc8c] ss:$16 sps:$4 sm:$0xff]   ;;  %v7495_v6 = vld [vmem:[#allocation4 + $0xc80] ss:$16 sps:$4 sm:$0xff]  }
 0x18f   :  { %5045 = vmatpush1.bf16.msra.mxu0 %v7410_v7  ;;  %5537 = vmatpush1.bf16.msra.mxu1 %v7413_v8  ;;  %v7498_v7 = vld [vmem:[#allocation4 + $0xc88] ss:$16 sps:$4 sm:$0xff]   ;;  %v7503_v8 = vld [vmem:[#allocation4 + $0xca4] ss:$16 sps:$4 sm:$0xff]  }
 0x190   :  { %5046 = vmatprep.subr.bf16.mxu0 %v7418_v10  ;;  %5538 = vmatprep.subr.bf16.mxu1 %v7421_v11  ;;  %v7506_v10 = vld [vmem:[#allocation4 + $0xcac] ss:$16 sps:$4 sm:$0xff]   ;;  %v7501_v11 = vld [vmem:[#allocation4 + $0xca0] ss:$16 sps:$4 sm:$0xff]  }
 0x193   :  { %5047 = vmatpush1.bf16.msra.mxu0 %v7416_v12  ;;  %5539 = vmatpush1.bf16.msra.mxu1 %v7419_v13  ;;  %v7504_v12 = vld [vmem:[#allocation4 + $0xca8] ss:$16 sps:$4 sm:$0xff]   ;;  %v7509_v13 = vld [vmem:[#allocation4 + $0xcc4] ss:$16 sps:$4 sm:$0xff]  }
 0x194   :  { %5048 = vmatprep.subr.bf16.mxu0 %v7424_v14  ;;  %5540 = vmatprep.subr.bf16.mxu1 %v7427_v15  ;;  %v7512_v14 = vld [vmem:[#allocation4 + $0xccc] ss:$16 sps:$4 sm:$0xff]   ;;  %v7507_v15 = vld [vmem:[#allocation4 + $0xcc0] ss:$16 sps:$4 sm:$0xff]  }
 0x197   :  { %5049 = vmatpush1.bf16.msra.mxu0 %v7422_v16  ;;  %5541 = vmatpush1.bf16.msra.mxu1 %v7425_v17  ;;  %v7510_v16 = vld [vmem:[#allocation4 + $0xcc8] ss:$16 sps:$4 sm:$0xff]   ;;  %v7515_v17 = vld [vmem:[#allocation4 + $0xce4] ss:$16 sps:$4 sm:$0xff]  }
 0x198   :  { %5050 = vmatprep.subr.bf16.mxu0 %v7430_v18  ;;  %5542 = vmatprep.subr.bf16.mxu1 %v7433_v19  ;;  %v7518_v18 = vld [vmem:[#allocation4 + $0xcec] ss:$16 sps:$4 sm:$0xff]   ;;  %v7513_v19 = vld [vmem:[#allocation4 + $0xce0] ss:$16 sps:$4 sm:$0xff]  }
 0x19b   :  { %5051 = vmatpush1.bf16.msra.mxu0 %v7428_v20  ;;  %5543 = vmatpush1.bf16.msra.mxu1 %v7431_v21  ;;  %v7516_v20 = vld [vmem:[#allocation4 + $0xce8] ss:$16 sps:$4 sm:$0xff]   ;;  %v7521_v21 = vld [vmem:[#allocation4 + $0xd04] ss:$16 sps:$4 sm:$0xff]  }
 0x19c   :  { %5052 = vmatprep.subr.bf16.mxu0 %v7436_v22  ;;  %5544 = vmatprep.subr.bf16.mxu1 %v7439_v24  ;;  %v7524_v22 = vld [vmem:[#allocation4 + $0xd0c] ss:$16 sps:$4 sm:$0xff]   ;;  %v7519_v24 = vld [vmem:[#allocation4 + $0xd00] ss:$16 sps:$4 sm:$0xff]  }
 0x19f   :  { %5053 = vmatpush1.bf16.msra.mxu0 %v7434_v27  ;;  %5545 = vmatpush1.bf16.msra.mxu1 %v7437_v9  ;;  %v7522_v27 = vld [vmem:[#allocation4 + $0xd08] ss:$16 sps:$4 sm:$0xff]   ;;  %v7527_v9 = vld [vmem:[#allocation4 + $0xd24] ss:$16 sps:$4 sm:$0xff]  }
 0x1a0   :  { %5054 = vmatprep.subr.bf16.mxu0 %v7442_v28  ;;  %5546 = vmatprep.subr.bf16.mxu1 %v7445_v23  ;;  %v7530_v28 = vld [vmem:[#allocation4 + $0xd2c] ss:$16 sps:$4 sm:$0xff]   ;;  %v7525_v23 = vld [vmem:[#allocation4 + $0xd20] ss:$16 sps:$4 sm:$0xff]  }
 0x1a3   :  { %5055 = vmatpush1.bf16.msra.mxu0 %v7440_v30  ;;  %5547 = vmatpush1.bf16.msra.mxu1 %v7443_v31  ;;  %v7528_v30 = vld [vmem:[#allocation4 + $0xd28] ss:$16 sps:$4 sm:$0xff]   ;;  %v7533_v31 = vld [vmem:[#allocation4 + $0xd44] ss:$16 sps:$4 sm:$0xff]  }
 0x1a4   :  { %5056 = vmatprep.subr.bf16.mxu0 %v7448_v33  ;;  %5548 = vmatprep.subr.bf16.mxu1 %v7451_v34  ;;  %v7536_v33 = vld [vmem:[#allocation4 + $0xd4c] ss:$16 sps:$4 sm:$0xff]   ;;  %v7531_v34 = vld [vmem:[#allocation4 + $0xd40] ss:$16 sps:$4 sm:$0xff]  }
 0x1a7   :  { %5057 = vmatpush1.bf16.msra.mxu0 %v7446_v35  ;;  %5549 = vmatpush1.bf16.msra.mxu1 %v7449_v36  ;;  %v7534_v35 = vld [vmem:[#allocation4 + $0xd48] ss:$16 sps:$4 sm:$0xff]   ;;  %v7539_v36 = vld [vmem:[#allocation4 + $0xd64] ss:$16 sps:$4 sm:$0xff]  }
 0x1a8   :  { %5058 = vmatprep.subr.bf16.mxu0 %v7454_v37  ;;  %5550 = vmatprep.subr.bf16.mxu1 %v7457_v38  ;;  %v7542_v37 = vld [vmem:[#allocation4 + $0xd6c] ss:$16 sps:$4 sm:$0xff]   ;;  %v7537_v38 = vld [vmem:[#allocation4 + $0xd60] ss:$16 sps:$4 sm:$0xff]  }
 0x1ab   :  { %5059 = vmatpush1.bf16.msra.mxu0 %v7452_v39  ;;  %5551 = vmatpush1.bf16.msra.mxu1 %v7455_v26  ;;  %v7540_v39 = vld [vmem:[#allocation4 + $0xd68] ss:$16 sps:$4 sm:$0xff]   ;;  %v7545_v26 = vld [vmem:[#allocation4 + $0xd84] ss:$16 sps:$4 sm:$0xff]  }
 0x1ac   :  { %5060 = vmatprep.subr.bf16.mxu0 %v7460_v41  ;;  %5552 = vmatprep.subr.bf16.mxu1 %v7463_v42  ;;  %v7548_v41 = vld [vmem:[#allocation4 + $0xd8c] ss:$16 sps:$4 sm:$0xff]   ;;  %v7543_v42 = vld [vmem:[#allocation4 + $0xd80] ss:$16 sps:$4 sm:$0xff]  }
 0x1af   :  { %5061 = vmatpush1.bf16.msra.mxu0 %v7458_v45  ;;  %5553 = vmatpush1.bf16.msra.mxu1 %v7461_v29  ;;  %v7546_v45 = vld [vmem:[#allocation4 + $0xd88] ss:$16 sps:$4 sm:$0xff]   ;;  %v7551_v29 = vld [vmem:[#allocation4 + $0xda4] ss:$16 sps:$4 sm:$0xff]  }
 0x1b0   :  { %5062 = vmatprep.subr.bf16.mxu0 %v7466_v46  ;;  %5554 = vmatprep.subr.bf16.mxu1 %v7469_v47  ;;  %v7554_v46 = vld [vmem:[#allocation4 + $0xdac] ss:$16 sps:$4 sm:$0xff]   ;;  %v7549_v47 = vld [vmem:[#allocation4 + $0xda0] ss:$16 sps:$4 sm:$0xff]  }
 0x1b3   :  { %5063 = vmatpush1.bf16.msra.mxu0 %v7464_v48  ;;  %5555 = vmatpush1.bf16.msra.mxu1 %v7467_v50  ;;  %v7552_v48 = vld [vmem:[#allocation4 + $0xda8] ss:$16 sps:$4 sm:$0xff]   ;;  %v7557_v50 = vld [vmem:[#allocation4 + $0xdc4] ss:$16 sps:$4 sm:$0xff]  }
 0x1b4   :  { %5073 = vmatprep.subr.bf16.mxu0 %v7473_v51  ;;  %5565 = vmatprep.subr.bf16.mxu1 %v7476_v52  ;;  %v7560_v51 = vld [vmem:[#allocation4 + $0xdcc] ss:$16 sps:$4 sm:$0xff]   ;;  %v120_v52 = vcombine.high %v8259_v44, %v8259_v44 }
 0x1b6   :  { %5065 = vmatmul.mubr.bf16.vlgmr.msra.gmra.mrb[0].mxu0 %v205_v54  ;;  %5557 = vmatmul.mubr.bf16.vlgmr.msra.gmra.mrb[0].mxu1 %v205_v54  ;;  %v7558_v54 = vld [vmem:[#allocation4 + $0xdc8] ss:$16 sps:$4 sm:$0xff]  }
 0x1b7   :  { %5074 = vmatpush1.bf16.msra.mxu0 %v7471_v55  ;;  %5566 = vmatpush1.bf16.msra.mxu1 %v7474_v32  ;;  %v7563_v55 = vld [vmem:[#allocation4 + $0xde4] ss:$16 sps:$4 sm:$0xff]   ;;  %v7566_v32 = vld [vmem:[#allocation4 + $0xdec] ss:$16 sps:$4 sm:$0xff]  }
 0x1b8   :  { %5075 = vmatprep.subr.bf16.mxu0 %v7479_v56  ;;  %5567 = vmatprep.subr.bf16.mxu1 %v7482_v57  ;;  %v8272_v56 = vrot.slane %v120_v52, %v8213_v49  ;;  %v7561_v57 = vld [vmem:[#allocation4 + $0xde0] ss:$16 sps:$4 sm:$0xff]   ;;  %v7642_v52 = vld [vmem:[#allocation4 + $0xf88] ss:$16 sps:$4 sm:$0xff]  }
 0x1b9   :  { %5105 = vmatprep.mubr.bf16.mxu0 %v208_v58  ;;  %5597 = vmatprep.mubr.bf16.mxu1 %v208_v58  ;;  %v7564_v58 = vld [vmem:[#allocation4 + $0xde8] ss:$16 sps:$4 sm:$0xff]  }
 0x1ba   :  { %v136_v44 = vcombine.high %v8272_v56, %v8272_v56 }
 0x1bb   :  { %5076 = vmatpush1.bf16.msra.mxu0 %v7477_v59  ;;  %5568 = vmatpush1.bf16.msra.mxu1 %v7480_v60  ;;  %v7569_v59 = vld [vmem:[#allocation4 + $0xe04] ss:$16 sps:$4 sm:$0xff]   ;;  %v7572_v60 = vld [vmem:[#allocation4 + $0xe0c] ss:$16 sps:$4 sm:$0xff]  }
 0x1bc   :  { %5077 = vmatprep.subr.bf16.mxu0 %v7485_v61  ;;  %5569 = vmatprep.subr.bf16.mxu1 %v7488_v62  ;;  %v207_v61 = vpack.c.bf16 %v8263_v25, %v8263_v25  ;;  %v7567_v62 = vld [vmem:[#allocation4 + $0xe00] ss:$16 sps:$4 sm:$0xff]  }
 0x1bd   :  { %v7579_v25 = vld [vmem:[#allocation4 + $0xe40] ss:$16 sps:$4 sm:$0xff]  }
 0x1bf   :  { %5078 = vmatpush1.bf16.msra.mxu0 %v7483_v40  ;;  %5570 = vmatpush1.bf16.msra.mxu1 %v7486_v63  ;;  %v7570_v40 = vld [vmem:[#allocation4 + $0xe08] ss:$16 sps:$4 sm:$0xff]   ;;  %v7575_v63 = vld [vmem:[#allocation4 + $0xe24] ss:$16 sps:$4 sm:$0xff]  }
 0x1c0   :  { %5079 = vmatprep.subr.bf16.mxu0 %v7491_v0  ;;  %5571 = vmatprep.subr.bf16.mxu1 %v7494_v1  ;;  %v7578_v0 = vld [vmem:[#allocation4 + $0xe2c] ss:$16 sps:$4 sm:$0xff]   ;;  %v210_v1 = vpack.c.bf16 %v136_v44, %v136_v44  ;;  %v7654_v44 = vld [vmem:[#allocation4 + $0xfc8] ss:$16 sps:$4 sm:$0xff]  }
 0x1c3   :  { %5080 = vmatpush1.bf16.msra.mxu0 %v7489_v2  ;;  %5572 = vmatpush1.bf16.msra.mxu1 %v7492_v3  ;;  %v7573_v2 = vld [vmem:[#allocation4 + $0xe20] ss:$16 sps:$4 sm:$0xff]   ;;  %v7576_v3 = vld [vmem:[#allocation4 + $0xe28] ss:$16 sps:$4 sm:$0xff]  }
 0x1c4   :  { %5081 = vmatprep.subr.bf16.mxu0 %v7497_v4  ;;  %5573 = vmatprep.subr.bf16.mxu1 %v7500_v5  ;;  %v7581_v4 = vld [vmem:[#allocation4 + $0xe44] ss:$16 sps:$4 sm:$0xff]   ;;  %v7584_v5 = vld [vmem:[#allocation4 + $0xe4c] ss:$16 sps:$4 sm:$0xff]  }
 0x1c7   :  { %5082 = vmatpush1.bf16.msra.mxu0 %v7495_v6  ;;  %5574 = vmatpush1.bf16.msra.mxu1 %v7498_v7  ;;  %v7582_v6 = vld [vmem:[#allocation4 + $0xe48] ss:$16 sps:$4 sm:$0xff]   ;;  %v7587_v7 = vld [vmem:[#allocation4 + $0xe64] ss:$16 sps:$4 sm:$0xff]  }
 0x1c8   :  { %5083 = vmatprep.subr.bf16.mxu0 %v7503_v8  ;;  %5575 = vmatprep.subr.bf16.mxu1 %v7506_v10  ;;  %v7590_v8 = vld [vmem:[#allocation4 + $0xe6c] ss:$16 sps:$4 sm:$0xff]   ;;  %v7585_v10 = vld [vmem:[#allocation4 + $0xe60] ss:$16 sps:$4 sm:$0xff]  }
 0x1cb   :  { %5084 = vmatpush1.bf16.msra.mxu0 %v7501_v11  ;;  %5576 = vmatpush1.bf16.msra.mxu1 %v7504_v12  ;;  %v7588_v11 = vld [vmem:[#allocation4 + $0xe68] ss:$16 sps:$4 sm:$0xff]   ;;  %v7593_v12 = vld [vmem:[#allocation4 + $0xe84] ss:$16 sps:$4 sm:$0xff]  }
 0x1cc   :  { %5085 = vmatprep.subr.bf16.mxu0 %v7509_v13  ;;  %5577 = vmatprep.subr.bf16.mxu1 %v7512_v14  ;;  %v7596_v13 = vld [vmem:[#allocation4 + $0xe8c] ss:$16 sps:$4 sm:$0xff]   ;;  %v7591_v14 = vld [vmem:[#allocation4 + $0xe80] ss:$16 sps:$4 sm:$0xff]  }
 0x1cf   :  { %5086 = vmatpush1.bf16.msra.mxu0 %v7507_v15  ;;  %5578 = vmatpush1.bf16.msra.mxu1 %v7510_v16  ;;  %v7594_v15 = vld [vmem:[#allocation4 + $0xe88] ss:$16 sps:$4 sm:$0xff]   ;;  %v7599_v16 = vld [vmem:[#allocation4 + $0xea4] ss:$16 sps:$4 sm:$0xff]  }
 0x1d0   :  { %5087 = vmatprep.subr.bf16.mxu0 %v7515_v17  ;;  %5579 = vmatprep.subr.bf16.mxu1 %v7518_v18  ;;  %v7602_v17 = vld [vmem:[#allocation4 + $0xeac] ss:$16 sps:$4 sm:$0xff]   ;;  %v7597_v18 = vld [vmem:[#allocation4 + $0xea0] ss:$16 sps:$4 sm:$0xff]  }
 0x1d3   :  { %5088 = vmatpush1.bf16.msra.mxu0 %v7513_v19  ;;  %5580 = vmatpush1.bf16.msra.mxu1 %v7516_v20  ;;  %v7600_v19 = vld [vmem:[#allocation4 + $0xea8] ss:$16 sps:$4 sm:$0xff]   ;;  %v7605_v20 = vld [vmem:[#allocation4 + $0xec4] ss:$16 sps:$4 sm:$0xff]  }
 0x1d4   :  { %5089 = vmatprep.subr.bf16.mxu0 %v7521_v21  ;;  %5581 = vmatprep.subr.bf16.mxu1 %v7524_v22  ;;  %v7608_v21 = vld [vmem:[#allocation4 + $0xecc] ss:$16 sps:$4 sm:$0xff]   ;;  %v7603_v22 = vld [vmem:[#allocation4 + $0xec0] ss:$16 sps:$4 sm:$0xff]  }
 0x1d7   :  { %5090 = vmatpush1.bf16.msra.mxu0 %v7519_v24  ;;  %5582 = vmatpush1.bf16.msra.mxu1 %v7522_v27  ;;  %v7606_v24 = vld [vmem:[#allocation4 + $0xec8] ss:$16 sps:$4 sm:$0xff]   ;;  %v7611_v27 = vld [vmem:[#allocation4 + $0xee4] ss:$16 sps:$4 sm:$0xff]  }
 0x1d8   :  { %5091 = vmatprep.subr.bf16.mxu0 %v7527_v9  ;;  %5583 = vmatprep.subr.bf16.mxu1 %v7530_v28  ;;  %v7614_v9 = vld [vmem:[#allocation4 + $0xeec] ss:$16 sps:$4 sm:$0xff]   ;;  %v7609_v28 = vld [vmem:[#allocation4 + $0xee0] ss:$16 sps:$4 sm:$0xff]  }
 0x1db   :  { %5092 = vmatpush1.bf16.msra.mxu0 %v7525_v23  ;;  %5584 = vmatpush1.bf16.msra.mxu1 %v7528_v30  ;;  %v7612_v23 = vld [vmem:[#allocation4 + $0xee8] ss:$16 sps:$4 sm:$0xff]   ;;  %v7617_v30 = vld [vmem:[#allocation4 + $0xf04] ss:$16 sps:$4 sm:$0xff]  }
 0x1dc   :  { %5093 = vmatprep.subr.bf16.mxu0 %v7533_v31  ;;  %5585 = vmatprep.subr.bf16.mxu1 %v7536_v33  ;;  %v7620_v31 = vld [vmem:[#allocation4 + $0xf0c] ss:$16 sps:$4 sm:$0xff]   ;;  %v7615_v33 = vld [vmem:[#allocation4 + $0xf00] ss:$16 sps:$4 sm:$0xff]  }
 0x1df   :  { %5094 = vmatpush1.bf16.msra.mxu0 %v7531_v34  ;;  %5586 = vmatpush1.bf16.msra.mxu1 %v7534_v35  ;;  %v7618_v34 = vld [vmem:[#allocation4 + $0xf08] ss:$16 sps:$4 sm:$0xff]   ;;  %v7623_v35 = vld [vmem:[#allocation4 + $0xf24] ss:$16 sps:$4 sm:$0xff]  }
 0x1e0   :  { %5095 = vmatprep.subr.bf16.mxu0 %v7539_v36  ;;  %5587 = vmatprep.subr.bf16.mxu1 %v7542_v37  ;;  %v7626_v36 = vld [vmem:[#allocation4 + $0xf2c] ss:$16 sps:$4 sm:$0xff]   ;;  %v7621_v37 = vld [vmem:[#allocation4 + $0xf20] ss:$16 sps:$4 sm:$0xff]  }
 0x1e3   :  { %5096 = vmatpush1.bf16.msra.mxu0 %v7537_v38  ;;  %5588 = vmatpush1.bf16.msra.mxu1 %v7540_v39  ;;  %v7624_v38 = vld [vmem:[#allocation4 + $0xf28] ss:$16 sps:$4 sm:$0xff]   ;;  %v7629_v39 = vld [vmem:[#allocation4 + $0xf44] ss:$16 sps:$4 sm:$0xff]  }
 0x1e4   :  { %5097 = vmatprep.subr.bf16.mxu0 %v7545_v26  ;;  %5589 = vmatprep.subr.bf16.mxu1 %v7548_v41  ;;  %v7632_v26 = vld [vmem:[#allocation4 + $0xf4c] ss:$16 sps:$4 sm:$0xff]   ;;  %v7627_v41 = vld [vmem:[#allocation4 + $0xf40] ss:$16 sps:$4 sm:$0xff]  }
 0x1e7   :  { %5098 = vmatpush1.bf16.msra.mxu0 %v7543_v42  ;;  %5590 = vmatpush1.bf16.msra.mxu1 %v7546_v45  ;;  %v7630_v42 = vld [vmem:[#allocation4 + $0xf48] ss:$16 sps:$4 sm:$0xff]   ;;  %v7635_v45 = vld [vmem:[#allocation4 + $0xf64] ss:$16 sps:$4 sm:$0xff]  }
 0x1e8   :  { %5099 = vmatprep.subr.bf16.mxu0 %v7551_v29  ;;  %5591 = vmatprep.subr.bf16.mxu1 %v7554_v46  ;;  %v7638_v29 = vld [vmem:[#allocation4 + $0xf6c] ss:$16 sps:$4 sm:$0xff]   ;;  %v7633_v46 = vld [vmem:[#allocation4 + $0xf60] ss:$16 sps:$4 sm:$0xff]  }
 0x1eb   :  { %5100 = vmatpush1.bf16.msra.mxu0 %v7549_v47  ;;  %5592 = vmatpush1.bf16.msra.mxu1 %v7552_v48  ;;  %v7636_v47 = vld [vmem:[#allocation4 + $0xf68] ss:$16 sps:$4 sm:$0xff]   ;;  %v7641_v48 = vld [vmem:[#allocation4 + $0xf84] ss:$16 sps:$4 sm:$0xff]  }
 0x1ec   :  { %5101 = vmatprep.subr.bf16.mxu0 %v7557_v50  ;;  %5593 = vmatprep.subr.bf16.mxu1 %v7560_v51  ;;  %v7644_v50 = vld [vmem:[#allocation4 + $0xf8c] ss:$16 sps:$4 sm:$0xff]   ;;  %v7639_v51 = vld [vmem:[#allocation4 + $0xf80] ss:$16 sps:$4 sm:$0xff]  }
 0x1ef   :  { %5102 = vmatpush1.bf16.msra.mxu0 %v7555_v53  ;;  %5594 = vmatpush1.bf16.msra.mxu1 %v7558_v54  ;;  %v7647_v53 = vld [vmem:[#allocation4 + $0xfa4] ss:$16 sps:$4 sm:$0xff]   ;;  %v7650_v54 = vld [vmem:[#allocation4 + $0xfac] ss:$16 sps:$4 sm:$0xff]  }
 0x1f0   :  { %5103 = vmatprep.subr.bf16.mxu0 %v7563_v55  ;;  %5595 = vmatprep.subr.bf16.mxu1 %v7566_v32  ;;  %v7645_v55 = vld [vmem:[#allocation4 + $0xfa0] ss:$16 sps:$4 sm:$0xff]   ;;  %v7648_v32 = vld [vmem:[#allocation4 + $0xfa8] ss:$16 sps:$4 sm:$0xff]  }
 0x1f3   :  { %5104 = vmatpush1.bf16.msra.mxu0 %v7561_v57  ;;  %5596 = vmatpush1.bf16.msra.mxu1 %v7564_v58  ;;  %v7653_v57 = vld [vmem:[#allocation4 + $0xfc4] ss:$16 sps:$4 sm:$0xff]   ;;  %v7656_v58 = vld [vmem:[#allocation4 + $0xfcc] ss:$16 sps:$4 sm:$0xff]  }
 0x1f4   :  { %5114 = vmatprep.subr.bf16.mxu0 %v7569_v59  ;;  %5606 = vmatprep.subr.bf16.mxu1 %v7572_v60  ;;  %v8278_v59 = vld [vmem:[#allocation2 + $0x20] sm:$0xff] }
 0x1f5   :  { %v7651_v60 = vld [vmem:[#allocation4 + $0xfc0] ss:$16 sps:$4 sm:$0xff]  }
 0x1f6   :  { %5106 = vmatmul.mubr.bf16.vlgmr.msra.gmra.mrb[0].mxu0 %v207_v61  ;;  %5598 = vmatmul.mubr.bf16.vlgmr.msra.gmra.mrb[0].mxu1 %v207_v61  ;;  %v7659_v61 = vld [vmem:[#allocation4 + $0xfe4] ss:$16 sps:$4 sm:$0xff]  }
 0x1f7   :  { %5115 = vmatpush1.bf16.msra.mxu0 %v7567_v62  ;;  %5607 = vmatpush1.bf16.msra.mxu1 %v7570_v40  ;;  %v7662_v62 = vld [vmem:[#allocation4 + $0xfec] ss:$16 sps:$4 sm:$0xff]   ;;  %v8282_v40 = vrot.slane %v8278_v59, %v8213_v49 }
 0x1f8   :  { %5116 = vmatprep.subr.bf16.mxu0 %v7575_v63  ;;  %5608 = vmatprep.subr.bf16.mxu1 %v7578_v0  ;;  %v7657_v63 = vld [vmem:[#allocation4 + $0xfe0] ss:$16 sps:$4 sm:$0xff]   ;;  %v7660_v0 = vld [vmem:[#allocation4 + $0xfe8] ss:$16 sps:$4 sm:$0xff]  }
 0x1f9   :  { %5146 = vmatprep.mubr.bf16.mxu0 %v210_v1  ;;  %5638 = vmatprep.mubr.bf16.mxu1 %v210_v1  ;;  %v7666_v1 = vld [vmem:[#allocation4 + $0x1004] ss:$16 sps:$4 sm:$0xff]  }
 0x1fb   :  { %5117 = vmatpush1.bf16.msra.mxu0 %v7573_v2  ;;  %5609 = vmatpush1.bf16.msra.mxu1 %v7576_v3  ;;  %v7669_v2 = vld [vmem:[#allocation4 + $0x100c] ss:$16 sps:$4 sm:$0xff]   ;;  %v152_v3 = vcombine.high %v8282_v40, %v8282_v40 }
 0x1fc   :  { %5118 = vmatprep.subr.bf16.mxu0 %v7581_v4  ;;  %5610 = vmatprep.subr.bf16.mxu1 %v7584_v5  ;;  %v209_v4 = vpack.c.bf16 %v8272_v56, %v8272_v56  ;;  %v7664_v5 = vld [vmem:[#allocation4 + $0x1000] ss:$16 sps:$4 sm:$0xff]  }
 0x1fd   :  { %v7676_v56 = vld [vmem:[#allocation4 + $0x1040] ss:$16 sps:$4 sm:$0xff]  }
 0x1ff   :  { %5119 = vmatpush1.bf16.msra.mxu0 %v7579_v25  ;;  %5611 = vmatpush1.bf16.msra.mxu1 %v7582_v6  ;;  %v7667_v25 = vld [vmem:[#allocation4 + $0x1008] ss:$16 sps:$4 sm:$0xff]   ;;  %v7672_v6 = vld [vmem:[#allocation4 + $0x1024] ss:$16 sps:$4 sm:$0xff]  }
 0x200   :  { %5120 = vmatprep.subr.bf16.mxu0 %v7587_v7  ;;  %5612 = vmatprep.subr.bf16.mxu1 %v7590_v8  ;;  %v7675_v7 = vld [vmem:[#allocation4 + $0x102c] ss:$16 sps:$4 sm:$0xff]   ;;  %v212_v8 = vpack.c.bf16 %v152_v3, %v152_v3  ;;  %v7748_v3 = vld [vmem:[#allocation4 + $0x11c0] ss:$16 sps:$4 sm:$0xff]  }
 0x203   :  { %5121 = vmatpush1.bf16.msra.mxu0 %v7585_v10  ;;  %5613 = vmatpush1.bf16.msra.mxu1 %v7588_v11  ;;  %v7670_v10 = vld [vmem:[#allocation4 + $0x1020] ss:$16 sps:$4 sm:$0xff]   ;;  %v7673_v11 = vld [vmem:[#allocation4 + $0x1028] ss:$16 sps:$4 sm:$0xff]  }
 0x204   :  { %5122 = vmatprep.subr.bf16.mxu0 %v7593_v12  ;;  %5614 = vmatprep.subr.bf16.mxu1 %v7596_v13  ;;  %v7678_v12 = vld [vmem:[#allocation4 + $0x1044] ss:$16 sps:$4 sm:$0xff]   ;;  %v7681_v13 = vld [vmem:[#allocation4 + $0x104c] ss:$16 sps:$4 sm:$0xff]  }
 0x207   :  { %5123 = vmatpush1.bf16.msra.mxu0 %v7591_v14  ;;  %5615 = vmatpush1.bf16.msra.mxu1 %v7594_v15  ;;  %v7679_v14 = vld [vmem:[#allocation4 + $0x1048] ss:$16 sps:$4 sm:$0xff]   ;;  %v7684_v15 = vld [vmem:[#allocation4 + $0x1064] ss:$16 sps:$4 sm:$0xff]  }
 0x208   :  { %5124 = vmatprep.subr.bf16.mxu0 %v7599_v16  ;;  %5616 = vmatprep.subr.bf16.mxu1 %v7602_v17  ;;  %v7687_v16 = vld [vmem:[#allocation4 + $0x106c] ss:$16 sps:$4 sm:$0xff]   ;;  %v7682_v17 = vld [vmem:[#allocation4 + $0x1060] ss:$16 sps:$4 sm:$0xff]  }
 0x20b   :  { %5125 = vmatpush1.bf16.msra.mxu0 %v7597_v18  ;;  %5617 = vmatpush1.bf16.msra.mxu1 %v7600_v19  ;;  %v7685_v18 = vld [vmem:[#allocation4 + $0x1068] ss:$16 sps:$4 sm:$0xff]   ;;  %v7690_v19 = vld [vmem:[#allocation4 + $0x1084] ss:$16 sps:$4 sm:$0xff]  }
 0x20c   :  { %5126 = vmatprep.subr.bf16.mxu0 %v7605_v20  ;;  %5618 = vmatprep.subr.bf16.mxu1 %v7608_v21  ;;  %v7693_v20 = vld [vmem:[#allocation4 + $0x108c] ss:$16 sps:$4 sm:$0xff]   ;;  %v7688_v21 = vld [vmem:[#allocation4 + $0x1080] ss:$16 sps:$4 sm:$0xff]  }
 0x20f   :  { %5127 = vmatpush1.bf16.msra.mxu0 %v7603_v22  ;;  %5619 = vmatpush1.bf16.msra.mxu1 %v7606_v24  ;;  %v7691_v22 = vld [vmem:[#allocation4 + $0x1088] ss:$16 sps:$4 sm:$0xff]   ;;  %v7696_v24 = vld [vmem:[#allocation4 + $0x10a4] ss:$16 sps:$4 sm:$0xff]  }
 0x210   :  { %5128 = vmatprep.subr.bf16.mxu0 %v7611_v27  ;;  %5620 = vmatprep.subr.bf16.mxu1 %v7614_v9  ;;  %v7699_v27 = vld [vmem:[#allocation4 + $0x10ac] ss:$16 sps:$4 sm:$0xff]   ;;  %v7694_v9 = vld [vmem:[#allocation4 + $0x10a0] ss:$16 sps:$4 sm:$0xff]  }
 0x213   :  { %5129 = vmatpush1.bf16.msra.mxu0 %v7609_v28  ;;  %5621 = vmatpush1.bf16.msra.mxu1 %v7612_v23  ;;  %v7697_v28 = vld [vmem:[#allocation4 + $0x10a8] ss:$16 sps:$4 sm:$0xff]   ;;  %v7702_v23 = vld [vmem:[#allocation4 + $0x10c4] ss:$16 sps:$4 sm:$0xff]  }
 0x214   :  { %5130 = vmatprep.subr.bf16.mxu0 %v7617_v30  ;;  %5622 = vmatprep.subr.bf16.mxu1 %v7620_v31  ;;  %v7705_v30 = vld [vmem:[#allocation4 + $0x10cc] ss:$16 sps:$4 sm:$0xff]   ;;  %v7700_v31 = vld [vmem:[#allocation4 + $0x10c0] ss:$16 sps:$4 sm:$0xff]  }
 0x217   :  { %5131 = vmatpush1.bf16.msra.mxu0 %v7615_v33  ;;  %5623 = vmatpush1.bf16.msra.mxu1 %v7618_v34  ;;  %v7703_v33 = vld [vmem:[#allocation4 + $0x10c8] ss:$16 sps:$4 sm:$0xff]   ;;  %v7708_v34 = vld [vmem:[#allocation4 + $0x10e4] ss:$16 sps:$4 sm:$0xff]  }
 0x218   :  { %5132 = vmatprep.subr.bf16.mxu0 %v7623_v35  ;;  %5624 = vmatprep.subr.bf16.mxu1 %v7626_v36  ;;  %v7711_v35 = vld [vmem:[#allocation4 + $0x10ec] ss:$16 sps:$4 sm:$0xff]   ;;  %v7706_v36 = vld [vmem:[#allocation4 + $0x10e0] ss:$16 sps:$4 sm:$0xff]  }
 0x21b   :  { %5133 = vmatpush1.bf16.msra.mxu0 %v7621_v37  ;;  %5625 = vmatpush1.bf16.msra.mxu1 %v7624_v38  ;;  %v7709_v37 = vld [vmem:[#allocation4 + $0x10e8] ss:$16 sps:$4 sm:$0xff]   ;;  %v7714_v38 = vld [vmem:[#allocation4 + $0x1104] ss:$16 sps:$4 sm:$0xff]  }
 0x21c   :  { %5134 = vmatprep.subr.bf16.mxu0 %v7629_v39  ;;  %5626 = vmatprep.subr.bf16.mxu1 %v7632_v26  ;;  %v7717_v39 = vld [vmem:[#allocation4 + $0x110c] ss:$16 sps:$4 sm:$0xff]   ;;  %v7712_v26 = vld [vmem:[#allocation4 + $0x1100] ss:$16 sps:$4 sm:$0xff]  }
 0x21f   :  { %5135 = vmatpush1.bf16.msra.mxu0 %v7627_v41  ;;  %5627 = vmatpush1.bf16.msra.mxu1 %v7630_v42  ;;  %v7715_v41 = vld [vmem:[#allocation4 + $0x1108] ss:$16 sps:$4 sm:$0xff]   ;;  %v7720_v42 = vld [vmem:[#allocation4 + $0x1124] ss:$16 sps:$4 sm:$0xff]  }
 0x220   :  { %5136 = vmatprep.subr.bf16.mxu0 %v7635_v45  ;;  %5628 = vmatprep.subr.bf16.mxu1 %v7638_v29  ;;  %v7723_v45 = vld [vmem:[#allocation4 + $0x112c] ss:$16 sps:$4 sm:$0xff]   ;;  %v7718_v29 = vld [vmem:[#allocation4 + $0x1120] ss:$16 sps:$4 sm:$0xff]  }
 0x223   :  { %5137 = vmatpush1.bf16.msra.mxu0 %v7633_v46  ;;  %5629 = vmatpush1.bf16.msra.mxu1 %v7636_v47  ;;  %v7721_v46 = vld [vmem:[#allocation4 + $0x1128] ss:$16 sps:$4 sm:$0xff]   ;;  %v7726_v47 = vld [vmem:[#allocation4 + $0x1144] ss:$16 sps:$4 sm:$0xff]  }
 0x224   :  { %5138 = vmatprep.subr.bf16.mxu0 %v7641_v48  ;;  %5630 = vmatprep.subr.bf16.mxu1 %v7644_v50  ;;  %v7729_v48 = vld [vmem:[#allocation4 + $0x114c] ss:$16 sps:$4 sm:$0xff]   ;;  %v7724_v50 = vld [vmem:[#allocation4 + $0x1140] ss:$16 sps:$4 sm:$0xff]  }
 0x227   :  { %5139 = vmatpush1.bf16.msra.mxu0 %v7639_v51  ;;  %5631 = vmatpush1.bf16.msra.mxu1 %v7642_v52  ;;  %v7727_v51 = vld [vmem:[#allocation4 + $0x1148] ss:$16 sps:$4 sm:$0xff]   ;;  %v7732_v52 = vld [vmem:[#allocation4 + $0x1164] ss:$16 sps:$4 sm:$0xff]  }
 0x228   :  { %5140 = vmatprep.subr.bf16.mxu0 %v7647_v53  ;;  %5632 = vmatprep.subr.bf16.mxu1 %v7650_v54  ;;  %v7735_v53 = vld [vmem:[#allocation4 + $0x116c] ss:$16 sps:$4 sm:$0xff]   ;;  %v7730_v54 = vld [vmem:[#allocation4 + $0x1160] ss:$16 sps:$4 sm:$0xff]  }
 0x22b   :  { %5141 = vmatpush1.bf16.msra.mxu0 %v7645_v55  ;;  %5633 = vmatpush1.bf16.msra.mxu1 %v7648_v32  ;;  %v7733_v55 = vld [vmem:[#allocation4 + $0x1168] ss:$16 sps:$4 sm:$0xff]   ;;  %v7738_v32 = vld [vmem:[#allocation4 + $0x1184] ss:$16 sps:$4 sm:$0xff]  }
 0x22c   :  { %5142 = vmatprep.subr.bf16.mxu0 %v7653_v57  ;;  %5634 = vmatprep.subr.bf16.mxu1 %v7656_v58  ;;  %v7741_v57 = vld [vmem:[#allocation4 + $0x118c] ss:$16 sps:$4 sm:$0xff]   ;;  %v7736_v58 = vld [vmem:[#allocation4 + $0x1180] ss:$16 sps:$4 sm:$0xff]  }
 0x22f   :  { %5143 = vmatpush1.bf16.msra.mxu0 %v7651_v60  ;;  %5635 = vmatpush1.bf16.msra.mxu1 %v7654_v44  ;;  %v7739_v60 = vld [vmem:[#allocation4 + $0x1188] ss:$16 sps:$4 sm:$0xff]   ;;  %v7744_v44 = vld [vmem:[#allocation4 + $0x11a4] ss:$16 sps:$4 sm:$0xff]  }
 0x230   :  { %5144 = vmatprep.subr.bf16.mxu0 %v7659_v61  ;;  %5636 = vmatprep.subr.bf16.mxu1 %v7662_v62  ;;  %v7747_v61 = vld [vmem:[#allocation4 + $0x11ac] ss:$16 sps:$4 sm:$0xff]   ;;  %v7742_v62 = vld [vmem:[#allocation4 + $0x11a0] ss:$16 sps:$4 sm:$0xff]  }
 0x233   :  { %5145 = vmatpush1.bf16.msra.mxu0 %v7657_v63  ;;  %5637 = vmatpush1.bf16.msra.mxu1 %v7660_v0  ;;  %v7745_v63 = vld [vmem:[#allocation4 + $0x11a8] ss:$16 sps:$4 sm:$0xff]   ;;  %v7750_v0 = vld [vmem:[#allocation4 + $0x11c4] ss:$16 sps:$4 sm:$0xff]  }
 0x234   :  { %5155 = vmatprep.subr.bf16.mxu0 %v7666_v1  ;;  %5647 = vmatprep.subr.bf16.mxu1 %v7669_v2  ;;  %v7753_v1 = vld [vmem:[#allocation4 + $0x11cc] ss:$16 sps:$4 sm:$0xff]   ;;  %v137_v2 = vcombine.high %v8278_v59, %v8278_v59 }
 0x236   :  { %5147 = vmatmul.mubr.bf16.vlgmr.msra.gmra.mrb[0].mxu0 %v209_v4  ;;  %5639 = vmatmul.mubr.bf16.vlgmr.msra.gmra.mrb[0].mxu1 %v209_v4  ;;  %v7751_v4 = vld [vmem:[#allocation4 + $0x11c8] ss:$16 sps:$4 sm:$0xff]  }
 0x237   :  { %5156 = vmatpush1.bf16.msra.mxu0 %v7664_v5  ;;  %5648 = vmatpush1.bf16.msra.mxu1 %v7667_v25  ;;  %v7756_v5 = vld [vmem:[#allocation4 + $0x11e4] ss:$16 sps:$4 sm:$0xff]   ;;  %v7759_v25 = vld [vmem:[#allocation4 + $0x11ec] ss:$16 sps:$4 sm:$0xff]  }
 0x238   :  { %5157 = vmatprep.subr.bf16.mxu0 %v7672_v6  ;;  %5649 = vmatprep.subr.bf16.mxu1 %v7675_v7  ;;  %v8291_v6 = vrot.slane %v137_v2, %v8213_v49  ;;  %v7754_v7 = vld [vmem:[#allocation4 + $0x11e0] ss:$16 sps:$4 sm:$0xff]   ;;  %v7835_v2 = vld [vmem:[#allocation4 + $0x1388] ss:$16 sps:$4 sm:$0xff]  }
 0x239   :  { %5187 = vmatprep.mubr.bf16.mxu0 %v212_v8  ;;  %5679 = vmatprep.mubr.bf16.mxu1 %v212_v8  ;;  %v7757_v8 = vld [vmem:[#allocation4 + $0x11e8] ss:$16 sps:$4 sm:$0xff]  }
 0x23a   :  { %v153_v59 = vcombine.high %v8291_v6, %v8291_v6 }
 0x23b   :  { %5158 = vmatpush1.bf16.msra.mxu0 %v7670_v10  ;;  %5650 = vmatpush1.bf16.msra.mxu1 %v7673_v11  ;;  %v7762_v10 = vld [vmem:[#allocation4 + $0x1204] ss:$16 sps:$4 sm:$0xff]   ;;  %v7765_v11 = vld [vmem:[#allocation4 + $0x120c] ss:$16 sps:$4 sm:$0xff]  }
 0x23c   :  { %5159 = vmatprep.subr.bf16.mxu0 %v7678_v12  ;;  %5651 = vmatprep.subr.bf16.mxu1 %v7681_v13  ;;  %v211_v12 = vpack.c.bf16 %v8282_v40, %v8282_v40  ;;  %v7760_v13 = vld [vmem:[#allocation4 + $0x1200] ss:$16 sps:$4 sm:$0xff]  }
 0x23d   :  { %v7772_v40 = vld [vmem:[#allocation4 + $0x1240] ss:$16 sps:$4 sm:$0xff]  }
 0x23f   :  { %5160 = vmatpush1.bf16.msra.mxu0 %v7676_v56  ;;  %5652 = vmatpush1.bf16.msra.mxu1 %v7679_v14  ;;  %v7763_v56 = vld [vmem:[#allocation4 + $0x1208] ss:$16 sps:$4 sm:$0xff]   ;;  %v7768_v14 = vld [vmem:[#allocation4 + $0x1224] ss:$16 sps:$4 sm:$0xff]  }
 0x240   :  { %5161 = vmatprep.subr.bf16.mxu0 %v7684_v15  ;;  %5653 = vmatprep.subr.bf16.mxu1 %v7687_v16  ;;  %v7771_v15 = vld [vmem:[#allocation4 + $0x122c] ss:$16 sps:$4 sm:$0xff]   ;;  %v214_v16 = vpack.c.bf16 %v153_v59, %v153_v59  ;;  %v7847_v59 = vld [vmem:[#allocation4 + $0x13c8] ss:$16 sps:$4 sm:$0xff]  }
 0x243   :  { %5162 = vmatpush1.bf16.msra.mxu0 %v7682_v17  ;;  %5654 = vmatpush1.bf16.msra.mxu1 %v7685_v18  ;;  %v7766_v17 = vld [vmem:[#allocation4 + $0x1220] ss:$16 sps:$4 sm:$0xff]   ;;  %v7769_v18 = vld [vmem:[#allocation4 + $0x1228] ss:$16 sps:$4 sm:$0xff]  }
 0x244   :  { %5163 = vmatprep.subr.bf16.mxu0 %v7690_v19  ;;  %5655 = vmatprep.subr.bf16.mxu1 %v7693_v20  ;;  %v7774_v19 = vld [vmem:[#allocation4 + $0x1244] ss:$16 sps:$4 sm:$0xff]   ;;  %v7777_v20 = vld [vmem:[#allocation4 + $0x124c] ss:$16 sps:$4 sm:$0xff]  }
 0x247   :  { %5164 = vmatpush1.bf16.msra.mxu0 %v7688_v21  ;;  %5656 = vmatpush1.bf16.msra.mxu1 %v7691_v22  ;;  %v7775_v21 = vld [vmem:[#allocation4 + $0x1248] ss:$16 sps:$4 sm:$0xff]   ;;  %v7780_v22 = vld [vmem:[#allocation4 + $0x1264] ss:$16 sps:$4 sm:$0xff]  }
 0x248   :  { %5165 = vmatprep.subr.bf16.mxu0 %v7696_v24  ;;  %5657 = vmatprep.subr.bf16.mxu1 %v7699_v27  ;;  %v7783_v24 = vld [vmem:[#allocation4 + $0x126c] ss:$16 sps:$4 sm:$0xff]   ;;  %v7778_v27 = vld [vmem:[#allocation4 + $0x1260] ss:$16 sps:$4 sm:$0xff]  }
 0x24b   :  { %5166 = vmatpush1.bf16.msra.mxu0 %v7694_v9  ;;  %5658 = vmatpush1.bf16.msra.mxu1 %v7697_v28  ;;  %v7781_v9 = vld [vmem:[#allocation4 + $0x1268] ss:$16 sps:$4 sm:$0xff]   ;;  %v7786_v28 = vld [vmem:[#allocation4 + $0x1284] ss:$16 sps:$4 sm:$0xff]  }
 0x24c   :  { %5167 = vmatprep.subr.bf16.mxu0 %v7702_v23  ;;  %5659 = vmatprep.subr.bf16.mxu1 %v7705_v30  ;;  %v7789_v23 = vld [vmem:[#allocation4 + $0x128c] ss:$16 sps:$4 sm:$0xff]   ;;  %v7784_v30 = vld [vmem:[#allocation4 + $0x1280] ss:$16 sps:$4 sm:$0xff]  }
 0x24f   :  { %5168 = vmatpush1.bf16.msra.mxu0 %v7700_v31  ;;  %5660 = vmatpush1.bf16.msra.mxu1 %v7703_v33  ;;  %v7787_v31 = vld [vmem:[#allocation4 + $0x1288] ss:$16 sps:$4 sm:$0xff]   ;;  %v7792_v33 = vld [vmem:[#allocation4 + $0x12a4] ss:$16 sps:$4 sm:$0xff]  }
 0x250   :  { %5169 = vmatprep.subr.bf16.mxu0 %v7708_v34  ;;  %5661 = vmatprep.subr.bf16.mxu1 %v7711_v35  ;;  %v7795_v34 = vld [vmem:[#allocation4 + $0x12ac] ss:$16 sps:$4 sm:$0xff]   ;;  %v7790_v35 = vld [vmem:[#allocation4 + $0x12a0] ss:$16 sps:$4 sm:$0xff]  }
 0x253   :  { %5170 = vmatpush1.bf16.msra.mxu0 %v7706_v36  ;;  %5662 = vmatpush1.bf16.msra.mxu1 %v7709_v37  ;;  %v7793_v36 = vld [vmem:[#allocation4 + $0x12a8] ss:$16 sps:$4 sm:$0xff]   ;;  %v7798_v37 = vld [vmem:[#allocation4 + $0x12c4] ss:$16 sps:$4 sm:$0xff]  }
 0x254   :  { %5171 = vmatprep.subr.bf16.mxu0 %v7714_v38  ;;  %5663 = vmatprep.subr.bf16.mxu1 %v7717_v39  ;;  %v7801_v38 = vld [vmem:[#allocation4 + $0x12cc] ss:$16 sps:$4 sm:$0xff]   ;;  %v7796_v39 = vld [vmem:[#allocation4 + $0x12c0] ss:$16 sps:$4 sm:$0xff]  }
 0x257   :  { %5172 = vmatpush1.bf16.msra.mxu0 %v7712_v26  ;;  %5664 = vmatpush1.bf16.msra.mxu1 %v7715_v41  ;;  %v7799_v26 = vld [vmem:[#allocation4 + $0x12c8] ss:$16 sps:$4 sm:$0xff]   ;;  %v7804_v41 = vld [vmem:[#allocation4 + $0x12e4] ss:$16 sps:$4 sm:$0xff]  }
 0x258   :  { %5173 = vmatprep.subr.bf16.mxu0 %v7720_v42  ;;  %5665 = vmatprep.subr.bf16.mxu1 %v7723_v45  ;;  %v7807_v42 = vld [vmem:[#allocation4 + $0x12ec] ss:$16 sps:$4 sm:$0xff]   ;;  %v7802_v45 = vld [vmem:[#allocation4 + $0x12e0] ss:$16 sps:$4 sm:$0xff]  }
 0x25b   :  { %5174 = vmatpush1.bf16.msra.mxu0 %v7718_v29  ;;  %5666 = vmatpush1.bf16.msra.mxu1 %v7721_v46  ;;  %v7805_v29 = vld [vmem:[#allocation4 + $0x12e8] ss:$16 sps:$4 sm:$0xff]   ;;  %v7810_v46 = vld [vmem:[#allocation4 + $0x1304] ss:$16 sps:$4 sm:$0xff]  }
 0x25c   :  { %5175 = vmatprep.subr.bf16.mxu0 %v7726_v47  ;;  %5667 = vmatprep.subr.bf16.mxu1 %v7729_v48  ;;  %v7813_v47 = vld [vmem:[#allocation4 + $0x130c] ss:$16 sps:$4 sm:$0xff]   ;;  %v7808_v48 = vld [vmem:[#allocation4 + $0x1300] ss:$16 sps:$4 sm:$0xff]  }
 0x25f   :  { %5176 = vmatpush1.bf16.msra.mxu0 %v7724_v50  ;;  %5668 = vmatpush1.bf16.msra.mxu1 %v7727_v51  ;;  %v7811_v50 = vld [vmem:[#allocation4 + $0x1308] ss:$16 sps:$4 sm:$0xff]   ;;  %v7816_v51 = vld [vmem:[#allocation4 + $0x1324] ss:$16 sps:$4 sm:$0xff]  }
 0x260   :  { %5177 = vmatprep.subr.bf16.mxu0 %v7732_v52  ;;  %5669 = vmatprep.subr.bf16.mxu1 %v7735_v53  ;;  %v7819_v52 = vld [vmem:[#allocation4 + $0x132c] ss:$16 sps:$4 sm:$0xff]   ;;  %v7814_v53 = vld [vmem:[#allocation4 + $0x1320] ss:$16 sps:$4 sm:$0xff]  }
 0x263   :  { %5178 = vmatpush1.bf16.msra.mxu0 %v7730_v54  ;;  %5670 = vmatpush1.bf16.msra.mxu1 %v7733_v55  ;;  %v7817_v54 = vld [vmem:[#allocation4 + $0x1328] ss:$16 sps:$4 sm:$0xff]   ;;  %v7822_v55 = vld [vmem:[#allocation4 + $0x1344] ss:$16 sps:$4 sm:$0xff]  }
 0x264   :  { %5179 = vmatprep.subr.bf16.mxu0 %v7738_v32  ;;  %5671 = vmatprep.subr.bf16.mxu1 %v7741_v57  ;;  %v7825_v32 = vld [vmem:[#allocation4 + $0x134c] ss:$16 sps:$4 sm:$0xff]   ;;  %v7820_v57 = vld [vmem:[#allocation4 + $0x1340] ss:$16 sps:$4 sm:$0xff]  }
 0x267   :  { %5180 = vmatpush1.bf16.msra.mxu0 %v7736_v58  ;;  %5672 = vmatpush1.bf16.msra.mxu1 %v7739_v60  ;;  %v7823_v58 = vld [vmem:[#allocation4 + $0x1348] ss:$16 sps:$4 sm:$0xff]   ;;  %v7828_v60 = vld [vmem:[#allocation4 + $0x1364] ss:$16 sps:$4 sm:$0xff]  }
 0x268   :  { %5181 = vmatprep.subr.bf16.mxu0 %v7744_v44  ;;  %5673 = vmatprep.subr.bf16.mxu1 %v7747_v61  ;;  %v7831_v44 = vld [vmem:[#allocation4 + $0x136c] ss:$16 sps:$4 sm:$0xff]   ;;  %v7826_v61 = vld [vmem:[#allocation4 + $0x1360] ss:$16 sps:$4 sm:$0xff]  }
 0x26b   :  { %5182 = vmatpush1.bf16.msra.mxu0 %v7742_v62  ;;  %5674 = vmatpush1.bf16.msra.mxu1 %v7745_v63  ;;  %v7829_v62 = vld [vmem:[#allocation4 + $0x1368] ss:$16 sps:$4 sm:$0xff]   ;;  %v7834_v63 = vld [vmem:[#allocation4 + $0x1384] ss:$16 sps:$4 sm:$0xff]  }
 0x26c   :  { %5183 = vmatprep.subr.bf16.mxu0 %v7750_v0  ;;  %5675 = vmatprep.subr.bf16.mxu1 %v7753_v1  ;;  %v7837_v0 = vld [vmem:[#allocation4 + $0x138c] ss:$16 sps:$4 sm:$0xff]   ;;  %v7832_v1 = vld [vmem:[#allocation4 + $0x1380] ss:$16 sps:$4 sm:$0xff]  }
 0x26f   :  { %5184 = vmatpush1.bf16.msra.mxu0 %v7748_v3  ;;  %5676 = vmatpush1.bf16.msra.mxu1 %v7751_v4  ;;  %v7840_v3 = vld [vmem:[#allocation4 + $0x13a4] ss:$16 sps:$4 sm:$0xff]   ;;  %v7843_v4 = vld [vmem:[#allocation4 + $0x13ac] ss:$16 sps:$4 sm:$0xff]  }
 0x270   :  { %5185 = vmatprep.subr.bf16.mxu0 %v7756_v5  ;;  %5677 = vmatprep.subr.bf16.mxu1 %v7759_v25  ;;  %v7838_v5 = vld [vmem:[#allocation4 + $0x13a0] ss:$16 sps:$4 sm:$0xff]   ;;  %v7841_v25 = vld [vmem:[#allocation4 + $0x13a8] ss:$16 sps:$4 sm:$0xff]  }
 0x273   :  { %5186 = vmatpush1.bf16.msra.mxu0 %v7754_v7  ;;  %5678 = vmatpush1.bf16.msra.mxu1 %v7757_v8  ;;  %v7846_v7 = vld [vmem:[#allocation4 + $0x13c4] ss:$16 sps:$4 sm:$0xff]   ;;  %v7849_v8 = vld [vmem:[#allocation4 + $0x13cc] ss:$16 sps:$4 sm:$0xff]  }
 0x274   :  { %5196 = vmatprep.subr.bf16.mxu0 %v7762_v10  ;;  %5688 = vmatprep.subr.bf16.mxu1 %v7765_v11  ;;  %v8297_v10 = vld [vmem:[#allocation2 + $0x28] sm:$0xff]  ;;  %v7844_v11 = vld [vmem:[#allocation4 + $0x13c0] ss:$16 sps:$4 sm:$0xff]  }
 0x276   :  { %5188 = vmatmul.mubr.bf16.vlgmr.msra.gmra.mrb[0].mxu0 %v211_v12  ;;  %5680 = vmatmul.mubr.bf16.vlgmr.msra.gmra.mrb[0].mxu1 %v211_v12  ;;  %v7852_v12 = vld [vmem:[#allocation4 + $0x13e4] ss:$16 sps:$4 sm:$0xff]  }
 0x277   :  { %5197 = vmatpush1.bf16.msra.mxu0 %v7760_v13  ;;  %5689 = vmatpush1.bf16.msra.mxu1 %v7763_v56  ;;  %v7855_v13 = vld [vmem:[#allocation4 + $0x13ec] ss:$16 sps:$4 sm:$0xff]   ;;  %v8301_v56 = vrot.slane %v8297_v10, %v8213_v49 }
 0x278   :  { %5198 = vmatprep.subr.bf16.mxu0 %v7768_v14  ;;  %5690 = vmatprep.subr.bf16.mxu1 %v7771_v15  ;;  %v7850_v14 = vld [vmem:[#allocation4 + $0x13e0] ss:$16 sps:$4 sm:$0xff]   ;;  %v7853_v15 = vld [vmem:[#allocation4 + $0x13e8] ss:$16 sps:$4 sm:$0xff]  }
 0x279   :  { %5228 = vmatprep.mubr.bf16.mxu0 %v214_v16  ;;  %5720 = vmatprep.mubr.bf16.mxu1 %v214_v16  ;;  %v7859_v16 = vld [vmem:[#allocation4 + $0x1404] ss:$16 sps:$4 sm:$0xff]  }
 0x27b   :  { %5199 = vmatpush1.bf16.msra.mxu0 %v7766_v17  ;;  %5691 = vmatpush1.bf16.msra.mxu1 %v7769_v18  ;;  %v7862_v17 = vld [vmem:[#allocation4 + $0x140c] ss:$16 sps:$4 sm:$0xff]   ;;  %v169_v18 = vcombine.high %v8301_v56, %v8301_v56 }
 0x27c   :  { %5200 = vmatprep.subr.bf16.mxu0 %v7774_v19  ;;  %5692 = vmatprep.subr.bf16.mxu1 %v7777_v20  ;;  %v213_v19 = vpack.c.bf16 %v8291_v6, %v8291_v6  ;;  %v7857_v20 = vld [vmem:[#allocation4 + $0x1400] ss:$16 sps:$4 sm:$0xff]  }
 0x27d   :  { %v7869_v6 = vld [vmem:[#allocation4 + $0x1440] ss:$16 sps:$4 sm:$0xff]  }
 0x27f   :  { %5201 = vmatpush1.bf16.msra.mxu0 %v7772_v40  ;;  %5693 = vmatpush1.bf16.msra.mxu1 %v7775_v21  ;;  %v7860_v40 = vld [vmem:[#allocation4 + $0x1408] ss:$16 sps:$4 sm:$0xff]   ;;  %v7865_v21 = vld [vmem:[#allocation4 + $0x1424] ss:$16 sps:$4 sm:$0xff]  }
 0x280   :  { %5202 = vmatprep.subr.bf16.mxu0 %v7780_v22  ;;  %5694 = vmatprep.subr.bf16.mxu1 %v7783_v24  ;;  %v7868_v22 = vld [vmem:[#allocation4 + $0x142c] ss:$16 sps:$4 sm:$0xff]   ;;  %v216_v24 = vpack.c.bf16 %v169_v18, %v169_v18  ;;  %v7941_v18 = vld [vmem:[#allocation4 + $0x15c0] ss:$16 sps:$4 sm:$0xff]  }
 0x283   :  { %5203 = vmatpush1.bf16.msra.mxu0 %v7778_v27  ;;  %5695 = vmatpush1.bf16.msra.mxu1 %v7781_v9  ;;  %v7863_v27 = vld [vmem:[#allocation4 + $0x1420] ss:$16 sps:$4 sm:$0xff]   ;;  %v7866_v9 = vld [vmem:[#allocation4 + $0x1428] ss:$16 sps:$4 sm:$0xff]  }
 0x284   :  { %5204 = vmatprep.subr.bf16.mxu0 %v7786_v28  ;;  %5696 = vmatprep.subr.bf16.mxu1 %v7789_v23  ;;  %v7871_v28 = vld [vmem:[#allocation4 + $0x1444] ss:$16 sps:$4 sm:$0xff]   ;;  %v7874_v23 = vld [vmem:[#allocation4 + $0x144c] ss:$16 sps:$4 sm:$0xff]  }
 0x287   :  { %5205 = vmatpush1.bf16.msra.mxu0 %v7784_v30  ;;  %5697 = vmatpush1.bf16.msra.mxu1 %v7787_v31  ;;  %v7872_v30 = vld [vmem:[#allocation4 + $0x1448] ss:$16 sps:$4 sm:$0xff]   ;;  %v7877_v31 = vld [vmem:[#allocation4 + $0x1464] ss:$16 sps:$4 sm:$0xff]  }
 0x288   :  { %5206 = vmatprep.subr.bf16.mxu0 %v7792_v33  ;;  %5698 = vmatprep.subr.bf16.mxu1 %v7795_v34  ;;  %v7880_v33 = vld [vmem:[#allocation4 + $0x146c] ss:$16 sps:$4 sm:$0xff]   ;;  %v7875_v34 = vld [vmem:[#allocation4 + $0x1460] ss:$16 sps:$4 sm:$0xff]  }
 0x28b   :  { %5207 = vmatpush1.bf16.msra.mxu0 %v7790_v35  ;;  %5699 = vmatpush1.bf16.msra.mxu1 %v7793_v36  ;;  %v7878_v35 = vld [vmem:[#allocation4 + $0x1468] ss:$16 sps:$4 sm:$0xff]   ;;  %v7883_v36 = vld [vmem:[#allocation4 + $0x1484] ss:$16 sps:$4 sm:$0xff]  }
 0x28c   :  { %5208 = vmatprep.subr.bf16.mxu0 %v7798_v37  ;;  %5700 = vmatprep.subr.bf16.mxu1 %v7801_v38  ;;  %v7886_v37 = vld [vmem:[#allocation4 + $0x148c] ss:$16 sps:$4 sm:$0xff]   ;;  %v7881_v38 = vld [vmem:[#allocation4 + $0x1480] ss:$16 sps:$4 sm:$0xff]  }
 0x28f   :  { %5209 = vmatpush1.bf16.msra.mxu0 %v7796_v39  ;;  %5701 = vmatpush1.bf16.msra.mxu1 %v7799_v26  ;;  %v7884_v39 = vld [vmem:[#allocation4 + $0x1488] ss:$16 sps:$4 sm:$0xff]   ;;  %v7889_v26 = vld [vmem:[#allocation4 + $0x14a4] ss:$16 sps:$4 sm:$0xff]  }
 0x290   :  { %5210 = vmatprep.subr.bf16.mxu0 %v7804_v41  ;;  %5702 = vmatprep.subr.bf16.mxu1 %v7807_v42  ;;  %v7892_v41 = vld [vmem:[#allocation4 + $0x14ac] ss:$16 sps:$4 sm:$0xff]   ;;  %v7887_v42 = vld [vmem:[#allocation4 + $0x14a0] ss:$16 sps:$4 sm:$0xff]  }
 0x293   :  { %5211 = vmatpush1.bf16.msra.mxu0 %v7802_v45  ;;  %5703 = vmatpush1.bf16.msra.mxu1 %v7805_v29  ;;  %v7890_v45 = vld [vmem:[#allocation4 + $0x14a8] ss:$16 sps:$4 sm:$0xff]   ;;  %v7895_v29 = vld [vmem:[#allocation4 + $0x14c4] ss:$16 sps:$4 sm:$0xff]  }
 0x294   :  { %5212 = vmatprep.subr.bf16.mxu0 %v7810_v46  ;;  %5704 = vmatprep.subr.bf16.mxu1 %v7813_v47  ;;  %v7898_v46 = vld [vmem:[#allocation4 + $0x14cc] ss:$16 sps:$4 sm:$0xff]   ;;  %v7893_v47 = vld [vmem:[#allocation4 + $0x14c0] ss:$16 sps:$4 sm:$0xff]  }
 0x297   :  { %5213 = vmatpush1.bf16.msra.mxu0 %v7808_v48  ;;  %5705 = vmatpush1.bf16.msra.mxu1 %v7811_v50  ;;  %v7896_v48 = vld [vmem:[#allocation4 + $0x14c8] ss:$16 sps:$4 sm:$0xff]   ;;  %v7901_v50 = vld [vmem:[#allocation4 + $0x14e4] ss:$16 sps:$4 sm:$0xff]  }
 0x298   :  { %5214 = vmatprep.subr.bf16.mxu0 %v7816_v51  ;;  %5706 = vmatprep.subr.bf16.mxu1 %v7819_v52  ;;  %v7904_v51 = vld [vmem:[#allocation4 + $0x14ec] ss:$16 sps:$4 sm:$0xff]   ;;  %v7899_v52 = vld [vmem:[#allocation4 + $0x14e0] ss:$16 sps:$4 sm:$0xff]  }
 0x29b   :  { %5215 = vmatpush1.bf16.msra.mxu0 %v7814_v53  ;;  %5707 = vmatpush1.bf16.msra.mxu1 %v7817_v54  ;;  %v7902_v53 = vld [vmem:[#allocation4 + $0x14e8] ss:$16 sps:$4 sm:$0xff]   ;;  %v7907_v54 = vld [vmem:[#allocation4 + $0x1504] ss:$16 sps:$4 sm:$0xff]  }
 0x29c   :  { %5216 = vmatprep.subr.bf16.mxu0 %v7822_v55  ;;  %5708 = vmatprep.subr.bf16.mxu1 %v7825_v32  ;;  %v7910_v55 = vld [vmem:[#allocation4 + $0x150c] ss:$16 sps:$4 sm:$0xff]   ;;  %v7905_v32 = vld [vmem:[#allocation4 + $0x1500] ss:$16 sps:$4 sm:$0xff]  }
 0x29f   :  { %5217 = vmatpush1.bf16.msra.mxu0 %v7820_v57  ;;  %5709 = vmatpush1.bf16.msra.mxu1 %v7823_v58  ;;  %v7908_v57 = vld [vmem:[#allocation4 + $0x1508] ss:$16 sps:$4 sm:$0xff]   ;;  %v7913_v58 = vld [vmem:[#allocation4 + $0x1524] ss:$16 sps:$4 sm:$0xff]  }
 0x2a0   :  { %5218 = vmatprep.subr.bf16.mxu0 %v7828_v60  ;;  %5710 = vmatprep.subr.bf16.mxu1 %v7831_v44  ;;  %v7916_v60 = vld [vmem:[#allocation4 + $0x152c] ss:$16 sps:$4 sm:$0xff]   ;;  %v7911_v44 = vld [vmem:[#allocation4 + $0x1520] ss:$16 sps:$4 sm:$0xff]  }
 0x2a3   :  { %5219 = vmatpush1.bf16.msra.mxu0 %v7826_v61  ;;  %5711 = vmatpush1.bf16.msra.mxu1 %v7829_v62  ;;  %v7914_v61 = vld [vmem:[#allocation4 + $0x1528] ss:$16 sps:$4 sm:$0xff]   ;;  %v7919_v62 = vld [vmem:[#allocation4 + $0x1544] ss:$16 sps:$4 sm:$0xff]  }
 0x2a4   :  { %5220 = vmatprep.subr.bf16.mxu0 %v7834_v63  ;;  %5712 = vmatprep.subr.bf16.mxu1 %v7837_v0  ;;  %v7922_v63 = vld [vmem:[#allocation4 + $0x154c] ss:$16 sps:$4 sm:$0xff]   ;;  %v7917_v0 = vld [vmem:[#allocation4 + $0x1540] ss:$16 sps:$4 sm:$0xff]  }
 0x2a7   :  { %5221 = vmatpush1.bf16.msra.mxu0 %v7832_v1  ;;  %5713 = vmatpush1.bf16.msra.mxu1 %v7835_v2  ;;  %v7920_v1 = vld [vmem:[#allocation4 + $0x1548] ss:$16 sps:$4 sm:$0xff]   ;;  %v7925_v2 = vld [vmem:[#allocation4 + $0x1564] ss:$16 sps:$4 sm:$0xff]  }
 0x2a8   :  { %5222 = vmatprep.subr.bf16.mxu0 %v7840_v3  ;;  %5714 = vmatprep.subr.bf16.mxu1 %v7843_v4  ;;  %v7928_v3 = vld [vmem:[#allocation4 + $0x156c] ss:$16 sps:$4 sm:$0xff]   ;;  %v7923_v4 = vld [vmem:[#allocation4 + $0x1560] ss:$16 sps:$4 sm:$0xff]  }
 0x2ab   :  { %5223 = vmatpush1.bf16.msra.mxu0 %v7838_v5  ;;  %5715 = vmatpush1.bf16.msra.mxu1 %v7841_v25  ;;  %v7926_v5 = vld [vmem:[#allocation4 + $0x1568] ss:$16 sps:$4 sm:$0xff]   ;;  %v7931_v25 = vld [vmem:[#allocation4 + $0x1584] ss:$16 sps:$4 sm:$0xff]  }
 0x2ac   :  { %5224 = vmatprep.subr.bf16.mxu0 %v7846_v7  ;;  %5716 = vmatprep.subr.bf16.mxu1 %v7849_v8  ;;  %v7934_v7 = vld [vmem:[#allocation4 + $0x158c] ss:$16 sps:$4 sm:$0xff]   ;;  %v7929_v8 = vld [vmem:[#allocation4 + $0x1580] ss:$16 sps:$4 sm:$0xff]  }
 0x2af   :  { %5225 = vmatpush1.bf16.msra.mxu0 %v7844_v11  ;;  %5717 = vmatpush1.bf16.msra.mxu1 %v7847_v59  ;;  %v7932_v11 = vld [vmem:[#allocation4 + $0x1588] ss:$16 sps:$4 sm:$0xff]   ;;  %v7937_v59 = vld [vmem:[#allocation4 + $0x15a4] ss:$16 sps:$4 sm:$0xff]  }
 0x2b0   :  { %5226 = vmatprep.subr.bf16.mxu0 %v7852_v12  ;;  %5718 = vmatprep.subr.bf16.mxu1 %v7855_v13  ;;  %v7940_v12 = vld [vmem:[#allocation4 + $0x15ac] ss:$16 sps:$4 sm:$0xff]   ;;  %v7935_v13 = vld [vmem:[#allocation4 + $0x15a0] ss:$16 sps:$4 sm:$0xff]  }
 0x2b3   :  { %5227 = vmatpush1.bf16.msra.mxu0 %v7850_v14  ;;  %5719 = vmatpush1.bf16.msra.mxu1 %v7853_v15  ;;  %v7938_v14 = vld [vmem:[#allocation4 + $0x15a8] ss:$16 sps:$4 sm:$0xff]   ;;  %v7943_v15 = vld [vmem:[#allocation4 + $0x15c4] ss:$16 sps:$4 sm:$0xff]  }
 0x2b4   :  { %5237 = vmatprep.subr.bf16.mxu0 %v7859_v16  ;;  %5729 = vmatprep.subr.bf16.mxu1 %v7862_v17  ;;  %v7946_v16 = vld [vmem:[#allocation4 + $0x15cc] ss:$16 sps:$4 sm:$0xff]   ;;  %v154_v17 = vcombine.high %v8297_v10, %v8297_v10 }
 0x2b6   :  { %5229 = vmatmul.mubr.bf16.vlgmr.msra.gmra.mrb[0].mxu0 %v213_v19  ;;  %5721 = vmatmul.mubr.bf16.vlgmr.msra.gmra.mrb[0].mxu1 %v213_v19  ;;  %v7944_v19 = vld [vmem:[#allocation4 + $0x15c8] ss:$16 sps:$4 sm:$0xff]  }
 0x2b7   :  { %5238 = vmatpush1.bf16.msra.mxu0 %v7857_v20  ;;  %5730 = vmatpush1.bf16.msra.mxu1 %v7860_v40  ;;  %v7949_v20 = vld [vmem:[#allocation4 + $0x15e4] ss:$16 sps:$4 sm:$0xff]   ;;  %v7952_v40 = vld [vmem:[#allocation4 + $0x15ec] ss:$16 sps:$4 sm:$0xff]  }
 0x2b8   :  { %5239 = vmatprep.subr.bf16.mxu0 %v7865_v21  ;;  %5731 = vmatprep.subr.bf16.mxu1 %v7868_v22  ;;  %v8310_v21 = vrot.slane %v154_v17, %v8213_v49  ;;  %v7947_v22 = vld [vmem:[#allocation4 + $0x15e0] ss:$16 sps:$4 sm:$0xff]   ;;  %v7961_v49 = vld [vmem:[#allocation4 + $0x1624] ss:$16 sps:$4 sm:$0xff]  }
 0x2b9   :  { %5269 = vmatprep.mubr.bf16.mxu0 %v216_v24  ;;  %5761 = vmatprep.mubr.bf16.mxu1 %v216_v24  ;;  %v7950_v24 = vld [vmem:[#allocation4 + $0x15e8] ss:$16 sps:$4 sm:$0xff]   ;;  %v8033_v17 = vld [vmem:[#allocation4 + $0x17a4] ss:$16 sps:$4 sm:$0xff]  }
 0x2ba   :  { %v170_v10 = vcombine.high %v8310_v21, %v8310_v21 }
 0x2bb   :  { %5240 = vmatpush1.bf16.msra.mxu0 %v7863_v27  ;;  %5732 = vmatpush1.bf16.msra.mxu1 %v7866_v9  ;;  %v7955_v27 = vld [vmem:[#allocation4 + $0x1604] ss:$16 sps:$4 sm:$0xff]   ;;  %v7958_v9 = vld [vmem:[#allocation4 + $0x160c] ss:$16 sps:$4 sm:$0xff]  }
 0x2bc   :  { %5241 = vmatprep.subr.bf16.mxu0 %v7871_v28  ;;  %5733 = vmatprep.subr.bf16.mxu1 %v7874_v23  ;;  %v215_v28 = vpack.c.bf16 %v8301_v56, %v8301_v56  ;;  %v7953_v23 = vld [vmem:[#allocation4 + $0x1600] ss:$16 sps:$4 sm:$0xff]  }
 0x2bd   :  { %v7965_v56 = vld [vmem:[#allocation4 + $0x1640] ss:$16 sps:$4 sm:$0xff]  }
 0x2bf   :  { %5242 = vmatpush1.bf16.msra.mxu0 %v7869_v6  ;;  %5734 = vmatpush1.bf16.msra.mxu1 %v7872_v30  ;;  %v7956_v6 = vld [vmem:[#allocation4 + $0x1608] ss:$16 sps:$4 sm:$0xff]   ;;  %v7964_v30 = vld [vmem:[#allocation4 + $0x162c] ss:$16 sps:$4 sm:$0xff]  }
 0x2c0   :  { %5243 = vmatprep.subr.bf16.mxu0 %v7877_v31  ;;  %5735 = vmatprep.subr.bf16.mxu1 %v7880_v33  ;;  %v218_v31 = vpack.c.bf16 %v170_v10, %v170_v10  ;;  %v7959_v33 = vld [vmem:[#allocation4 + $0x1620] ss:$16 sps:$4 sm:$0xff]   ;;  %v8048_v10 = vld [vmem:[#allocation4 + $0x17ec] ss:$16 sps:$4 sm:$0xff]  }
 0x2c3   :  { %5244 = vmatpush1.bf16.msra.mxu0 %v7875_v34  ;;  %5736 = vmatpush1.bf16.msra.mxu1 %v7878_v35  ;;  %v7962_v34 = vld [vmem:[#allocation4 + $0x1628] ss:$16 sps:$4 sm:$0xff]   ;;  %v7967_v35 = vld [vmem:[#allocation4 + $0x1644] ss:$16 sps:$4 sm:$0xff]  }
 0x2c4   :  { %5245 = vmatprep.subr.bf16.mxu0 %v7883_v36  ;;  %5737 = vmatprep.subr.bf16.mxu1 %v7886_v37  ;;  %v7970_v36 = vld [vmem:[#allocation4 + $0x164c] ss:$16 sps:$4 sm:$0xff]   ;;  %v7968_v37 = vld [vmem:[#allocation4 + $0x1648] ss:$16 sps:$4 sm:$0xff]  }
 0x2c7   :  { %5246 = vmatpush1.bf16.msra.mxu0 %v7881_v38  ;;  %5738 = vmatpush1.bf16.msra.mxu1 %v7884_v39  ;;  %v7973_v38 = vld [vmem:[#allocation4 + $0x1664] ss:$16 sps:$4 sm:$0xff]   ;;  %v7976_v39 = vld [vmem:[#allocation4 + $0x166c] ss:$16 sps:$4 sm:$0xff]  }
 0x2c8   :  { %5247 = vmatprep.subr.bf16.mxu0 %v7889_v26  ;;  %5739 = vmatprep.subr.bf16.mxu1 %v7892_v41  ;;  %v7971_v26 = vld [vmem:[#allocation4 + $0x1660] ss:$16 sps:$4 sm:$0xff]   ;;  %v7974_v41 = vld [vmem:[#allocation4 + $0x1668] ss:$16 sps:$4 sm:$0xff]  }
 0x2cb   :  { %5248 = vmatpush1.bf16.msra.mxu0 %v7887_v42  ;;  %5740 = vmatpush1.bf16.msra.mxu1 %v7890_v45  ;;  %v7979_v42 = vld [vmem:[#allocation4 + $0x1684] ss:$16 sps:$4 sm:$0xff]   ;;  %v7982_v45 = vld [vmem:[#allocation4 + $0x168c] ss:$16 sps:$4 sm:$0xff]  }
 0x2cc   :  { %5249 = vmatprep.subr.bf16.mxu0 %v7895_v29  ;;  %5741 = vmatprep.subr.bf16.mxu1 %v7898_v46  ;;  %v7977_v29 = vld [vmem:[#allocation4 + $0x1680] ss:$16 sps:$4 sm:$0xff]   ;;  %v7980_v46 = vld [vmem:[#allocation4 + $0x1688] ss:$16 sps:$4 sm:$0xff]  }
 0x2cf   :  { %5250 = vmatpush1.bf16.msra.mxu0 %v7893_v47  ;;  %5742 = vmatpush1.bf16.msra.mxu1 %v7896_v48  ;;  %v7985_v47 = vld [vmem:[#allocation4 + $0x16a4] ss:$16 sps:$4 sm:$0xff]   ;;  %v7988_v48 = vld [vmem:[#allocation4 + $0x16ac] ss:$16 sps:$4 sm:$0xff]  }
 0x2d0   :  { %5251 = vmatprep.subr.bf16.mxu0 %v7901_v50  ;;  %5743 = vmatprep.subr.bf16.mxu1 %v7904_v51  ;;  %v7983_v50 = vld [vmem:[#allocation4 + $0x16a0] ss:$16 sps:$4 sm:$0xff]   ;;  %v7986_v51 = vld [vmem:[#allocation4 + $0x16a8] ss:$16 sps:$4 sm:$0xff]  }
 0x2d3   :  { %5252 = vmatpush1.bf16.msra.mxu0 %v7899_v52  ;;  %5744 = vmatpush1.bf16.msra.mxu1 %v7902_v53  ;;  %v7991_v52 = vld [vmem:[#allocation4 + $0x16c4] ss:$16 sps:$4 sm:$0xff]   ;;  %v7994_v53 = vld [vmem:[#allocation4 + $0x16cc] ss:$16 sps:$4 sm:$0xff]  }
 0x2d4   :  { %5253 = vmatprep.subr.bf16.mxu0 %v7907_v54  ;;  %5745 = vmatprep.subr.bf16.mxu1 %v7910_v55  ;;  %v7989_v54 = vld [vmem:[#allocation4 + $0x16c0] ss:$16 sps:$4 sm:$0xff]   ;;  %v7992_v55 = vld [vmem:[#allocation4 + $0x16c8] ss:$16 sps:$4 sm:$0xff]  }
 0x2d7   :  { %5254 = vmatpush1.bf16.msra.mxu0 %v7905_v32  ;;  %5746 = vmatpush1.bf16.msra.mxu1 %v7908_v57  ;;  %v7997_v32 = vld [vmem:[#allocation4 + $0x16e4] ss:$16 sps:$4 sm:$0xff]   ;;  %v8000_v57 = vld [vmem:[#allocation4 + $0x16ec] ss:$16 sps:$4 sm:$0xff]  }
 0x2d8   :  { %5255 = vmatprep.subr.bf16.mxu0 %v7913_v58  ;;  %5747 = vmatprep.subr.bf16.mxu1 %v7916_v60  ;;  %v7995_v58 = vld [vmem:[#allocation4 + $0x16e0] ss:$16 sps:$4 sm:$0xff]   ;;  %v7998_v60 = vld [vmem:[#allocation4 + $0x16e8] ss:$16 sps:$4 sm:$0xff]  }
 0x2db   :  { %5256 = vmatpush1.bf16.msra.mxu0 %v7911_v44  ;;  %5748 = vmatpush1.bf16.msra.mxu1 %v7914_v61  ;;  %v8003_v44 = vld [vmem:[#allocation4 + $0x1704] ss:$16 sps:$4 sm:$0xff]   ;;  %v8006_v61 = vld [vmem:[#allocation4 + $0x170c] ss:$16 sps:$4 sm:$0xff]  }
 0x2dc   :  { %5257 = vmatprep.subr.bf16.mxu0 %v7919_v62  ;;  %5749 = vmatprep.subr.bf16.mxu1 %v7922_v63  ;;  %v8001_v62 = vld [vmem:[#allocation4 + $0x1700] ss:$16 sps:$4 sm:$0xff]   ;;  %v8004_v63 = vld [vmem:[#allocation4 + $0x1708] ss:$16 sps:$4 sm:$0xff]  }
 0x2df   :  { %5258 = vmatpush1.bf16.msra.mxu0 %v7917_v0  ;;  %5750 = vmatpush1.bf16.msra.mxu1 %v7920_v1  ;;  %v8009_v0 = vld [vmem:[#allocation4 + $0x1724] ss:$16 sps:$4 sm:$0xff]   ;;  %v8012_v1 = vld [vmem:[#allocation4 + $0x172c] ss:$16 sps:$4 sm:$0xff]  }
 0x2e0   :  { %5259 = vmatprep.subr.bf16.mxu0 %v7925_v2  ;;  %5751 = vmatprep.subr.bf16.mxu1 %v7928_v3  ;;  %v8007_v2 = vld [vmem:[#allocation4 + $0x1720] ss:$16 sps:$4 sm:$0xff]   ;;  %v8010_v3 = vld [vmem:[#allocation4 + $0x1728] ss:$16 sps:$4 sm:$0xff]  }
 0x2e3   :  { %5260 = vmatpush1.bf16.msra.mxu0 %v7923_v4  ;;  %5752 = vmatpush1.bf16.msra.mxu1 %v7926_v5  ;;  %v8015_v4 = vld [vmem:[#allocation4 + $0x1744] ss:$16 sps:$4 sm:$0xff]   ;;  %v8018_v5 = vld [vmem:[#allocation4 + $0x174c] ss:$16 sps:$4 sm:$0xff]  }
 0x2e4   :  { %5261 = vmatprep.subr.bf16.mxu0 %v7931_v25  ;;  %5753 = vmatprep.subr.bf16.mxu1 %v7934_v7  ;;  %v8013_v25 = vld [vmem:[#allocation4 + $0x1740] ss:$16 sps:$4 sm:$0xff]   ;;  %v8016_v7 = vld [vmem:[#allocation4 + $0x1748] ss:$16 sps:$4 sm:$0xff]  }
 0x2e7   :  { %5262 = vmatpush1.bf16.msra.mxu0 %v7929_v8  ;;  %5754 = vmatpush1.bf16.msra.mxu1 %v7932_v11  ;;  %v8021_v8 = vld [vmem:[#allocation4 + $0x1764] ss:$16 sps:$4 sm:$0xff]   ;;  %v8024_v11 = vld [vmem:[#allocation4 + $0x176c] ss:$16 sps:$4 sm:$0xff]  }
 0x2e8   :  { %5263 = vmatprep.subr.bf16.mxu0 %v7937_v59  ;;  %5755 = vmatprep.subr.bf16.mxu1 %v7940_v12  ;;  %v8019_v59 = vld [vmem:[#allocation4 + $0x1760] ss:$16 sps:$4 sm:$0xff]   ;;  %v8022_v12 = vld [vmem:[#allocation4 + $0x1768] ss:$16 sps:$4 sm:$0xff]  }
 0x2eb   :  { %5264 = vmatpush1.bf16.msra.mxu0 %v7935_v13  ;;  %5756 = vmatpush1.bf16.msra.mxu1 %v7938_v14  ;;  %v8027_v13 = vld [vmem:[#allocation4 + $0x1784] ss:$16 sps:$4 sm:$0xff]   ;;  %v8030_v14 = vld [vmem:[#allocation4 + $0x178c] ss:$16 sps:$4 sm:$0xff]  }
 0x2ec   :  { %5265 = vmatprep.subr.bf16.mxu0 %v7943_v15  ;;  %5757 = vmatprep.subr.bf16.mxu1 %v7946_v16  ;;  %v8025_v15 = vld [vmem:[#allocation4 + $0x1780] ss:$16 sps:$4 sm:$0xff]   ;;  %v8028_v16 = vld [vmem:[#allocation4 + $0x1788] ss:$16 sps:$4 sm:$0xff]  }
 0x2ef   :  { %5266 = vmatpush1.bf16.msra.mxu0 %v7941_v18  ;;  %5758 = vmatpush1.bf16.msra.mxu1 %v7944_v19  ;;  %v8036_v18 = vld [vmem:[#allocation4 + $0x17ac] ss:$16 sps:$4 sm:$0xff]   ;;  %v8031_v19 = vld [vmem:[#allocation4 + $0x17a0] ss:$16 sps:$4 sm:$0xff]  }
 0x2f0   :  { %5267 = vmatprep.subr.bf16.mxu0 %v7949_v20  ;;  %5759 = vmatprep.subr.bf16.mxu1 %v7952_v40  ;;  %v8034_v20 = vld [vmem:[#allocation4 + $0x17a8] ss:$16 sps:$4 sm:$0xff]   ;;  %v8039_v40 = vld [vmem:[#allocation4 + $0x17c4] ss:$16 sps:$4 sm:$0xff]  }
 0x2f3   :  { %5268 = vmatpush1.bf16.msra.mxu0 %v7947_v22  ;;  %5760 = vmatpush1.bf16.msra.mxu1 %v7950_v24  ;;  %v8042_v22 = vld [vmem:[#allocation4 + $0x17cc] ss:$16 sps:$4 sm:$0xff]   ;;  %v8037_v24 = vld [vmem:[#allocation4 + $0x17c0] ss:$16 sps:$4 sm:$0xff]  }
 0x2f4   :  { %5278 = vmatprep.subr.bf16.mxu0 %v7955_v27  ;;  %5770 = vmatprep.subr.bf16.mxu1 %v7958_v9  ;;  %v8040_v27 = vld [vmem:[#allocation4 + $0x17c8] ss:$16 sps:$4 sm:$0xff]   ;;  %v8045_v9 = vld [vmem:[#allocation4 + $0x17e4] ss:$16 sps:$4 sm:$0xff]  }
 0x2f6   :  { %5270 = vmatmul.mubr.bf16.vlgmr.msra.gmra.mrb[0].mxu0 %v215_v28  ;;  %5762 = vmatmul.mubr.bf16.vlgmr.msra.gmra.mrb[0].mxu1 %v215_v28  ;;  %v8043_v28 = vld [vmem:[#allocation4 + $0x17e0] ss:$16 sps:$4 sm:$0xff]  }
 0x2f7   :  { %5279 = vmatpush1.bf16.msra.mxu0 %v7953_v23  ;;  %5771 = vmatpush1.bf16.msra.mxu1 %v7956_v6  ;;  %v8046_v23 = vld [vmem:[#allocation4 + $0x17e8] ss:$16 sps:$4 sm:$0xff]   ;;  %v217_v6 = vpack.c.bf16 %v8310_v21, %v8310_v21 }
 0x2f8   :  { %5280 = vmatprep.subr.bf16.mxu0 %v7961_v49  ;;  %5772 = vmatprep.subr.bf16.mxu1 %v7964_v30 }
 0x2f9   :  { %5310 = vmatprep.mubr.bf16.mxu0 %v218_v31  ;;  %5802 = vmatprep.mubr.bf16.mxu1 %v218_v31 }
 0x2fb   :  { %5281 = vmatpush1.bf16.msra.mxu0 %v7959_v33  ;;  %5773 = vmatpush1.bf16.msra.mxu1 %v7962_v34 }
 0x2fc   :  { %5282 = vmatprep.subr.bf16.mxu0 %v7967_v35  ;;  %5774 = vmatprep.subr.bf16.mxu1 %v7970_v36 }
 0x2ff   :  { %5283 = vmatpush1.bf16.msra.mxu0 %v7965_v56  ;;  %5775 = vmatpush1.bf16.msra.mxu1 %v7968_v37 }
 0x300   :  { %5284 = vmatprep.subr.bf16.mxu0 %v7973_v38  ;;  %5776 = vmatprep.subr.bf16.mxu1 %v7976_v39 }
 0x303   :  { %5285 = vmatpush1.bf16.msra.mxu0 %v7971_v26  ;;  %5777 = vmatpush1.bf16.msra.mxu1 %v7974_v41 }
 0x304   :  { %5286 = vmatprep.subr.bf16.mxu0 %v7979_v42  ;;  %5778 = vmatprep.subr.bf16.mxu1 %v7982_v45 }
 0x307   :  { %5287 = vmatpush1.bf16.msra.mxu0 %v7977_v29  ;;  %5779 = vmatpush1.bf16.msra.mxu1 %v7980_v46 }
 0x308   :  { %5288 = vmatprep.subr.bf16.mxu0 %v7985_v47  ;;  %5780 = vmatprep.subr.bf16.mxu1 %v7988_v48 }
 0x30b   :  { %5289 = vmatpush1.bf16.msra.mxu0 %v7983_v50  ;;  %5781 = vmatpush1.bf16.msra.mxu1 %v7986_v51 }
 0x30c   :  { %5290 = vmatprep.subr.bf16.mxu0 %v7991_v52  ;;  %5782 = vmatprep.subr.bf16.mxu1 %v7994_v53 }
 0x30f   :  { %5291 = vmatpush1.bf16.msra.mxu0 %v7989_v54  ;;  %5783 = vmatpush1.bf16.msra.mxu1 %v7992_v55 }
 0x310   :  { %5292 = vmatprep.subr.bf16.mxu0 %v7997_v32  ;;  %5784 = vmatprep.subr.bf16.mxu1 %v8000_v57 }
 0x313   :  { %5293 = vmatpush1.bf16.msra.mxu0 %v7995_v58  ;;  %5785 = vmatpush1.bf16.msra.mxu1 %v7998_v60 }
 0x314   :  { %5294 = vmatprep.subr.bf16.mxu0 %v8003_v44  ;;  %5786 = vmatprep.subr.bf16.mxu1 %v8006_v61 }
 0x317   :  { %5295 = vmatpush1.bf16.msra.mxu0 %v8001_v62  ;;  %5787 = vmatpush1.bf16.msra.mxu1 %v8004_v63 }
 0x318   :  { %5296 = vmatprep.subr.bf16.mxu0 %v8009_v0  ;;  %5788 = vmatprep.subr.bf16.mxu1 %v8012_v1 }
 0x31b   :  { %5297 = vmatpush1.bf16.msra.mxu0 %v8007_v2  ;;  %5789 = vmatpush1.bf16.msra.mxu1 %v8010_v3 }
 0x31c   :  { %5298 = vmatprep.subr.bf16.mxu0 %v8015_v4  ;;  %5790 = vmatprep.subr.bf16.mxu1 %v8018_v5 }
 0x31f   :  { %5299 = vmatpush1.bf16.msra.mxu0 %v8013_v25  ;;  %5791 = vmatpush1.bf16.msra.mxu1 %v8016_v7 }
 0x320   :  { %5300 = vmatprep.subr.bf16.mxu0 %v8021_v8  ;;  %5792 = vmatprep.subr.bf16.mxu1 %v8024_v11 }
 0x323   :  { %5301 = vmatpush1.bf16.msra.mxu0 %v8019_v59  ;;  %5793 = vmatpush1.bf16.msra.mxu1 %v8022_v12 }
 0x324   :  { %5302 = vmatprep.subr.bf16.mxu0 %v8027_v13  ;;  %5794 = vmatprep.subr.bf16.mxu1 %v8030_v14 }
 0x327   :  { %5303 = vmatpush1.bf16.msra.mxu0 %v8025_v15  ;;  %5795 = vmatpush1.bf16.msra.mxu1 %v8028_v16 }
 0x328   :  { %5304 = vmatprep.subr.bf16.mxu0 %v8033_v17  ;;  %5796 = vmatprep.subr.bf16.mxu1 %v8036_v18 }
 0x32b   :  { %5305 = vmatpush1.bf16.msra.mxu0 %v8031_v19  ;;  %5797 = vmatpush1.bf16.msra.mxu1 %v8034_v20 }
 0x32c   :  { %5306 = vmatprep.subr.bf16.mxu0 %v8039_v40  ;;  %5798 = vmatprep.subr.bf16.mxu1 %v8042_v22 }
 0x32f   :  { %5307 = vmatpush1.bf16.msra.mxu0 %v8037_v24  ;;  %5799 = vmatpush1.bf16.msra.mxu1 %v8040_v27 }
 0x330   :  { %5308 = vmatprep.subr.bf16.mxu0 %v8045_v9  ;;  %5800 = vmatprep.subr.bf16.mxu1 %v8048_v10 }
 0x333   :  { %5309 = vmatpush1.bf16.msra.mxu0 %v8043_v28  ;;  %5801 = vmatpush1.bf16.msra.mxu1 %v8046_v23 }
 0x336   :  { %5311 = vmatmul.mubr.bf16.vlgmr.msra.gmra.mrb[0].mxu0 %v217_v6  ;;  %5803 = vmatmul.mubr.bf16.vlgmr.msra.gmra.mrb[0].mxu1 %v217_v6 }
 0x409   :  { %v5312_v49 = vpop.f32.mrb[0].mxu0  ;;  %v5804_v30 = vpop.f32.mrb[0].mxu1 }
 0x40a   :  { %v5812_v31 = vsel %vm5811_vm0, %v5312_v49, 0.0  ;;  %v5826_v33 = vsel %vm5811_vm0, %v5804_v30, 0.0  ;;  %v5314_v34 = vpop.f32.mrb[1].mxu0  ;;  %v5806_v35 = vpop.f32.mrb[1].mxu1 }
 0x40b   :  { %v5813_v36 = vrot.slane %v5812_v31, 4  ;;  %v5827_v56 = vrot.slane %v5826_v33, 4  ;;  %v5819_v37 = vsel %vm5811_vm0, %v5314_v34, 0.0  ;;  %v5833_v38 = vsel %vm5811_vm0, %v5806_v35, 0.0  ;;  %v5316_v21 = vpop.f32.mrb[2].mxu0  ;;  %v5808_v39 = vpop.f32.mrb[2].mxu1 }
 0x40c   :  { %v5820_v26 = vrot.slane %v5819_v37, 4  ;;  %v5834_v41 = vrot.slane %v5833_v38, 4  ;;  %v5317_v42 = vpop.f32.mrb[3].mxu0  ;;  %v5809_v45 = vpop.f32.mrb[3].mxu1 }
 0x40d   :  { %v5814_v29 = vadd.f32 %v5813_v36, %v5812_v31  ;;  %v5828_v46 = vadd.f32 %v5827_v56, %v5826_v33 }
 0x40e   :  { %v5821_v47 = vadd.f32 %v5820_v26, %v5819_v37  ;;  %v5835_v48 = vadd.f32 %v5834_v41, %v5833_v38 }
 0x40f   :  { %v5815_v50 = vrot.slane %v5814_v29, 2  ;;  %v5829_v51 = vrot.slane %v5828_v46, 2 }
 0x410   :  { %v5822_v52 = vrot.slane %v5821_v47, 2  ;;  %v5836_v53 = vrot.slane %v5835_v48, 2 }
 0x411   :  { %v5816_v54 = vadd.f32 %v5815_v50, %v5814_v29  ;;  %v5830_v55 = vadd.f32 %v5829_v51, %v5828_v46  ;;  %v5900_v51 = vsub.s32 0, %v8210_v43 }
 0x412   :  { %v5823_v32 = vadd.f32 %v5822_v52, %v5821_v47  ;;  %v5837_v57 = vadd.f32 %v5836_v53, %v5835_v48  ;;  %v51_v52 = vld [vmem:[#allocation6] ss:$4 sm:$0xf]  ;;  %v5908_v53 = vsub.s32 2, %v8210_v43 }
 0x413   :  { %v5817_v58 = vrot.slane %v5816_v54, 1  ;;  %v5831_v60 = vrot.slane %v5830_v55, 1 }
 0x414   :  { %v5824_v44 = vrot.slane %v5823_v32, 1  ;;  %v5838_v61 = vrot.slane %v5837_v57, 1 }
 0x415   :  { %v5818_v62 = vadd.f32 %v5817_v58, %v5816_v54  ;;  %v5832_v63 = vadd.f32 %v5831_v60, %v5830_v55  ;;  %v5904_v54 = vsub.s32 1, %v8210_v43  ;;  %v53_v55 = vld [vmem:[#allocation6 + $0x1] ss:$4 sm:$0xf]  ;;  %v5909_v60 = vrot.slane %v51_v52, %v5908_v53 }
 0x416   :  { %v5825_v0 = vadd.f32 %v5824_v44, %v5823_v32  ;;  %v5839_v1 = vadd.f32 %v5838_v61, %v5837_v57  ;;  %v5912_v32 = vsub.s32 3, %v8210_v43  ;;  %v5901_v57 = vrot.slane %v51_v52, %v5900_v51 }
 0x417   :  { %v5841_v2 = vmul.f32 0.5, %v5818_v62  ;;  %v5843_v3 = vmul.f32 0.5, %v5832_v63  ;;  %v5926_v62 = vrot.slane %v53_v55, %v5900_v51  ;;  %v5905_v63 = vrot.slane %v51_v52, %v5904_v54 }
 0x418   :  { %v5842_v4 = vmul.f32 0.5, %v5825_v0  ;;  %v5844_v5 = vmul.f32 0.5, %v5839_v1  ;;  %v5938_v43 = vrot.slane %v53_v55, %v5912_v32 }
 0x419   :  { %v5845_v25 = vsub.f32 %v5312_v49, %v5841_v2  ;;  %v5847_v7 = vsub.f32 %v5804_v30, %v5843_v3  ;;  %v5934_v2 = vrot.slane %v53_v55, %v5908_v53  ;;  %v5913_v3 = vrot.slane %v51_v52, %v5912_v32 }
 0x41a   :  { %v8322_v8 = vsub.f32 %v5314_v34, %v5842_v4  ;;  %v8324_v11 = vsub.f32 %v5806_v35, %v5844_v5 }
 0x41b   :  { %v5849_v59 = vmul.f32 %v5845_v25, %v5845_v25  ;;  %v5851_v12 = vmul.f32 %v5847_v7, %v5847_v7 }
 0x41c   :  { %v5850_v13 = vmul.f32 %v8322_v8, %v8322_v8  ;;  %v5852_v14 = vmul.f32 %v8324_v11, %v8324_v11 }
 0x41d   :  { %v5853_v15 = vsel %vm5811_vm0, %v5849_v59, 0.0  ;;  %v5867_v16 = vsel %vm5811_vm0, %v5851_v12, 0.0  ;;  %v5930_v12 = vrot.slane %v53_v55, %v5904_v54 }
 0x41e   :  { %v5854_v17 = vrot.slane %v5853_v15, 4  ;;  %v5868_v18 = vrot.slane %v5867_v16, 4  ;;  %v5860_v19 = vsel %vm5811_vm0, %v5850_v13, 0.0  ;;  %v5874_v20 = vsel %vm5811_vm0, %v5852_v14, 0.0 }
 0x41f   :  { %v5861_v40 = vrot.slane %v5860_v19, 4  ;;  %v5875_v22 = vrot.slane %v5874_v20, 4 }
 0x420   :  { %v5855_v24 = vadd.f32 %v5854_v17, %v5853_v15  ;;  %v5869_v27 = vadd.f32 %v5868_v18, %v5867_v16 }
 0x421   :  { %v5862_v9 = vadd.f32 %v5861_v40, %v5860_v19  ;;  %v5876_v10 = vadd.f32 %v5875_v22, %v5874_v20 }
 0x422   :  { %v5856_v28 = vrot.slane %v5855_v24, 2  ;;  %v5870_v23 = vrot.slane %v5869_v27, 2 }
 0x423   :  { %v5863_v6 = vrot.slane %v5862_v9, 2  ;;  %v5877_v49 = vrot.slane %v5876_v10, 2 }
 0x424   :  { %v5857_v30 = vadd.f32 %v5856_v28, %v5855_v24  ;;  %v5871_v31 = vadd.f32 %v5870_v23, %v5869_v27 }
 0x425   :  { %v5864_v33 = vadd.f32 %v5863_v6, %v5862_v9  ;;  %v5878_v34 = vadd.f32 %v5877_v49, %v5876_v10  ;;  %v55_v6 = vld [vmem:[#allocation6 + $0x2] ss:$4 sm:$0xf] }
 0x426   :  { %v5858_v35 = vrot.slane %v5857_v30, 1  ;;  %v5872_v36 = vrot.slane %v5871_v31, 1  ;;  %v5975_v49 = vrot.slane %v55_v6, %v5900_v51 }
 0x427   :  { %v5865_v56 = vrot.slane %v5864_v33, 1  ;;  %v5879_v37 = vrot.slane %v5878_v34, 1 }
 0x428   :  { %v5859_v38 = vadd.f32 %v5858_v35, %v5857_v30  ;;  %v5873_v21 = vadd.f32 %v5872_v36, %v5871_v31  ;;  %v5979_v30 = vrot.slane %v55_v6, %v5904_v54  ;;  %v5983_v31 = vrot.slane %v55_v6, %v5908_v53 }
 0x429   :  { %v5866_v39 = vadd.f32 %v5865_v56, %v5864_v33  ;;  %v5880_v26 = vadd.f32 %v5879_v37, %v5878_v34  ;;  %v5987_v35 = vrot.slane %v55_v6, %v5912_v32 }
 0x42a   :  { %v5881_v41 = vmul.f32 0.5, %v5859_v38  ;;  %v5883_v42 = vmul.f32 0.5, %v5873_v21 }
 0x42b   :  { %v5882_v45 = vmul.f32 0.5, %v5866_v39  ;;  %v5884_v29 = vmul.f32 0.5, %v5880_v26 }
 0x42c   :  { %v5885_v46 = vadd.f32 1e-05, %v5881_v41  ;;  %v5887_v47 = vadd.f32 1e-05, %v5883_v42 }
 0x42d   :  { %v5886_v48 = vadd.f32 1e-05, %v5882_v45  ;;  %v5888_v50 = vadd.f32 1e-05, %v5884_v29 }
 0x42e   :  { %8050 = vrsqrt.f32 %v5885_v46 }
 0x42f   :  { %8052 = vrsqrt.f32 %v5887_v47 }
 0x430   :  { %8054 = vrsqrt.f32 %v5886_v48  ;;  %v6796_v48 = vld [vmem:[#allocation6 + $0x3] ss:$0 sm:$0xff] }
 0x431   :  { %8056 = vrsqrt.f32 %v5888_v50 }
 0x438   :  { %v8051_v58 = vpop.eup %8050 }
 0x439   :  { %v8053_v44 = vpop.eup %8052  ;;  %v5893_v61 = vmul.f32 %v8051_v58, %v5845_v25 }
 0x43a   :  { %v8055_v0 = vpop.eup %8054  ;;  %v5895_v1 = vmul.f32 %v8053_v44, %v5847_v7 }
 0x43b   :  { %v8057_v4 = vpop.eup %8056  ;;  %v5918_v5 = vmul.f32 %v5901_v57, %v5893_v61  ;;  %v5894_v59 = vmul.f32 %v8055_v0, %v8322_v8 }
 0x43c   :  { %v5920_v13 = vmul.f32 %v5909_v60, %v5895_v1  ;;  %v5896_v14 = vmul.f32 %v8057_v4, %v8324_v11 }
 0x43d   :  { %v5943_v15 = vadd.f32 %v5926_v62, %v5918_v5  ;;  %v5919_v16 = vmul.f32 %v5905_v63, %v5894_v59 }
 0x43e   :  { %v5945_v17 = vadd.f32 %v5934_v2, %v5920_v13  ;;  %v5921_v18 = vmul.f32 %v5913_v3, %v5896_v14 }
 0x43f   :  { %v6792_v25 = vmul.f32 -1.442695, %v5943_v15  ;;  %v5944_v19 = vadd.f32 %v5930_v12, %v5919_v16 }
 0x440   :  { %v6794_v20 = vmul.f32 -1.442695, %v5945_v17  ;;  %v5946_v40 = vadd.f32 %v5938_v43, %v5921_v18 }
 0x441   :  { %8058 = vpow2.f32 %v6792_v25  ;;  %v6793_v7 = vmul.f32 -1.442695, %v5944_v19 }
 0x442   :  { %8060 = vpow2.f32 %v6794_v20  ;;  %v6795_v22 = vmul.f32 -1.442695, %v5946_v40 }
 0x443   :  { %8062 = vpow2.f32 %v6793_v7 }
 0x444   :  { %8064 = vpow2.f32 %v6795_v22 }
 0x44b   :  { %v8059_v8 = vpop.eup %8058 }
 0x44c   :  { %v8061_v24 = vpop.eup %8060  ;;  %v5959_v27 = vadd.f32 1.0, %v8059_v8 }
 0x44d   :  { %v8063_v9 = vpop.eup %8062  ;;  %v5961_v11 = vadd.f32 1.0, %v8061_v24 }
 0x44e   :  { %v8065_v10 = vpop.eup %8064  ;;  %8066 = vrcp.f32 %v5959_v27  ;;  %v5960_v28 = vadd.f32 1.0, %v8063_v9 }
 0x44f   :  { %8068 = vrcp.f32 %v5961_v11  ;;  %v5962_v23 = vadd.f32 1.0, %v8065_v10 }
 0x450   :  { %8070 = vrcp.f32 %v5960_v28 }
 0x451   :  { %8072 = vrcp.f32 %v5962_v23 }
 0x458   :  { %v8067_v33 = vpop.eup %8066 }
 0x459   :  { %v8069_v34 = vpop.eup %8068  ;;  %v5992_v36 = vmul.f32 %v8067_v33, %v5975_v49 }
 0x45a   :  { %v8071_v56 = vpop.eup %8070  ;;  %v5994_v21 = vmul.f32 %v8069_v34, %v5983_v31 }
 0x45b   :  { %v8073_v37 = vpop.eup %8072  ;;  %v5993_v38 = vmul.f32 %v8071_v56, %v5979_v30  ;;  %v5996_v39 = vsel %vm5811_vm0, %v5992_v36, 0.0 }
 0x45c   :  { %v5995_v26 = vmul.f32 %v8073_v37, %v5987_v35  ;;  %v5999_v45 = vsel %vm5811_vm0, %v5994_v21, 0.0 }
 0x45d   :  { %v5997_v41 = vsel %vm5811_vm0, %v5993_v38, 0.0 }
 0x45e   :  { %v5998_v42 = vadd.f32 %v5997_v41, %v5996_v39  ;;  %v6001_v46 = vsel %vm5811_vm0, %v5995_v26, 0.0 }
 0x460   :  { %v6000_v29 = vadd.f32 %v5999_v45, %v5998_v42 }
 0x462   :  { %v6002_v47 = vadd.f32 %v6001_v46, %v6000_v29 }
 0x464   :  { %6003 = vadd.xlane.f32.xlu0 %v6002_v47 }
 0x4f1   :  { %v6004_v50 = vpop.xlane.xlu0 %6003 }
 0x4f2   :  { %v6009_v51 = vadd.f32 %v6796_v48, %v6004_v50 }
 0x4f4   :  { %v6797_v52 = vmul.f32 -1.442695, %v6009_v51 }
 0x4f6   :  { %8074 = vpow2.f32 %v6797_v52 }
 0x500   :  { %v8075_v53 = vpop.eup %8074 }
 0x501   :  { %v6013_v54 = vadd.f32 1.0, %v8075_v53 }
 0x503   :  { %8076 = vrcp.f32 %v6013_v54 }
 0x50d   :  { %v8077_v55 = vpop.eup %8076 }
 0x50e   :  { %6017 = vst.msk [vmem:[%s8350_s3] sm:$0x3] %vm6016_vm1, %v8077_v55 }
 0x50f   :  { %6022 = vsyncpa [#allocation3], 1 }
 0x510   :  { %6023 = vsyncpa [#allocation5], 1 }

</bundles_post_ra>
